<compile_context>
chip_gen: v6e
topology: v6e:2x2x1
jax: 0.10.0
libtpu: 0.0.40
codegen_flags: <defaults>
</compile_context>

<pallas_src>
import math

import jax
import jax.numpy as jnp
from jax.experimental import pallas as pl
from jax.experimental.pallas import tpu as pltpu

# ---------------- small synthetic config ----------------
BATCH = 2
SEQ = 8
HIDDEN = 32
HEADS = 4
HEAD_DIM = HIDDEN // HEADS
LAYERS = 2
VOCAB = 64          # len(tokenizer) after resize_token_embeddings
REP_TOKEN_ID = 7    # id of '<rep>'
BOW_WT = 1.0
LN_EPS = 1e-5
KEY_LEN = 4         # key_ids[0] length
KEY_PAD = 8         # key rows padded to a sublane multiple with -100 (ignored by CE)

N_TOK = BATCH * SEQ
_GELU_C = math.sqrt(2.0 / math.pi)
_ATTN_SCALE = 1.0 / math.sqrt(HEAD_DIM)

# --- packed-slab row layout (all offsets are 8/16-row aligned) ---
PAD_W = 128                         # lane width all weight rows are padded to
EMB_WTE_R0 = 0
EMB_WPE_R0 = VOCAB                  # 64
EMB_BOW_R0 = VOCAB + 2 * SEQ        # 80 (8 zero pad rows keep bf16 packing aligned)
EMB_ROWS = EMB_BOW_R0 + VOCAB       # 144
MAT_ATTN_R0 = 0
MAT_PROJ_R0 = HIDDEN                # 32
MAT_FC_R0 = 2 * HIDDEN              # 64
MAT_MLP_R0 = 3 * HIDDEN             # 96
MAT_ROWS = 7 * HIDDEN               # 224
# vecs slab rows (per layer): 0 ln1_g, 1 ln1_b, 2 ln2_g, 3 ln2_b, 4 attn_b, 5 proj_b,
#                             6 fc_b, 7 mlp_b ; slab index LAYERS holds ln_f (rows 0,1)

_VMEM = pl.BlockSpec(memory_space=pltpu.MemorySpace.VMEM)


# ---------------- in-kernel helpers (traced; everything stays in VMEM/vregs) ----------------
def _ln(x, g, b):
    mu = jnp.mean(x, axis=-1, keepdims=True)
    var = jnp.mean((x - mu) ** 2, axis=-1, keepdims=True)
    return (x - mu) * jax.lax.rsqrt(var + LN_EPS) * g + b


def _mm(a, b):
    # MXU matmul with bf16 operands, f32 accumulation.
    return jnp.dot(a.astype(jnp.bfloat16), b.astype(jnp.bfloat16),
                   preferred_element_type=jnp.float32)


def _mm_t(a, b):
    # a @ b.T on the MXU (transposed contraction; no transposed copy is materialized).
    return jax.lax.dot_general(a.astype(jnp.bfloat16), b.astype(jnp.bfloat16),
                               (((1,), (1,)), ((), ())),
                               preferred_element_type=jnp.float32)


def _ce_sum_count(logits, tgt, col_iota):
    # Masked cross-entropy pieces. logits: (R_or_1, V) f32; tgt: (R, 1) int32 (-100 ignored);
    # col_iota: (R, V). Returns ((1,1) sum of valid losses, (1,1) valid count).
    mx = jnp.max(logits, axis=-1, keepdims=True)
    lse = jnp.log(jnp.sum(jnp.exp(logits - mx), axis=-1, keepdims=True)) + mx
    valid = tgt != -100
    safe = jnp.where(valid, tgt, 0)
    picked = jnp.sum(jnp.where(col_iota == safe, logits, 0.0), axis=-1, keepdims=True)
    per_row = jnp.where(valid, lse - picked, 0.0)
    return (jnp.sum(per_row, keepdims=True),
            jnp.sum(valid.astype(jnp.float32), keepdims=True))


# ---------------- the single fused kernel ----------------
def _fused_forward_kernel(ints_ref, emb_ref, mats_ref, vecs_ref, loss_ref):
    f32 = jnp.float32
    bf16 = jnp.bfloat16

    # --- unpack the packed int slab (ids / shifted LM targets / padded key ids) ---
    ids = ints_ref[0:N_TOK, :]                               # (N_TOK, 1) int32
    tgt = ints_ref[N_TOK:2 * N_TOK, :]                       # (N_TOK, 1) int32
    key = ints_ref[2 * N_TOK:2 * N_TOK + KEY_PAD, :]         # (KEY_PAD, 1) int32 (-100 pad)

    # --- unpack the embedding slab (bf16) ---
    wte = emb_ref[EMB_WTE_R0:EMB_WTE_R0 + VOCAB, :]          # (VOCAB, HIDDEN)
    wpe = emb_ref[EMB_WPE_R0:EMB_WPE_R0 + SEQ, :]            # (SEQ, HIDDEN)
    bow_w = emb_ref[EMB_BOW_R0:EMB_BOW_R0 + VOCAB, :]        # (VOCAB, HIDDEN)

    vcol = jax.lax.broadcasted_iota(jnp.int32, (N_TOK, VOCAB), 1)

    # --- token + position embeddings (wte gather as a one-hot matmul on the MXU) ---
    onehot = (vcol == ids).astype(bf16)                      # exact in bf16
    pos = jnp.concatenate([wpe] * BATCH, axis=0)             # in-kernel tile over batch
    x = _mm(onehot, wte) + pos                               # (N_TOK, HIDDEN) f32

    # --- causal mask shared by every (batch, head) tile ---
    r_i = jax.lax.broadcasted_iota(jnp.int32, (SEQ, SEQ), 0)
    c_i = jax.lax.broadcasted_iota(jnp.int32, (SEQ, SEQ), 1)
    causal = c_i <= r_i

    # --- transformer blocks (statically unrolled at this toy size) ---
    for l in range(LAYERS):
        ln1_g = vecs_ref[l, 0:1, 0:HIDDEN]
        ln1_b = vecs_ref[l, 1:2, 0:HIDDEN]
        ln2_g = vecs_ref[l, 2:3, 0:HIDDEN]
        ln2_b = vecs_ref[l, 3:4, 0:HIDDEN]
        attn_b = vecs_ref[l, 4:5, 0:3 * HIDDEN]
        proj_b = vecs_ref[l, 5:6, 0:HIDDEN]
        fc_b = vecs_ref[l, 6:7, 0:4 * HIDDEN]
        mlp_b = vecs_ref[l, 7:8, 0:HIDDEN]

        attn_w = mats_ref[l, MAT_ATTN_R0:MAT_ATTN_R0 + HIDDEN, 0:3 * HIDDEN]
        proj_w = mats_ref[l, MAT_PROJ_R0:MAT_PROJ_R0 + HIDDEN, 0:HIDDEN]
        fc_w = mats_ref[l, MAT_FC_R0:MAT_FC_R0 + HIDDEN, 0:4 * HIDDEN]
        mlp_w = mats_ref[l, MAT_MLP_R0:MAT_MLP_R0 + 4 * HIDDEN, 0:HIDDEN]

        hn = _ln(x, ln1_g, ln1_b)
        qkv = _mm(hn, attn_w) + attn_b                       # (N_TOK, 3*HIDDEN) f32

        # Causal MHA; every head's (SEQ, HEAD_DIM) output stays in vregs.
        batch_blocks = []
        for b in range(BATCH):
            r0 = b * SEQ
            heads = []
            for hd in range(HEADS):
                c0 = hd * HEAD_DIM
                qh = qkv[r0:r0 + SEQ, c0:c0 + HEAD_DIM]
                kh = qkv[r0:r0 + SEQ, HIDDEN + c0:HIDDEN + c0 + HEAD_DIM]
                vh = qkv[r0:r0 + SEQ, 2 * HIDDEN + c0:2 * HIDDEN + c0 + HEAD_DIM]
                s = _mm_t(qh, kh) * _ATTN_SCALE              # (SEQ, SEQ) f32
                s = jnp.where(causal, s, -1e30)
                s = s - jnp.max(s, axis=-1, keepdims=True)
                p = jnp.exp(s)
                p = p * pl.reciprocal(jnp.sum(p, axis=-1, keepdims=True), approx=True)
                heads.append(_mm(p, vh))                     # (SEQ, HEAD_DIM), register-resident
            batch_blocks.append(jnp.concatenate(heads, axis=-1))   # (SEQ, HIDDEN)
        attn_out = jnp.concatenate(batch_blocks, axis=0)     # (N_TOK, HIDDEN)

        x = x + _mm(attn_out, proj_w) + proj_b
        hn2 = _ln(x, ln2_g, ln2_b)
        m = _mm(hn2, fc_w) + fc_b
        # GPT-2 "gelu_new" (tanh approximation) in f32
        m = 0.5 * m * (1.0 + jnp.tanh(_GELU_C * (m + 0.044715 * m * m * m)))
        x = x + _mm(m, mlp_w) + mlp_b

    lnf_g = vecs_ref[LAYERS, 0:1, 0:HIDDEN]
    lnf_b = vecs_ref[LAYERS, 1:2, 0:HIDDEN]
    hidden = _ln(x, lnf_g, lnf_b)                            # == hidden_states[-1]

    # --- tied lm_head + shifted masked CE (logits never leave VMEM) ---
    lm_logits = _mm_t(hidden, wte)                           # (N_TOK, VOCAB) f32
    lm_sum, lm_cnt = _ce_sum_count(lm_logits, tgt, vcol)
    # 0/0 -> NaN (approx recip of 0 -> inf, 0*inf -> NaN), matching torch ignore_index behavior.
    lm_loss = lm_sum * pl.reciprocal(lm_cnt, approx=True)

    # --- bag-of-words head at the first <rep> position of example 0 ---
    pos_f = jax.lax.broadcasted_iota(jnp.int32, (SEQ, 1), 0).astype(jnp.float32)
    rep_mask = ids[0:SEQ, :] == REP_TOKEN_ID
    first_idx = jnp.min(jnp.where(rep_mask, pos_f, 1e9), axis=0, keepdims=True)   # (1,1)
    # TODO(synk): if no <rep> token exists, torch raises IndexError; here sel is all-zero.
    sel = (jax.lax.broadcasted_iota(jnp.int32, (1, N_TOK), 1).astype(jnp.float32)
           == first_idx).astype(bf16)                        # (1, N_TOK) row selector
    h = _mm(sel, hidden)                                     # (1, HIDDEN) row gather as matmul
    bow_logits = _mm_t(h, bow_w)                             # (1, VOCAB)
    kcol = jax.lax.broadcasted_iota(jnp.int32, (KEY_PAD, VOCAB), 1)
    bow_sum, bow_cnt = _ce_sum_count(bow_logits, key, kcol)
    bow_loss = bow_sum * pl.reciprocal(bow_cnt, approx=True)

    loss_ref[...] = BOW_WT * bow_loss + lm_loss


# ---------------- wrapper: one pallas_call, 4 input DMAs, (1,1) output ----------------
def model_forward(params, input_ids, labels, key_ids):
    b, s = input_ids.shape
    n = b * s
    # Tiny host-side int prep (a few dozen int32s); all math/weight handling is in-kernel.
    ids_col = input_ids.reshape(n, 1).astype(jnp.int32)
    shift_tgt = jnp.concatenate(
        [labels[:, 1:], jnp.full((b, 1), -100, labels.dtype)], axis=1
    ).reshape(n, 1).astype(jnp.int32)                        # shifted LM targets
    key_col = key_ids[0].reshape(-1, 1).astype(jnp.int32)
    key_col = jnp.pad(key_col, ((0, KEY_PAD - key_col.shape[0]), (0, 0)),
                      constant_values=-100)                  # padded rows are ignored by CE
    ints = jnp.concatenate([ids_col, shift_tgt, key_col], axis=0)   # (2n+KEY_PAD, 1)

    loss = pl.pallas_call(
        _fused_forward_kernel,
        out_shape=jax.ShapeDtypeStruct((1, 1), jnp.float32),
        in_specs=[_VMEM] * 4,
        out_specs=_VMEM,
    )(ints, params["emb"], params["mats"], params["vecs"])
    return {"loss": loss[0, 0]}


# ---------------- deterministic parameter init + packing into 3 slabs ----------------
def _pad_cols(w):
    return jnp.pad(w, ((0, 0), (0, PAD_W - w.shape[1])))


def _pad_row(v):
    return jnp.pad(v, (0, PAD_W - v.shape[0]))


def init_params(key):
    keys = jax.random.split(key, 3 + LAYERS)

    def nrm(k, shape, std=0.02):
        return (std * jax.random.normal(k, shape)).astype(jnp.float32)

    wte = nrm(keys[0], (VOCAB, HIDDEN))
    wpe = nrm(keys[1], (SEQ, HIDDEN))
    bow_w = nrm(keys[2], (VOCAB, HIDDEN))   # torch.nn.Linear(hidden, vocab, bias=False)

    layer_mats, layer_vecs = [], []
    for l in range(LAYERS):
        bk = jax.random.split(keys[3 + l], 4)
        attn_w = nrm(bk[0], (HIDDEN, 3 * HIDDEN))
        proj_w = nrm(bk[1], (HIDDEN, HIDDEN))
        fc_w = nrm(bk[2], (HIDDEN, 4 * HIDDEN))
        mlp_w = nrm(bk[3], (4 * HIDDEN, HIDDEN))
        layer_mats.append(jnp.concatenate(
            [_pad_cols(attn_w), _pad_cols(proj_w), _pad_cols(fc_w), _pad_cols(mlp_w)],
            axis=0))                                          # (MAT_ROWS, 128)
        rows = [
            jnp.ones((HIDDEN,), jnp.float32), jnp.zeros((HIDDEN,), jnp.float32),   # ln1 g, b
            jnp.ones((HIDDEN,), jnp.float32), jnp.zeros((HIDDEN,), jnp.float32),   # ln2 g, b
            jnp.zeros((3 * HIDDEN,), jnp.float32),                                 # attn_b
            jnp.zeros((HIDDEN,), jnp.float32),                                     # proj_b
            jnp.zeros((4 * HIDDEN,), jnp.float32),                                 # fc_b
            jnp.zeros((HIDDEN,), jnp.float32),                                     # mlp_b
        ]
        layer_vecs.append(jnp.stack([_pad_row(r) for r in rows], axis=0))           # (8, 128)

    lnf_rows = [jnp.ones((HIDDEN,), jnp.float32), jnp.zeros((HIDDEN,), jnp.float32)]
    lnf_rows += [jnp.zeros((HIDDEN,), jnp.float32)] * 6
    lnf_slab = jnp.stack([_pad_row(r) for r in lnf_rows], axis=0)                    # (8, 128)

    emb = jnp.concatenate([wte, wpe, jnp.zeros((SEQ, HIDDEN), jnp.float32), bow_w],
                          axis=0)                                                    # (144, 32)

    return {
        "emb": emb.astype(jnp.bfloat16),                       # (EMB_ROWS, HIDDEN) bf16
        "mats": jnp.stack(layer_mats).astype(jnp.bfloat16),    # (LAYERS, MAT_ROWS, 128) bf16
        "vecs": jnp.stack(layer_vecs + [lnf_slab]),            # (LAYERS+1, 8, 128) f32
    }


if __name__ == "__main__":
    key = jax.random.PRNGKey(0)
    pkey, ikey, kkey = jax.random.split(key, 3)
    params = init_params(pkey)

    # deterministic inputs
    input_ids = jax.random.randint(ikey, (BATCH, SEQ), 0, VOCAB, dtype=jnp.int32)
    input_ids = input_ids.at[0, 3].set(REP_TOKEN_ID)          # guarantee a <rep> token
    labels = input_ids.at[:, 0].set(-100)                     # some ignored label positions
    key_ids = jax.random.randint(kkey, (1, KEY_LEN), 0, VOCAB, dtype=jnp.int32)
    key_ids = key_ids.at[0, 3].set(-100)                      # exercise ignore_index

    out = jax.jit(model_forward)(params, input_ids, labels, key_ids)
    jax.block_until_ready(out["loss"])
    assert jnp.isfinite(out["loss"])
    print("KERNEL_OK")
</pallas_src>

<mosaic_0001>
module attributes {stable_mosaic.version = 11 : i64} {
  func.func @_fused_forward_kernel(%arg0: memref<40x1xi32, #tpu.memory_space<vmem>>, %arg1: memref<144x32xbf16, #tpu.memory_space<vmem>>, %arg2: memref<2x224x128xbf16, #tpu.memory_space<vmem>>, %arg3: memref<3x8x128xf32, #tpu.memory_space<vmem>>, %arg4: memref<1x1xf32, #tpu.memory_space<vmem>>) attributes {dimension_semantics = [], scalar_prefetch = 0 : i64, scratch_operands = 0 : i64, tpu.core_type = #tpu.core_type<tc>} {
    %c0 = arith.constant 0 : index
    %c0_0 = arith.constant 0 : index
    %0 = vector.load %arg0[%c0, %c0_0] : memref<40x1xi32, #tpu.memory_space<vmem>>, vector<16x1xi32>
    %c16 = arith.constant 16 : index
    %c0_1 = arith.constant 0 : index
    %1 = vector.load %arg0[%c16, %c0_1] : memref<40x1xi32, #tpu.memory_space<vmem>>, vector<16x1xi32>
    %c32 = arith.constant 32 : index
    %c0_2 = arith.constant 0 : index
    %2 = vector.load %arg0[%c32, %c0_2] : memref<40x1xi32, #tpu.memory_space<vmem>>, vector<8x1xi32>
    %c0_3 = arith.constant 0 : index
    %c0_4 = arith.constant 0 : index
    %3 = vector.load %arg1[%c0_3, %c0_4] : memref<144x32xbf16, #tpu.memory_space<vmem>>, vector<64x32xbf16>
    %c64 = arith.constant 64 : index
    %c0_5 = arith.constant 0 : index
    %4 = vector.load %arg1[%c64, %c0_5] : memref<144x32xbf16, #tpu.memory_space<vmem>>, vector<8x32xbf16>
    %c80 = arith.constant 80 : index
    %c0_6 = arith.constant 0 : index
    %5 = vector.load %arg1[%c80, %c0_6] : memref<144x32xbf16, #tpu.memory_space<vmem>>, vector<64x32xbf16>
    %6 = tpu.iota {dimensions = array<i32: 1>} : vector<16x64xi32>
    %7 = vector.broadcast %0 : vector<16x1xi32> to vector<16x64xi32>
    %8 = arith.cmpi eq, %6, %7 : vector<16x64xi32>
    %9 = arith.extui %8 : vector<16x64xi1> to vector<16x64xi32>
    %10 = arith.sitofp %9 : vector<16x64xi32> to vector<16x64xf32>
    %11 = arith.truncf %10 : vector<16x64xf32> to vector<16x64xbf16>
    %12 = tpu.concatenate %4, %4 in 0 : vector<8x32xbf16>, vector<8x32xbf16> -> vector<16x32xbf16>
    %cst = arith.constant dense<0.000000e+00> : vector<16x32xf32>
    %13 = tpu.matmul %11, %3, %cst {dimension_numbers = #tpu.dot_dimension_numbers<[1], [0], [0], [1], [0, 0, 1, 1], [], []>} : vector<16x64xbf16>, vector<64x32xbf16>, vector<16x32xf32> -> vector<16x32xf32>
    %14 = arith.extf %12 : vector<16x32xbf16> to vector<16x32xf32>
    %15 = arith.addf %13, %14 : vector<16x32xf32>
    %16 = tpu.iota {dimensions = array<i32: 0>} : vector<8x8xi32>
    %17 = tpu.iota {dimensions = array<i32: 1>} : vector<8x8xi32>
    %18 = arith.cmpi sle, %17, %16 : vector<8x8xi32>
    %c0_7 = arith.constant 0 : index
    %c0_8 = arith.constant 0 : index
    %c0_9 = arith.constant 0 : index
    %19 = vector.load %arg3[%c0_7, %c0_8, %c0_9] : memref<3x8x128xf32, #tpu.memory_space<vmem>>, vector<1x1x32xf32>
    %20 = vector.shape_cast %19 : vector<1x1x32xf32> to vector<1x32xf32>
    %c0_10 = arith.constant 0 : index
    %c1 = arith.constant 1 : index
    %c0_11 = arith.constant 0 : index
    %21 = vector.load %arg3[%c0_10, %c1, %c0_11] : memref<3x8x128xf32, #tpu.memory_space<vmem>>, vector<1x1x32xf32>
    %22 = vector.shape_cast %21 : vector<1x1x32xf32> to vector<1x32xf32>
    %c0_12 = arith.constant 0 : index
    %c2 = arith.constant 2 : index
    %c0_13 = arith.constant 0 : index
    %23 = vector.load %arg3[%c0_12, %c2, %c0_13] : memref<3x8x128xf32, #tpu.memory_space<vmem>>, vector<1x1x32xf32>
    %24 = vector.shape_cast %23 : vector<1x1x32xf32> to vector<1x32xf32>
    %c0_14 = arith.constant 0 : index
    %c3 = arith.constant 3 : index
    %c0_15 = arith.constant 0 : index
    %25 = vector.load %arg3[%c0_14, %c3, %c0_15] : memref<3x8x128xf32, #tpu.memory_space<vmem>>, vector<1x1x32xf32>
    %26 = vector.shape_cast %25 : vector<1x1x32xf32> to vector<1x32xf32>
    %c0_16 = arith.constant 0 : index
    %c4 = arith.constant 4 : index
    %c0_17 = arith.constant 0 : index
    %27 = vector.load %arg3[%c0_16, %c4, %c0_17] : memref<3x8x128xf32, #tpu.memory_space<vmem>>, vector<1x1x96xf32>
    %28 = vector.shape_cast %27 : vector<1x1x96xf32> to vector<1x96xf32>
    %c0_18 = arith.constant 0 : index
    %c5 = arith.constant 5 : index
    %c0_19 = arith.constant 0 : index
    %29 = vector.load %arg3[%c0_18, %c5, %c0_19] : memref<3x8x128xf32, #tpu.memory_space<vmem>>, vector<1x1x32xf32>
    %30 = vector.shape_cast %29 : vector<1x1x32xf32> to vector<1x32xf32>
    %c0_20 = arith.constant 0 : index
    %c6 = arith.constant 6 : index
    %c0_21 = arith.constant 0 : index
    %31 = vector.load %arg3[%c0_20, %c6, %c0_21] : memref<3x8x128xf32, #tpu.memory_space<vmem>>, vector<1x1x128xf32>
    %32 = vector.shape_cast %31 : vector<1x1x128xf32> to vector<1x128xf32>
    %c0_22 = arith.constant 0 : index
    %c7 = arith.constant 7 : index
    %c0_23 = arith.constant 0 : index
    %33 = vector.load %arg3[%c0_22, %c7, %c0_23] : memref<3x8x128xf32, #tpu.memory_space<vmem>>, vector<1x1x32xf32>
    %34 = vector.shape_cast %33 : vector<1x1x32xf32> to vector<1x32xf32>
    %c0_24 = arith.constant 0 : index
    %c0_25 = arith.constant 0 : index
    %c0_26 = arith.constant 0 : index
    %35 = vector.load %arg2[%c0_24, %c0_25, %c0_26] : memref<2x224x128xbf16, #tpu.memory_space<vmem>>, vector<1x32x96xbf16>
    %36 = vector.shape_cast %35 : vector<1x32x96xbf16> to vector<32x96xbf16>
    %c0_27 = arith.constant 0 : index
    %c32_28 = arith.constant 32 : index
    %c0_29 = arith.constant 0 : index
    %37 = vector.load %arg2[%c0_27, %c32_28, %c0_29] : memref<2x224x128xbf16, #tpu.memory_space<vmem>>, vector<1x32x32xbf16>
    %38 = vector.shape_cast %37 : vector<1x32x32xbf16> to vector<32x32xbf16>
    %c0_30 = arith.constant 0 : index
    %c64_31 = arith.constant 64 : index
    %c0_32 = arith.constant 0 : index
    %39 = vector.load %arg2[%c0_30, %c64_31, %c0_32] : memref<2x224x128xbf16, #tpu.memory_space<vmem>>, vector<1x32x128xbf16>
    %40 = vector.shape_cast %39 : vector<1x32x128xbf16> to vector<32x128xbf16>
    %c0_33 = arith.constant 0 : index
    %c96 = arith.constant 96 : index
    %c0_34 = arith.constant 0 : index
    %41 = vector.load %arg2[%c0_33, %c96, %c0_34] : memref<2x224x128xbf16, #tpu.memory_space<vmem>>, vector<1x128x32xbf16>
    %42 = vector.shape_cast %41 : vector<1x128x32xbf16> to vector<128x32xbf16>
    %cst_35 = arith.constant dense<0.000000e+00> : vector<16xf32>
    %43 = vector.multi_reduction <add>, %15, %cst_35 [1] : vector<16x32xf32> to vector<16xf32>
    %44 = vector.shape_cast %43 : vector<16xf32> to vector<16x1xf32>
    %cst_36 = arith.constant 3.200000e+01 : f32
    %45 = vector.broadcast %cst_36 : f32 to vector<16x1xf32>
    %46 = arith.divf %44, %45 : vector<16x1xf32>
    %47 = vector.broadcast %46 : vector<16x1xf32> to vector<16x32xf32>
    %48 = arith.subf %15, %47 : vector<16x32xf32>
    %49 = arith.mulf %48, %48 : vector<16x32xf32>
    %cst_37 = arith.constant dense<0.000000e+00> : vector<16xf32>
    %50 = vector.multi_reduction <add>, %49, %cst_37 [1] : vector<16x32xf32> to vector<16xf32>
    %51 = vector.shape_cast %50 : vector<16xf32> to vector<16x1xf32>
    %cst_38 = arith.constant 3.200000e+01 : f32
    %52 = vector.broadcast %cst_38 : f32 to vector<16x1xf32>
    %53 = arith.divf %51, %52 : vector<16x1xf32>
    %54 = vector.broadcast %46 : vector<16x1xf32> to vector<16x32xf32>
    %55 = arith.subf %15, %54 : vector<16x32xf32>
    %cst_39 = arith.constant 9.99999974E-6 : f32
    %56 = vector.broadcast %cst_39 : f32 to vector<16x1xf32>
    %57 = arith.addf %53, %56 : vector<16x1xf32>
    %58 = math.rsqrt %57 : vector<16x1xf32>
    %59 = vector.broadcast %58 : vector<16x1xf32> to vector<16x32xf32>
    %60 = arith.mulf %55, %59 : vector<16x32xf32>
    %61 = vector.broadcast %20 : vector<1x32xf32> to vector<16x32xf32>
    %62 = arith.mulf %60, %61 : vector<16x32xf32>
    %63 = vector.broadcast %22 : vector<1x32xf32> to vector<16x32xf32>
    %64 = arith.addf %62, %63 : vector<16x32xf32>
    %65 = arith.truncf %64 : vector<16x32xf32> to vector<16x32xbf16>
    %cst_40 = arith.constant dense<0.000000e+00> : vector<16x96xf32>
    %66 = tpu.matmul %65, %36, %cst_40 {dimension_numbers = #tpu.dot_dimension_numbers<[1], [0], [0], [1], [0, 0, 1, 1], [], []>} : vector<16x32xbf16>, vector<32x96xbf16>, vector<16x96xf32> -> vector<16x96xf32>
    %67 = vector.broadcast %28 : vector<1x96xf32> to vector<16x96xf32>
    %68 = arith.addf %66, %67 : vector<16x96xf32>
    %69 = vector.extract_strided_slice %68 {offsets = [0, 0], sizes = [8, 8], strides = [1, 1]} : vector<16x96xf32> to vector<8x8xf32>
    %70 = vector.extract_strided_slice %68 {offsets = [0, 32], sizes = [8, 8], strides = [1, 1]} : vector<16x96xf32> to vector<8x8xf32>
    %71 = vector.extract_strided_slice %68 {offsets = [0, 64], sizes = [8, 8], strides = [1, 1]} : vector<16x96xf32> to vector<8x8xf32>
    %72 = arith.truncf %69 : vector<8x8xf32> to vector<8x8xbf16>
    %73 = arith.truncf %70 : vector<8x8xf32> to vector<8x8xbf16>
    %cst_41 = arith.constant dense<0.000000e+00> : vector<8x8xf32>
    %74 = tpu.matmul %72, %73, %cst_41 {dimension_numbers = #tpu.dot_dimension_numbers<[1], [1], [0], [0], [0, 0, 1, 0], [], []>} : vector<8x8xbf16>, vector<8x8xbf16>, vector<8x8xf32> -> vector<8x8xf32>
    %cst_42 = arith.constant 0.353553385 : f32
    %75 = vector.broadcast %cst_42 : f32 to vector<8x8xf32>
    %76 = arith.mulf %74, %75 : vector<8x8xf32>
    %cst_43 = arith.constant -1.000000e+30 : f32
    %77 = vector.broadcast %cst_43 : f32 to vector<8x8xf32>
    %78 = arith.select %18, %76, %77 : vector<8x8xi1>, vector<8x8xf32>
    %cst_44 = arith.constant dense<0xFF800000> : vector<8xf32>
    %79 = vector.multi_reduction <maximumf>, %78, %cst_44 [1] : vector<8x8xf32> to vector<8xf32>
    %80 = vector.shape_cast %79 : vector<8xf32> to vector<8x1xf32>
    %81 = vector.broadcast %80 : vector<8x1xf32> to vector<8x8xf32>
    %82 = arith.subf %78, %81 : vector<8x8xf32>
    %83 = math.exp %82 : vector<8x8xf32>
    %cst_45 = arith.constant dense<0.000000e+00> : vector<8xf32>
    %84 = vector.multi_reduction <add>, %83, %cst_45 [1] : vector<8x8xf32> to vector<8xf32>
    %85 = vector.shape_cast %84 : vector<8xf32> to vector<8x1xf32>
    %86 = tpu.reciprocal %85 {approx = true} : vector<8x1xf32> -> vector<8x1xf32>
    %87 = vector.broadcast %86 : vector<8x1xf32> to vector<8x8xf32>
    %88 = arith.mulf %83, %87 : vector<8x8xf32>
    %89 = arith.truncf %88 : vector<8x8xf32> to vector<8x8xbf16>
    %90 = arith.truncf %71 : vector<8x8xf32> to vector<8x8xbf16>
    %cst_46 = arith.constant dense<0.000000e+00> : vector<8x8xf32>
    %91 = tpu.matmul %89, %90, %cst_46 {dimension_numbers = #tpu.dot_dimension_numbers<[1], [0], [0], [1], [0, 0, 1, 1], [], []>} : vector<8x8xbf16>, vector<8x8xbf16>, vector<8x8xf32> -> vector<8x8xf32>
    %92 = vector.extract_strided_slice %68 {offsets = [0, 8], sizes = [8, 8], strides = [1, 1]} : vector<16x96xf32> to vector<8x8xf32>
    %93 = vector.extract_strided_slice %68 {offsets = [0, 40], sizes = [8, 8], strides = [1, 1]} : vector<16x96xf32> to vector<8x8xf32>
    %94 = vector.extract_strided_slice %68 {offsets = [0, 72], sizes = [8, 8], strides = [1, 1]} : vector<16x96xf32> to vector<8x8xf32>
    %95 = arith.truncf %92 : vector<8x8xf32> to vector<8x8xbf16>
    %96 = arith.truncf %93 : vector<8x8xf32> to vector<8x8xbf16>
    %cst_47 = arith.constant dense<0.000000e+00> : vector<8x8xf32>
    %97 = tpu.matmul %95, %96, %cst_47 {dimension_numbers = #tpu.dot_dimension_numbers<[1], [1], [0], [0], [0, 0, 1, 0], [], []>} : vector<8x8xbf16>, vector<8x8xbf16>, vector<8x8xf32> -> vector<8x8xf32>
    %cst_48 = arith.constant 0.353553385 : f32
    %98 = vector.broadcast %cst_48 : f32 to vector<8x8xf32>
    %99 = arith.mulf %97, %98 : vector<8x8xf32>
    %cst_49 = arith.constant -1.000000e+30 : f32
    %100 = vector.broadcast %cst_49 : f32 to vector<8x8xf32>
    %101 = arith.select %18, %99, %100 : vector<8x8xi1>, vector<8x8xf32>
    %cst_50 = arith.constant dense<0xFF800000> : vector<8xf32>
    %102 = vector.multi_reduction <maximumf>, %101, %cst_50 [1] : vector<8x8xf32> to vector<8xf32>
    %103 = vector.shape_cast %102 : vector<8xf32> to vector<8x1xf32>
    %104 = vector.broadcast %103 : vector<8x1xf32> to vector<8x8xf32>
    %105 = arith.subf %101, %104 : vector<8x8xf32>
    %106 = math.exp %105 : vector<8x8xf32>
    %cst_51 = arith.constant dense<0.000000e+00> : vector<8xf32>
    %107 = vector.multi_reduction <add>, %106, %cst_51 [1] : vector<8x8xf32> to vector<8xf32>
    %108 = vector.shape_cast %107 : vector<8xf32> to vector<8x1xf32>
    %109 = tpu.reciprocal %108 {approx = true} : vector<8x1xf32> -> vector<8x1xf32>
    %110 = vector.broadcast %109 : vector<8x1xf32> to vector<8x8xf32>
    %111 = arith.mulf %106, %110 : vector<8x8xf32>
    %112 = arith.truncf %111 : vector<8x8xf32> to vector<8x8xbf16>
    %113 = arith.truncf %94 : vector<8x8xf32> to vector<8x8xbf16>
    %cst_52 = arith.constant dense<0.000000e+00> : vector<8x8xf32>
    %114 = tpu.matmul %112, %113, %cst_52 {dimension_numbers = #tpu.dot_dimension_numbers<[1], [0], [0], [1], [0, 0, 1, 1], [], []>} : vector<8x8xbf16>, vector<8x8xbf16>, vector<8x8xf32> -> vector<8x8xf32>
    %115 = vector.extract_strided_slice %68 {offsets = [0, 16], sizes = [8, 8], strides = [1, 1]} : vector<16x96xf32> to vector<8x8xf32>
    %116 = vector.extract_strided_slice %68 {offsets = [0, 48], sizes = [8, 8], strides = [1, 1]} : vector<16x96xf32> to vector<8x8xf32>
    %117 = vector.extract_strided_slice %68 {offsets = [0, 80], sizes = [8, 8], strides = [1, 1]} : vector<16x96xf32> to vector<8x8xf32>
    %118 = arith.truncf %115 : vector<8x8xf32> to vector<8x8xbf16>
    %119 = arith.truncf %116 : vector<8x8xf32> to vector<8x8xbf16>
    %cst_53 = arith.constant dense<0.000000e+00> : vector<8x8xf32>
    %120 = tpu.matmul %118, %119, %cst_53 {dimension_numbers = #tpu.dot_dimension_numbers<[1], [1], [0], [0], [0, 0, 1, 0], [], []>} : vector<8x8xbf16>, vector<8x8xbf16>, vector<8x8xf32> -> vector<8x8xf32>
    %cst_54 = arith.constant 0.353553385 : f32
    %121 = vector.broadcast %cst_54 : f32 to vector<8x8xf32>
    %122 = arith.mulf %120, %121 : vector<8x8xf32>
    %cst_55 = arith.constant -1.000000e+30 : f32
    %123 = vector.broadcast %cst_55 : f32 to vector<8x8xf32>
    %124 = arith.select %18, %122, %123 : vector<8x8xi1>, vector<8x8xf32>
    %cst_56 = arith.constant dense<0xFF800000> : vector<8xf32>
    %125 = vector.multi_reduction <maximumf>, %124, %cst_56 [1] : vector<8x8xf32> to vector<8xf32>
    %126 = vector.shape_cast %125 : vector<8xf32> to vector<8x1xf32>
    %127 = vector.broadcast %126 : vector<8x1xf32> to vector<8x8xf32>
    %128 = arith.subf %124, %127 : vector<8x8xf32>
    %129 = math.exp %128 : vector<8x8xf32>
    %cst_57 = arith.constant dense<0.000000e+00> : vector<8xf32>
    %130 = vector.multi_reduction <add>, %129, %cst_57 [1] : vector<8x8xf32> to vector<8xf32>
    %131 = vector.shape_cast %130 : vector<8xf32> to vector<8x1xf32>
    %132 = tpu.reciprocal %131 {approx = true} : vector<8x1xf32> -> vector<8x1xf32>
    %133 = vector.broadcast %132 : vector<8x1xf32> to vector<8x8xf32>
    %134 = arith.mulf %129, %133 : vector<8x8xf32>
    %135 = arith.truncf %134 : vector<8x8xf32> to vector<8x8xbf16>
    %136 = arith.truncf %117 : vector<8x8xf32> to vector<8x8xbf16>
    %cst_58 = arith.constant dense<0.000000e+00> : vector<8x8xf32>
    %137 = tpu.matmul %135, %136, %cst_58 {dimension_numbers = #tpu.dot_dimension_numbers<[1], [0], [0], [1], [0, 0, 1, 1], [], []>} : vector<8x8xbf16>, vector<8x8xbf16>, vector<8x8xf32> -> vector<8x8xf32>
    %138 = vector.extract_strided_slice %68 {offsets = [0, 24], sizes = [8, 8], strides = [1, 1]} : vector<16x96xf32> to vector<8x8xf32>
    %139 = vector.extract_strided_slice %68 {offsets = [0, 56], sizes = [8, 8], strides = [1, 1]} : vector<16x96xf32> to vector<8x8xf32>
    %140 = vector.extract_strided_slice %68 {offsets = [0, 88], sizes = [8, 8], strides = [1, 1]} : vector<16x96xf32> to vector<8x8xf32>
    %141 = arith.truncf %138 : vector<8x8xf32> to vector<8x8xbf16>
    %142 = arith.truncf %139 : vector<8x8xf32> to vector<8x8xbf16>
    %cst_59 = arith.constant dense<0.000000e+00> : vector<8x8xf32>
    %143 = tpu.matmul %141, %142, %cst_59 {dimension_numbers = #tpu.dot_dimension_numbers<[1], [1], [0], [0], [0, 0, 1, 0], [], []>} : vector<8x8xbf16>, vector<8x8xbf16>, vector<8x8xf32> -> vector<8x8xf32>
    %cst_60 = arith.constant 0.353553385 : f32
    %144 = vector.broadcast %cst_60 : f32 to vector<8x8xf32>
    %145 = arith.mulf %143, %144 : vector<8x8xf32>
    %cst_61 = arith.constant -1.000000e+30 : f32
    %146 = vector.broadcast %cst_61 : f32 to vector<8x8xf32>
    %147 = arith.select %18, %145, %146 : vector<8x8xi1>, vector<8x8xf32>
    %cst_62 = arith.constant dense<0xFF800000> : vector<8xf32>
    %148 = vector.multi_reduction <maximumf>, %147, %cst_62 [1] : vector<8x8xf32> to vector<8xf32>
    %149 = vector.shape_cast %148 : vector<8xf32> to vector<8x1xf32>
    %150 = vector.broadcast %149 : vector<8x1xf32> to vector<8x8xf32>
    %151 = arith.subf %147, %150 : vector<8x8xf32>
    %152 = math.exp %151 : vector<8x8xf32>
    %cst_63 = arith.constant dense<0.000000e+00> : vector<8xf32>
    %153 = vector.multi_reduction <add>, %152, %cst_63 [1] : vector<8x8xf32> to vector<8xf32>
    %154 = vector.shape_cast %153 : vector<8xf32> to vector<8x1xf32>
    %155 = tpu.reciprocal %154 {approx = true} : vector<8x1xf32> -> vector<8x1xf32>
    %156 = vector.broadcast %155 : vector<8x1xf32> to vector<8x8xf32>
    %157 = arith.mulf %152, %156 : vector<8x8xf32>
    %158 = arith.truncf %157 : vector<8x8xf32> to vector<8x8xbf16>
    %159 = arith.truncf %140 : vector<8x8xf32> to vector<8x8xbf16>
    %cst_64 = arith.constant dense<0.000000e+00> : vector<8x8xf32>
    %160 = tpu.matmul %158, %159, %cst_64 {dimension_numbers = #tpu.dot_dimension_numbers<[1], [0], [0], [1], [0, 0, 1, 1], [], []>} : vector<8x8xbf16>, vector<8x8xbf16>, vector<8x8xf32> -> vector<8x8xf32>
    %161 = tpu.concatenate %91, %114, %137, %160 in 1 : vector<8x8xf32>, vector<8x8xf32>, vector<8x8xf32>, vector<8x8xf32> -> vector<8x32xf32>
    %162 = vector.extract_strided_slice %68 {offsets = [8, 0], sizes = [8, 8], strides = [1, 1]} : vector<16x96xf32> to vector<8x8xf32>
    %163 = vector.extract_strided_slice %68 {offsets = [8, 32], sizes = [8, 8], strides = [1, 1]} : vector<16x96xf32> to vector<8x8xf32>
    %164 = vector.extract_strided_slice %68 {offsets = [8, 64], sizes = [8, 8], strides = [1, 1]} : vector<16x96xf32> to vector<8x8xf32>
    %165 = arith.truncf %162 : vector<8x8xf32> to vector<8x8xbf16>
    %166 = arith.truncf %163 : vector<8x8xf32> to vector<8x8xbf16>
    %cst_65 = arith.constant dense<0.000000e+00> : vector<8x8xf32>
    %167 = tpu.matmul %165, %166, %cst_65 {dimension_numbers = #tpu.dot_dimension_numbers<[1], [1], [0], [0], [0, 0, 1, 0], [], []>} : vector<8x8xbf16>, vector<8x8xbf16>, vector<8x8xf32> -> vector<8x8xf32>
    %cst_66 = arith.constant 0.353553385 : f32
    %168 = vector.broadcast %cst_66 : f32 to vector<8x8xf32>
    %169 = arith.mulf %167, %168 : vector<8x8xf32>
    %cst_67 = arith.constant -1.000000e+30 : f32
    %170 = vector.broadcast %cst_67 : f32 to vector<8x8xf32>
    %171 = arith.select %18, %169, %170 : vector<8x8xi1>, vector<8x8xf32>
    %cst_68 = arith.constant dense<0xFF800000> : vector<8xf32>
    %172 = vector.multi_reduction <maximumf>, %171, %cst_68 [1] : vector<8x8xf32> to vector<8xf32>
    %173 = vector.shape_cast %172 : vector<8xf32> to vector<8x1xf32>
    %174 = vector.broadcast %173 : vector<8x1xf32> to vector<8x8xf32>
    %175 = arith.subf %171, %174 : vector<8x8xf32>
    %176 = math.exp %175 : vector<8x8xf32>
    %cst_69 = arith.constant dense<0.000000e+00> : vector<8xf32>
    %177 = vector.multi_reduction <add>, %176, %cst_69 [1] : vector<8x8xf32> to vector<8xf32>
    %178 = vector.shape_cast %177 : vector<8xf32> to vector<8x1xf32>
    %179 = tpu.reciprocal %178 {approx = true} : vector<8x1xf32> -> vector<8x1xf32>
    %180 = vector.broadcast %179 : vector<8x1xf32> to vector<8x8xf32>
    %181 = arith.mulf %176, %180 : vector<8x8xf32>
    %182 = arith.truncf %181 : vector<8x8xf32> to vector<8x8xbf16>
    %183 = arith.truncf %164 : vector<8x8xf32> to vector<8x8xbf16>
    %cst_70 = arith.constant dense<0.000000e+00> : vector<8x8xf32>
    %184 = tpu.matmul %182, %183, %cst_70 {dimension_numbers = #tpu.dot_dimension_numbers<[1], [0], [0], [1], [0, 0, 1, 1], [], []>} : vector<8x8xbf16>, vector<8x8xbf16>, vector<8x8xf32> -> vector<8x8xf32>
    %185 = vector.extract_strided_slice %68 {offsets = [8, 8], sizes = [8, 8], strides = [1, 1]} : vector<16x96xf32> to vector<8x8xf32>
    %186 = vector.extract_strided_slice %68 {offsets = [8, 40], sizes = [8, 8], strides = [1, 1]} : vector<16x96xf32> to vector<8x8xf32>
    %187 = vector.extract_strided_slice %68 {offsets = [8, 72], sizes = [8, 8], strides = [1, 1]} : vector<16x96xf32> to vector<8x8xf32>
    %188 = arith.truncf %185 : vector<8x8xf32> to vector<8x8xbf16>
    %189 = arith.truncf %186 : vector<8x8xf32> to vector<8x8xbf16>
    %cst_71 = arith.constant dense<0.000000e+00> : vector<8x8xf32>
    %190 = tpu.matmul %188, %189, %cst_71 {dimension_numbers = #tpu.dot_dimension_numbers<[1], [1], [0], [0], [0, 0, 1, 0], [], []>} : vector<8x8xbf16>, vector<8x8xbf16>, vector<8x8xf32> -> vector<8x8xf32>
    %cst_72 = arith.constant 0.353553385 : f32
    %191 = vector.broadcast %cst_72 : f32 to vector<8x8xf32>
    %192 = arith.mulf %190, %191 : vector<8x8xf32>
    %cst_73 = arith.constant -1.000000e+30 : f32
    %193 = vector.broadcast %cst_73 : f32 to vector<8x8xf32>
    %194 = arith.select %18, %192, %193 : vector<8x8xi1>, vector<8x8xf32>
    %cst_74 = arith.constant dense<0xFF800000> : vector<8xf32>
    %195 = vector.multi_reduction <maximumf>, %194, %cst_74 [1] : vector<8x8xf32> to vector<8xf32>
    %196 = vector.shape_cast %195 : vector<8xf32> to vector<8x1xf32>
    %197 = vector.broadcast %196 : vector<8x1xf32> to vector<8x8xf32>
    %198 = arith.subf %194, %197 : vector<8x8xf32>
    %199 = math.exp %198 : vector<8x8xf32>
    %cst_75 = arith.constant dense<0.000000e+00> : vector<8xf32>
    %200 = vector.multi_reduction <add>, %199, %cst_75 [1] : vector<8x8xf32> to vector<8xf32>
    %201 = vector.shape_cast %200 : vector<8xf32> to vector<8x1xf32>
    %202 = tpu.reciprocal %201 {approx = true} : vector<8x1xf32> -> vector<8x1xf32>
    %203 = vector.broadcast %202 : vector<8x1xf32> to vector<8x8xf32>
    %204 = arith.mulf %199, %203 : vector<8x8xf32>
    %205 = arith.truncf %204 : vector<8x8xf32> to vector<8x8xbf16>
    %206 = arith.truncf %187 : vector<8x8xf32> to vector<8x8xbf16>
    %cst_76 = arith.constant dense<0.000000e+00> : vector<8x8xf32>
    %207 = tpu.matmul %205, %206, %cst_76 {dimension_numbers = #tpu.dot_dimension_numbers<[1], [0], [0], [1], [0, 0, 1, 1], [], []>} : vector<8x8xbf16>, vector<8x8xbf16>, vector<8x8xf32> -> vector<8x8xf32>
    %208 = vector.extract_strided_slice %68 {offsets = [8, 16], sizes = [8, 8], strides = [1, 1]} : vector<16x96xf32> to vector<8x8xf32>
    %209 = vector.extract_strided_slice %68 {offsets = [8, 48], sizes = [8, 8], strides = [1, 1]} : vector<16x96xf32> to vector<8x8xf32>
    %210 = vector.extract_strided_slice %68 {offsets = [8, 80], sizes = [8, 8], strides = [1, 1]} : vector<16x96xf32> to vector<8x8xf32>
    %211 = arith.truncf %208 : vector<8x8xf32> to vector<8x8xbf16>
    %212 = arith.truncf %209 : vector<8x8xf32> to vector<8x8xbf16>
    %cst_77 = arith.constant dense<0.000000e+00> : vector<8x8xf32>
    %213 = tpu.matmul %211, %212, %cst_77 {dimension_numbers = #tpu.dot_dimension_numbers<[1], [1], [0], [0], [0, 0, 1, 0], [], []>} : vector<8x8xbf16>, vector<8x8xbf16>, vector<8x8xf32> -> vector<8x8xf32>
    %cst_78 = arith.constant 0.353553385 : f32
    %214 = vector.broadcast %cst_78 : f32 to vector<8x8xf32>
    %215 = arith.mulf %213, %214 : vector<8x8xf32>
    %cst_79 = arith.constant -1.000000e+30 : f32
    %216 = vector.broadcast %cst_79 : f32 to vector<8x8xf32>
    %217 = arith.select %18, %215, %216 : vector<8x8xi1>, vector<8x8xf32>
    %cst_80 = arith.constant dense<0xFF800000> : vector<8xf32>
    %218 = vector.multi_reduction <maximumf>, %217, %cst_80 [1] : vector<8x8xf32> to vector<8xf32>
    %219 = vector.shape_cast %218 : vector<8xf32> to vector<8x1xf32>
    %220 = vector.broadcast %219 : vector<8x1xf32> to vector<8x8xf32>
    %221 = arith.subf %217, %220 : vector<8x8xf32>
    %222 = math.exp %221 : vector<8x8xf32>
    %cst_81 = arith.constant dense<0.000000e+00> : vector<8xf32>
    %223 = vector.multi_reduction <add>, %222, %cst_81 [1] : vector<8x8xf32> to vector<8xf32>
    %224 = vector.shape_cast %223 : vector<8xf32> to vector<8x1xf32>
    %225 = tpu.reciprocal %224 {approx = true} : vector<8x1xf32> -> vector<8x1xf32>
    %226 = vector.broadcast %225 : vector<8x1xf32> to vector<8x8xf32>
    %227 = arith.mulf %222, %226 : vector<8x8xf32>
    %228 = arith.truncf %227 : vector<8x8xf32> to vector<8x8xbf16>
    %229 = arith.truncf %210 : vector<8x8xf32> to vector<8x8xbf16>
    %cst_82 = arith.constant dense<0.000000e+00> : vector<8x8xf32>
    %230 = tpu.matmul %228, %229, %cst_82 {dimension_numbers = #tpu.dot_dimension_numbers<[1], [0], [0], [1], [0, 0, 1, 1], [], []>} : vector<8x8xbf16>, vector<8x8xbf16>, vector<8x8xf32> -> vector<8x8xf32>
    %231 = vector.extract_strided_slice %68 {offsets = [8, 24], sizes = [8, 8], strides = [1, 1]} : vector<16x96xf32> to vector<8x8xf32>
    %232 = vector.extract_strided_slice %68 {offsets = [8, 56], sizes = [8, 8], strides = [1, 1]} : vector<16x96xf32> to vector<8x8xf32>
    %233 = vector.extract_strided_slice %68 {offsets = [8, 88], sizes = [8, 8], strides = [1, 1]} : vector<16x96xf32> to vector<8x8xf32>
    %234 = arith.truncf %231 : vector<8x8xf32> to vector<8x8xbf16>
    %235 = arith.truncf %232 : vector<8x8xf32> to vector<8x8xbf16>
    %cst_83 = arith.constant dense<0.000000e+00> : vector<8x8xf32>
    %236 = tpu.matmul %234, %235, %cst_83 {dimension_numbers = #tpu.dot_dimension_numbers<[1], [1], [0], [0], [0, 0, 1, 0], [], []>} : vector<8x8xbf16>, vector<8x8xbf16>, vector<8x8xf32> -> vector<8x8xf32>
    %cst_84 = arith.constant 0.353553385 : f32
    %237 = vector.broadcast %cst_84 : f32 to vector<8x8xf32>
    %238 = arith.mulf %236, %237 : vector<8x8xf32>
    %cst_85 = arith.constant -1.000000e+30 : f32
    %239 = vector.broadcast %cst_85 : f32 to vector<8x8xf32>
    %240 = arith.select %18, %238, %239 : vector<8x8xi1>, vector<8x8xf32>
    %cst_86 = arith.constant dense<0xFF800000> : vector<8xf32>
    %241 = vector.multi_reduction <maximumf>, %240, %cst_86 [1] : vector<8x8xf32> to vector<8xf32>
    %242 = vector.shape_cast %241 : vector<8xf32> to vector<8x1xf32>
    %243 = vector.broadcast %242 : vector<8x1xf32> to vector<8x8xf32>
    %244 = arith.subf %240, %243 : vector<8x8xf32>
    %245 = math.exp %244 : vector<8x8xf32>
    %cst_87 = arith.constant dense<0.000000e+00> : vector<8xf32>
    %246 = vector.multi_reduction <add>, %245, %cst_87 [1] : vector<8x8xf32> to vector<8xf32>
    %247 = vector.shape_cast %246 : vector<8xf32> to vector<8x1xf32>
    %248 = tpu.reciprocal %247 {approx = true} : vector<8x1xf32> -> vector<8x1xf32>
    %249 = vector.broadcast %248 : vector<8x1xf32> to vector<8x8xf32>
    %250 = arith.mulf %245, %249 : vector<8x8xf32>
    %251 = arith.truncf %250 : vector<8x8xf32> to vector<8x8xbf16>
    %252 = arith.truncf %233 : vector<8x8xf32> to vector<8x8xbf16>
    %cst_88 = arith.constant dense<0.000000e+00> : vector<8x8xf32>
    %253 = tpu.matmul %251, %252, %cst_88 {dimension_numbers = #tpu.dot_dimension_numbers<[1], [0], [0], [1], [0, 0, 1, 1], [], []>} : vector<8x8xbf16>, vector<8x8xbf16>, vector<8x8xf32> -> vector<8x8xf32>
    %254 = tpu.concatenate %184, %207, %230, %253 in 1 : vector<8x8xf32>, vector<8x8xf32>, vector<8x8xf32>, vector<8x8xf32> -> vector<8x32xf32>
    %255 = tpu.concatenate %161, %254 in 0 : vector<8x32xf32>, vector<8x32xf32> -> vector<16x32xf32>
    %256 = arith.truncf %255 : vector<16x32xf32> to vector<16x32xbf16>
    %cst_89 = arith.constant dense<0.000000e+00> : vector<16x32xf32>
    %257 = tpu.matmul %256, %38, %cst_89 {dimension_numbers = #tpu.dot_dimension_numbers<[1], [0], [0], [1], [0, 0, 1, 1], [], []>} : vector<16x32xbf16>, vector<32x32xbf16>, vector<16x32xf32> -> vector<16x32xf32>
    %258 = arith.addf %15, %257 : vector<16x32xf32>
    %259 = vector.broadcast %30 : vector<1x32xf32> to vector<16x32xf32>
    %260 = arith.addf %258, %259 : vector<16x32xf32>
    %cst_90 = arith.constant dense<0.000000e+00> : vector<16xf32>
    %261 = vector.multi_reduction <add>, %260, %cst_90 [1] : vector<16x32xf32> to vector<16xf32>
    %262 = vector.shape_cast %261 : vector<16xf32> to vector<16x1xf32>
    %cst_91 = arith.constant 3.200000e+01 : f32
    %263 = vector.broadcast %cst_91 : f32 to vector<16x1xf32>
    %264 = arith.divf %262, %263 : vector<16x1xf32>
    %265 = vector.broadcast %264 : vector<16x1xf32> to vector<16x32xf32>
    %266 = arith.subf %260, %265 : vector<16x32xf32>
    %267 = arith.mulf %266, %266 : vector<16x32xf32>
    %cst_92 = arith.constant dense<0.000000e+00> : vector<16xf32>
    %268 = vector.multi_reduction <add>, %267, %cst_92 [1] : vector<16x32xf32> to vector<16xf32>
    %269 = vector.shape_cast %268 : vector<16xf32> to vector<16x1xf32>
    %cst_93 = arith.constant 3.200000e+01 : f32
    %270 = vector.broadcast %cst_93 : f32 to vector<16x1xf32>
    %271 = arith.divf %269, %270 : vector<16x1xf32>
    %272 = vector.broadcast %264 : vector<16x1xf32> to vector<16x32xf32>
    %273 = arith.subf %260, %272 : vector<16x32xf32>
    %cst_94 = arith.constant 9.99999974E-6 : f32
    %274 = vector.broadcast %cst_94 : f32 to vector<16x1xf32>
    %275 = arith.addf %271, %274 : vector<16x1xf32>
    %276 = math.rsqrt %275 : vector<16x1xf32>
    %277 = vector.broadcast %276 : vector<16x1xf32> to vector<16x32xf32>
    %278 = arith.mulf %273, %277 : vector<16x32xf32>
    %279 = vector.broadcast %24 : vector<1x32xf32> to vector<16x32xf32>
    %280 = arith.mulf %278, %279 : vector<16x32xf32>
    %281 = vector.broadcast %26 : vector<1x32xf32> to vector<16x32xf32>
    %282 = arith.addf %280, %281 : vector<16x32xf32>
    %283 = arith.truncf %282 : vector<16x32xf32> to vector<16x32xbf16>
    %cst_95 = arith.constant dense<0.000000e+00> : vector<16x128xf32>
    %284 = tpu.matmul %283, %40, %cst_95 {dimension_numbers = #tpu.dot_dimension_numbers<[1], [0], [0], [1], [0, 0, 1, 1], [], []>} : vector<16x32xbf16>, vector<32x128xbf16>, vector<16x128xf32> -> vector<16x128xf32>
    %285 = vector.broadcast %32 : vector<1x128xf32> to vector<16x128xf32>
    %286 = arith.addf %284, %285 : vector<16x128xf32>
    %cst_96 = arith.constant 5.000000e-01 : f32
    %287 = vector.broadcast %cst_96 : f32 to vector<16x128xf32>
    %288 = arith.mulf %287, %286 : vector<16x128xf32>
    %cst_97 = arith.constant 4.471500e-02 : f32
    %289 = vector.broadcast %cst_97 : f32 to vector<16x128xf32>
    %290 = arith.mulf %289, %286 : vector<16x128xf32>
    %291 = arith.mulf %290, %286 : vector<16x128xf32>
    %292 = arith.mulf %291, %286 : vector<16x128xf32>
    %293 = arith.addf %286, %292 : vector<16x128xf32>
    %cst_98 = arith.constant 0.797884583 : f32
    %294 = vector.broadcast %cst_98 : f32 to vector<16x128xf32>
    %295 = arith.mulf %294, %293 : vector<16x128xf32>
    %296 = math.tanh %295 : vector<16x128xf32>
    %cst_99 = arith.constant 1.000000e+00 : f32
    %297 = vector.broadcast %cst_99 : f32 to vector<16x128xf32>
    %298 = arith.addf %297, %296 : vector<16x128xf32>
    %299 = arith.mulf %288, %298 : vector<16x128xf32>
    %300 = arith.truncf %299 : vector<16x128xf32> to vector<16x128xbf16>
    %cst_100 = arith.constant dense<0.000000e+00> : vector<16x32xf32>
    %301 = tpu.matmul %300, %42, %cst_100 {dimension_numbers = #tpu.dot_dimension_numbers<[1], [0], [0], [1], [0, 0, 1, 1], [], []>} : vector<16x128xbf16>, vector<128x32xbf16>, vector<16x32xf32> -> vector<16x32xf32>
    %302 = arith.addf %260, %301 : vector<16x32xf32>
    %303 = vector.broadcast %34 : vector<1x32xf32> to vector<16x32xf32>
    %304 = arith.addf %302, %303 : vector<16x32xf32>
    %c1_101 = arith.constant 1 : index
    %c0_102 = arith.constant 0 : index
    %c0_103 = arith.constant 0 : index
    %305 = vector.load %arg3[%c1_101, %c0_102, %c0_103] : memref<3x8x128xf32, #tpu.memory_space<vmem>>, vector<1x1x32xf32>
    %306 = vector.shape_cast %305 : vector<1x1x32xf32> to vector<1x32xf32>
    %c1_104 = arith.constant 1 : index
    %c1_105 = arith.constant 1 : index
    %c0_106 = arith.constant 0 : index
    %307 = vector.load %arg3[%c1_104, %c1_105, %c0_106] : memref<3x8x128xf32, #tpu.memory_space<vmem>>, vector<1x1x32xf32>
    %308 = vector.shape_cast %307 : vector<1x1x32xf32> to vector<1x32xf32>
    %c1_107 = arith.constant 1 : index
    %c2_108 = arith.constant 2 : index
    %c0_109 = arith.constant 0 : index
    %309 = vector.load %arg3[%c1_107, %c2_108, %c0_109] : memref<3x8x128xf32, #tpu.memory_space<vmem>>, vector<1x1x32xf32>
    %310 = vector.shape_cast %309 : vector<1x1x32xf32> to vector<1x32xf32>
    %c1_110 = arith.constant 1 : index
    %c3_111 = arith.constant 3 : index
    %c0_112 = arith.constant 0 : index
    %311 = vector.load %arg3[%c1_110, %c3_111, %c0_112] : memref<3x8x128xf32, #tpu.memory_space<vmem>>, vector<1x1x32xf32>
    %312 = vector.shape_cast %311 : vector<1x1x32xf32> to vector<1x32xf32>
    %c1_113 = arith.constant 1 : index
    %c4_114 = arith.constant 4 : index
    %c0_115 = arith.constant 0 : index
    %313 = vector.load %arg3[%c1_113, %c4_114, %c0_115] : memref<3x8x128xf32, #tpu.memory_space<vmem>>, vector<1x1x96xf32>
    %314 = vector.shape_cast %313 : vector<1x1x96xf32> to vector<1x96xf32>
    %c1_116 = arith.constant 1 : index
    %c5_117 = arith.constant 5 : index
    %c0_118 = arith.constant 0 : index
    %315 = vector.load %arg3[%c1_116, %c5_117, %c0_118] : memref<3x8x128xf32, #tpu.memory_space<vmem>>, vector<1x1x32xf32>
    %316 = vector.shape_cast %315 : vector<1x1x32xf32> to vector<1x32xf32>
    %c1_119 = arith.constant 1 : index
    %c6_120 = arith.constant 6 : index
    %c0_121 = arith.constant 0 : index
    %317 = vector.load %arg3[%c1_119, %c6_120, %c0_121] : memref<3x8x128xf32, #tpu.memory_space<vmem>>, vector<1x1x128xf32>
    %318 = vector.shape_cast %317 : vector<1x1x128xf32> to vector<1x128xf32>
    %c1_122 = arith.constant 1 : index
    %c7_123 = arith.constant 7 : index
    %c0_124 = arith.constant 0 : index
    %319 = vector.load %arg3[%c1_122, %c7_123, %c0_124] : memref<3x8x128xf32, #tpu.memory_space<vmem>>, vector<1x1x32xf32>
    %320 = vector.shape_cast %319 : vector<1x1x32xf32> to vector<1x32xf32>
    %c1_125 = arith.constant 1 : index
    %c0_126 = arith.constant 0 : index
    %c0_127 = arith.constant 0 : index
    %321 = vector.load %arg2[%c1_125, %c0_126, %c0_127] : memref<2x224x128xbf16, #tpu.memory_space<vmem>>, vector<1x32x96xbf16>
    %322 = vector.shape_cast %321 : vector<1x32x96xbf16> to vector<32x96xbf16>
    %c1_128 = arith.constant 1 : index
    %c32_129 = arith.constant 32 : index
    %c0_130 = arith.constant 0 : index
    %323 = vector.load %arg2[%c1_128, %c32_129, %c0_130] : memref<2x224x128xbf16, #tpu.memory_space<vmem>>, vector<1x32x32xbf16>
    %324 = vector.shape_cast %323 : vector<1x32x32xbf16> to vector<32x32xbf16>
    %c1_131 = arith.constant 1 : index
    %c64_132 = arith.constant 64 : index
    %c0_133 = arith.constant 0 : index
    %325 = vector.load %arg2[%c1_131, %c64_132, %c0_133] : memref<2x224x128xbf16, #tpu.memory_space<vmem>>, vector<1x32x128xbf16>
    %326 = vector.shape_cast %325 : vector<1x32x128xbf16> to vector<32x128xbf16>
    %c1_134 = arith.constant 1 : index
    %c96_135 = arith.constant 96 : index
    %c0_136 = arith.constant 0 : index
    %327 = vector.load %arg2[%c1_134, %c96_135, %c0_136] : memref<2x224x128xbf16, #tpu.memory_space<vmem>>, vector<1x128x32xbf16>
    %328 = vector.shape_cast %327 : vector<1x128x32xbf16> to vector<128x32xbf16>
    %cst_137 = arith.constant dense<0.000000e+00> : vector<16xf32>
    %329 = vector.multi_reduction <add>, %304, %cst_137 [1] : vector<16x32xf32> to vector<16xf32>
    %330 = vector.shape_cast %329 : vector<16xf32> to vector<16x1xf32>
    %cst_138 = arith.constant 3.200000e+01 : f32
    %331 = vector.broadcast %cst_138 : f32 to vector<16x1xf32>
    %332 = arith.divf %330, %331 : vector<16x1xf32>
    %333 = vector.broadcast %332 : vector<16x1xf32> to vector<16x32xf32>
    %334 = arith.subf %304, %333 : vector<16x32xf32>
    %335 = arith.mulf %334, %334 : vector<16x32xf32>
    %cst_139 = arith.constant dense<0.000000e+00> : vector<16xf32>
    %336 = vector.multi_reduction <add>, %335, %cst_139 [1] : vector<16x32xf32> to vector<16xf32>
    %337 = vector.shape_cast %336 : vector<16xf32> to vector<16x1xf32>
    %cst_140 = arith.constant 3.200000e+01 : f32
    %338 = vector.broadcast %cst_140 : f32 to vector<16x1xf32>
    %339 = arith.divf %337, %338 : vector<16x1xf32>
    %340 = vector.broadcast %332 : vector<16x1xf32> to vector<16x32xf32>
    %341 = arith.subf %304, %340 : vector<16x32xf32>
    %cst_141 = arith.constant 9.99999974E-6 : f32
    %342 = vector.broadcast %cst_141 : f32 to vector<16x1xf32>
    %343 = arith.addf %339, %342 : vector<16x1xf32>
    %344 = math.rsqrt %343 : vector<16x1xf32>
    %345 = vector.broadcast %344 : vector<16x1xf32> to vector<16x32xf32>
    %346 = arith.mulf %341, %345 : vector<16x32xf32>
    %347 = vector.broadcast %306 : vector<1x32xf32> to vector<16x32xf32>
    %348 = arith.mulf %346, %347 : vector<16x32xf32>
    %349 = vector.broadcast %308 : vector<1x32xf32> to vector<16x32xf32>
    %350 = arith.addf %348, %349 : vector<16x32xf32>
    %351 = arith.truncf %350 : vector<16x32xf32> to vector<16x32xbf16>
    %cst_142 = arith.constant dense<0.000000e+00> : vector<16x96xf32>
    %352 = tpu.matmul %351, %322, %cst_142 {dimension_numbers = #tpu.dot_dimension_numbers<[1], [0], [0], [1], [0, 0, 1, 1], [], []>} : vector<16x32xbf16>, vector<32x96xbf16>, vector<16x96xf32> -> vector<16x96xf32>
    %353 = vector.broadcast %314 : vector<1x96xf32> to vector<16x96xf32>
    %354 = arith.addf %352, %353 : vector<16x96xf32>
    %355 = vector.extract_strided_slice %354 {offsets = [0, 0], sizes = [8, 8], strides = [1, 1]} : vector<16x96xf32> to vector<8x8xf32>
    %356 = vector.extract_strided_slice %354 {offsets = [0, 32], sizes = [8, 8], strides = [1, 1]} : vector<16x96xf32> to vector<8x8xf32>
    %357 = vector.extract_strided_slice %354 {offsets = [0, 64], sizes = [8, 8], strides = [1, 1]} : vector<16x96xf32> to vector<8x8xf32>
    %358 = arith.truncf %355 : vector<8x8xf32> to vector<8x8xbf16>
    %359 = arith.truncf %356 : vector<8x8xf32> to vector<8x8xbf16>
    %cst_143 = arith.constant dense<0.000000e+00> : vector<8x8xf32>
    %360 = tpu.matmul %358, %359, %cst_143 {dimension_numbers = #tpu.dot_dimension_numbers<[1], [1], [0], [0], [0, 0, 1, 0], [], []>} : vector<8x8xbf16>, vector<8x8xbf16>, vector<8x8xf32> -> vector<8x8xf32>
    %cst_144 = arith.constant 0.353553385 : f32
    %361 = vector.broadcast %cst_144 : f32 to vector<8x8xf32>
    %362 = arith.mulf %360, %361 : vector<8x8xf32>
    %cst_145 = arith.constant -1.000000e+30 : f32
    %363 = vector.broadcast %cst_145 : f32 to vector<8x8xf32>
    %364 = arith.select %18, %362, %363 : vector<8x8xi1>, vector<8x8xf32>
    %cst_146 = arith.constant dense<0xFF800000> : vector<8xf32>
    %365 = vector.multi_reduction <maximumf>, %364, %cst_146 [1] : vector<8x8xf32> to vector<8xf32>
    %366 = vector.shape_cast %365 : vector<8xf32> to vector<8x1xf32>
    %367 = vector.broadcast %366 : vector<8x1xf32> to vector<8x8xf32>
    %368 = arith.subf %364, %367 : vector<8x8xf32>
    %369 = math.exp %368 : vector<8x8xf32>
    %cst_147 = arith.constant dense<0.000000e+00> : vector<8xf32>
    %370 = vector.multi_reduction <add>, %369, %cst_147 [1] : vector<8x8xf32> to vector<8xf32>
    %371 = vector.shape_cast %370 : vector<8xf32> to vector<8x1xf32>
    %372 = tpu.reciprocal %371 {approx = true} : vector<8x1xf32> -> vector<8x1xf32>
    %373 = vector.broadcast %372 : vector<8x1xf32> to vector<8x8xf32>
    %374 = arith.mulf %369, %373 : vector<8x8xf32>
    %375 = arith.truncf %374 : vector<8x8xf32> to vector<8x8xbf16>
    %376 = arith.truncf %357 : vector<8x8xf32> to vector<8x8xbf16>
    %cst_148 = arith.constant dense<0.000000e+00> : vector<8x8xf32>
    %377 = tpu.matmul %375, %376, %cst_148 {dimension_numbers = #tpu.dot_dimension_numbers<[1], [0], [0], [1], [0, 0, 1, 1], [], []>} : vector<8x8xbf16>, vector<8x8xbf16>, vector<8x8xf32> -> vector<8x8xf32>
    %378 = vector.extract_strided_slice %354 {offsets = [0, 8], sizes = [8, 8], strides = [1, 1]} : vector<16x96xf32> to vector<8x8xf32>
    %379 = vector.extract_strided_slice %354 {offsets = [0, 40], sizes = [8, 8], strides = [1, 1]} : vector<16x96xf32> to vector<8x8xf32>
    %380 = vector.extract_strided_slice %354 {offsets = [0, 72], sizes = [8, 8], strides = [1, 1]} : vector<16x96xf32> to vector<8x8xf32>
    %381 = arith.truncf %378 : vector<8x8xf32> to vector<8x8xbf16>
    %382 = arith.truncf %379 : vector<8x8xf32> to vector<8x8xbf16>
    %cst_149 = arith.constant dense<0.000000e+00> : vector<8x8xf32>
    %383 = tpu.matmul %381, %382, %cst_149 {dimension_numbers = #tpu.dot_dimension_numbers<[1], [1], [0], [0], [0, 0, 1, 0], [], []>} : vector<8x8xbf16>, vector<8x8xbf16>, vector<8x8xf32> -> vector<8x8xf32>
    %cst_150 = arith.constant 0.353553385 : f32
    %384 = vector.broadcast %cst_150 : f32 to vector<8x8xf32>
    %385 = arith.mulf %383, %384 : vector<8x8xf32>
    %cst_151 = arith.constant -1.000000e+30 : f32
    %386 = vector.broadcast %cst_151 : f32 to vector<8x8xf32>
    %387 = arith.select %18, %385, %386 : vector<8x8xi1>, vector<8x8xf32>
    %cst_152 = arith.constant dense<0xFF800000> : vector<8xf32>
    %388 = vector.multi_reduction <maximumf>, %387, %cst_152 [1] : vector<8x8xf32> to vector<8xf32>
    %389 = vector.shape_cast %388 : vector<8xf32> to vector<8x1xf32>
    %390 = vector.broadcast %389 : vector<8x1xf32> to vector<8x8xf32>
    %391 = arith.subf %387, %390 : vector<8x8xf32>
    %392 = math.exp %391 : vector<8x8xf32>
    %cst_153 = arith.constant dense<0.000000e+00> : vector<8xf32>
    %393 = vector.multi_reduction <add>, %392, %cst_153 [1] : vector<8x8xf32> to vector<8xf32>
    %394 = vector.shape_cast %393 : vector<8xf32> to vector<8x1xf32>
    %395 = tpu.reciprocal %394 {approx = true} : vector<8x1xf32> -> vector<8x1xf32>
    %396 = vector.broadcast %395 : vector<8x1xf32> to vector<8x8xf32>
    %397 = arith.mulf %392, %396 : vector<8x8xf32>
    %398 = arith.truncf %397 : vector<8x8xf32> to vector<8x8xbf16>
    %399 = arith.truncf %380 : vector<8x8xf32> to vector<8x8xbf16>
    %cst_154 = arith.constant dense<0.000000e+00> : vector<8x8xf32>
    %400 = tpu.matmul %398, %399, %cst_154 {dimension_numbers = #tpu.dot_dimension_numbers<[1], [0], [0], [1], [0, 0, 1, 1], [], []>} : vector<8x8xbf16>, vector<8x8xbf16>, vector<8x8xf32> -> vector<8x8xf32>
    %401 = vector.extract_strided_slice %354 {offsets = [0, 16], sizes = [8, 8], strides = [1, 1]} : vector<16x96xf32> to vector<8x8xf32>
    %402 = vector.extract_strided_slice %354 {offsets = [0, 48], sizes = [8, 8], strides = [1, 1]} : vector<16x96xf32> to vector<8x8xf32>
    %403 = vector.extract_strided_slice %354 {offsets = [0, 80], sizes = [8, 8], strides = [1, 1]} : vector<16x96xf32> to vector<8x8xf32>
    %404 = arith.truncf %401 : vector<8x8xf32> to vector<8x8xbf16>
    %405 = arith.truncf %402 : vector<8x8xf32> to vector<8x8xbf16>
    %cst_155 = arith.constant dense<0.000000e+00> : vector<8x8xf32>
    %406 = tpu.matmul %404, %405, %cst_155 {dimension_numbers = #tpu.dot_dimension_numbers<[1], [1], [0], [0], [0, 0, 1, 0], [], []>} : vector<8x8xbf16>, vector<8x8xbf16>, vector<8x8xf32> -> vector<8x8xf32>
    %cst_156 = arith.constant 0.353553385 : f32
    %407 = vector.broadcast %cst_156 : f32 to vector<8x8xf32>
    %408 = arith.mulf %406, %407 : vector<8x8xf32>
    %cst_157 = arith.constant -1.000000e+30 : f32
    %409 = vector.broadcast %cst_157 : f32 to vector<8x8xf32>
    %410 = arith.select %18, %408, %409 : vector<8x8xi1>, vector<8x8xf32>
    %cst_158 = arith.constant dense<0xFF800000> : vector<8xf32>
    %411 = vector.multi_reduction <maximumf>, %410, %cst_158 [1] : vector<8x8xf32> to vector<8xf32>
    %412 = vector.shape_cast %411 : vector<8xf32> to vector<8x1xf32>
    %413 = vector.broadcast %412 : vector<8x1xf32> to vector<8x8xf32>
    %414 = arith.subf %410, %413 : vector<8x8xf32>
    %415 = math.exp %414 : vector<8x8xf32>
    %cst_159 = arith.constant dense<0.000000e+00> : vector<8xf32>
    %416 = vector.multi_reduction <add>, %415, %cst_159 [1] : vector<8x8xf32> to vector<8xf32>
    %417 = vector.shape_cast %416 : vector<8xf32> to vector<8x1xf32>
    %418 = tpu.reciprocal %417 {approx = true} : vector<8x1xf32> -> vector<8x1xf32>
    %419 = vector.broadcast %418 : vector<8x1xf32> to vector<8x8xf32>
    %420 = arith.mulf %415, %419 : vector<8x8xf32>
    %421 = arith.truncf %420 : vector<8x8xf32> to vector<8x8xbf16>
    %422 = arith.truncf %403 : vector<8x8xf32> to vector<8x8xbf16>
    %cst_160 = arith.constant dense<0.000000e+00> : vector<8x8xf32>
    %423 = tpu.matmul %421, %422, %cst_160 {dimension_numbers = #tpu.dot_dimension_numbers<[1], [0], [0], [1], [0, 0, 1, 1], [], []>} : vector<8x8xbf16>, vector<8x8xbf16>, vector<8x8xf32> -> vector<8x8xf32>
    %424 = vector.extract_strided_slice %354 {offsets = [0, 24], sizes = [8, 8], strides = [1, 1]} : vector<16x96xf32> to vector<8x8xf32>
    %425 = vector.extract_strided_slice %354 {offsets = [0, 56], sizes = [8, 8], strides = [1, 1]} : vector<16x96xf32> to vector<8x8xf32>
    %426 = vector.extract_strided_slice %354 {offsets = [0, 88], sizes = [8, 8], strides = [1, 1]} : vector<16x96xf32> to vector<8x8xf32>
    %427 = arith.truncf %424 : vector<8x8xf32> to vector<8x8xbf16>
    %428 = arith.truncf %425 : vector<8x8xf32> to vector<8x8xbf16>
    %cst_161 = arith.constant dense<0.000000e+00> : vector<8x8xf32>
    %429 = tpu.matmul %427, %428, %cst_161 {dimension_numbers = #tpu.dot_dimension_numbers<[1], [1], [0], [0], [0, 0, 1, 0], [], []>} : vector<8x8xbf16>, vector<8x8xbf16>, vector<8x8xf32> -> vector<8x8xf32>
    %cst_162 = arith.constant 0.353553385 : f32
    %430 = vector.broadcast %cst_162 : f32 to vector<8x8xf32>
    %431 = arith.mulf %429, %430 : vector<8x8xf32>
    %cst_163 = arith.constant -1.000000e+30 : f32
    %432 = vector.broadcast %cst_163 : f32 to vector<8x8xf32>
    %433 = arith.select %18, %431, %432 : vector<8x8xi1>, vector<8x8xf32>
    %cst_164 = arith.constant dense<0xFF800000> : vector<8xf32>
    %434 = vector.multi_reduction <maximumf>, %433, %cst_164 [1] : vector<8x8xf32> to vector<8xf32>
    %435 = vector.shape_cast %434 : vector<8xf32> to vector<8x1xf32>
    %436 = vector.broadcast %435 : vector<8x1xf32> to vector<8x8xf32>
    %437 = arith.subf %433, %436 : vector<8x8xf32>
    %438 = math.exp %437 : vector<8x8xf32>
    %cst_165 = arith.constant dense<0.000000e+00> : vector<8xf32>
    %439 = vector.multi_reduction <add>, %438, %cst_165 [1] : vector<8x8xf32> to vector<8xf32>
    %440 = vector.shape_cast %439 : vector<8xf32> to vector<8x1xf32>
    %441 = tpu.reciprocal %440 {approx = true} : vector<8x1xf32> -> vector<8x1xf32>
    %442 = vector.broadcast %441 : vector<8x1xf32> to vector<8x8xf32>
    %443 = arith.mulf %438, %442 : vector<8x8xf32>
    %444 = arith.truncf %443 : vector<8x8xf32> to vector<8x8xbf16>
    %445 = arith.truncf %426 : vector<8x8xf32> to vector<8x8xbf16>
    %cst_166 = arith.constant dense<0.000000e+00> : vector<8x8xf32>
    %446 = tpu.matmul %444, %445, %cst_166 {dimension_numbers = #tpu.dot_dimension_numbers<[1], [0], [0], [1], [0, 0, 1, 1], [], []>} : vector<8x8xbf16>, vector<8x8xbf16>, vector<8x8xf32> -> vector<8x8xf32>
    %447 = tpu.concatenate %377, %400, %423, %446 in 1 : vector<8x8xf32>, vector<8x8xf32>, vector<8x8xf32>, vector<8x8xf32> -> vector<8x32xf32>
    %448 = vector.extract_strided_slice %354 {offsets = [8, 0], sizes = [8, 8], strides = [1, 1]} : vector<16x96xf32> to vector<8x8xf32>
    %449 = vector.extract_strided_slice %354 {offsets = [8, 32], sizes = [8, 8], strides = [1, 1]} : vector<16x96xf32> to vector<8x8xf32>
    %450 = vector.extract_strided_slice %354 {offsets = [8, 64], sizes = [8, 8], strides = [1, 1]} : vector<16x96xf32> to vector<8x8xf32>
    %451 = arith.truncf %448 : vector<8x8xf32> to vector<8x8xbf16>
    %452 = arith.truncf %449 : vector<8x8xf32> to vector<8x8xbf16>
    %cst_167 = arith.constant dense<0.000000e+00> : vector<8x8xf32>
    %453 = tpu.matmul %451, %452, %cst_167 {dimension_numbers = #tpu.dot_dimension_numbers<[1], [1], [0], [0], [0, 0, 1, 0], [], []>} : vector<8x8xbf16>, vector<8x8xbf16>, vector<8x8xf32> -> vector<8x8xf32>
    %cst_168 = arith.constant 0.353553385 : f32
    %454 = vector.broadcast %cst_168 : f32 to vector<8x8xf32>
    %455 = arith.mulf %453, %454 : vector<8x8xf32>
    %cst_169 = arith.constant -1.000000e+30 : f32
    %456 = vector.broadcast %cst_169 : f32 to vector<8x8xf32>
    %457 = arith.select %18, %455, %456 : vector<8x8xi1>, vector<8x8xf32>
    %cst_170 = arith.constant dense<0xFF800000> : vector<8xf32>
    %458 = vector.multi_reduction <maximumf>, %457, %cst_170 [1] : vector<8x8xf32> to vector<8xf32>
    %459 = vector.shape_cast %458 : vector<8xf32> to vector<8x1xf32>
    %460 = vector.broadcast %459 : vector<8x1xf32> to vector<8x8xf32>
    %461 = arith.subf %457, %460 : vector<8x8xf32>
    %462 = math.exp %461 : vector<8x8xf32>
    %cst_171 = arith.constant dense<0.000000e+00> : vector<8xf32>
    %463 = vector.multi_reduction <add>, %462, %cst_171 [1] : vector<8x8xf32> to vector<8xf32>
    %464 = vector.shape_cast %463 : vector<8xf32> to vector<8x1xf32>
    %465 = tpu.reciprocal %464 {approx = true} : vector<8x1xf32> -> vector<8x1xf32>
    %466 = vector.broadcast %465 : vector<8x1xf32> to vector<8x8xf32>
    %467 = arith.mulf %462, %466 : vector<8x8xf32>
    %468 = arith.truncf %467 : vector<8x8xf32> to vector<8x8xbf16>
    %469 = arith.truncf %450 : vector<8x8xf32> to vector<8x8xbf16>
    %cst_172 = arith.constant dense<0.000000e+00> : vector<8x8xf32>
    %470 = tpu.matmul %468, %469, %cst_172 {dimension_numbers = #tpu.dot_dimension_numbers<[1], [0], [0], [1], [0, 0, 1, 1], [], []>} : vector<8x8xbf16>, vector<8x8xbf16>, vector<8x8xf32> -> vector<8x8xf32>
    %471 = vector.extract_strided_slice %354 {offsets = [8, 8], sizes = [8, 8], strides = [1, 1]} : vector<16x96xf32> to vector<8x8xf32>
    %472 = vector.extract_strided_slice %354 {offsets = [8, 40], sizes = [8, 8], strides = [1, 1]} : vector<16x96xf32> to vector<8x8xf32>
    %473 = vector.extract_strided_slice %354 {offsets = [8, 72], sizes = [8, 8], strides = [1, 1]} : vector<16x96xf32> to vector<8x8xf32>
    %474 = arith.truncf %471 : vector<8x8xf32> to vector<8x8xbf16>
    %475 = arith.truncf %472 : vector<8x8xf32> to vector<8x8xbf16>
    %cst_173 = arith.constant dense<0.000000e+00> : vector<8x8xf32>
    %476 = tpu.matmul %474, %475, %cst_173 {dimension_numbers = #tpu.dot_dimension_numbers<[1], [1], [0], [0], [0, 0, 1, 0], [], []>} : vector<8x8xbf16>, vector<8x8xbf16>, vector<8x8xf32> -> vector<8x8xf32>
    %cst_174 = arith.constant 0.353553385 : f32
    %477 = vector.broadcast %cst_174 : f32 to vector<8x8xf32>
    %478 = arith.mulf %476, %477 : vector<8x8xf32>
    %cst_175 = arith.constant -1.000000e+30 : f32
    %479 = vector.broadcast %cst_175 : f32 to vector<8x8xf32>
    %480 = arith.select %18, %478, %479 : vector<8x8xi1>, vector<8x8xf32>
    %cst_176 = arith.constant dense<0xFF800000> : vector<8xf32>
    %481 = vector.multi_reduction <maximumf>, %480, %cst_176 [1] : vector<8x8xf32> to vector<8xf32>
    %482 = vector.shape_cast %481 : vector<8xf32> to vector<8x1xf32>
    %483 = vector.broadcast %482 : vector<8x1xf32> to vector<8x8xf32>
    %484 = arith.subf %480, %483 : vector<8x8xf32>
    %485 = math.exp %484 : vector<8x8xf32>
    %cst_177 = arith.constant dense<0.000000e+00> : vector<8xf32>
    %486 = vector.multi_reduction <add>, %485, %cst_177 [1] : vector<8x8xf32> to vector<8xf32>
    %487 = vector.shape_cast %486 : vector<8xf32> to vector<8x1xf32>
    %488 = tpu.reciprocal %487 {approx = true} : vector<8x1xf32> -> vector<8x1xf32>
    %489 = vector.broadcast %488 : vector<8x1xf32> to vector<8x8xf32>
    %490 = arith.mulf %485, %489 : vector<8x8xf32>
    %491 = arith.truncf %490 : vector<8x8xf32> to vector<8x8xbf16>
    %492 = arith.truncf %473 : vector<8x8xf32> to vector<8x8xbf16>
    %cst_178 = arith.constant dense<0.000000e+00> : vector<8x8xf32>
    %493 = tpu.matmul %491, %492, %cst_178 {dimension_numbers = #tpu.dot_dimension_numbers<[1], [0], [0], [1], [0, 0, 1, 1], [], []>} : vector<8x8xbf16>, vector<8x8xbf16>, vector<8x8xf32> -> vector<8x8xf32>
    %494 = vector.extract_strided_slice %354 {offsets = [8, 16], sizes = [8, 8], strides = [1, 1]} : vector<16x96xf32> to vector<8x8xf32>
    %495 = vector.extract_strided_slice %354 {offsets = [8, 48], sizes = [8, 8], strides = [1, 1]} : vector<16x96xf32> to vector<8x8xf32>
    %496 = vector.extract_strided_slice %354 {offsets = [8, 80], sizes = [8, 8], strides = [1, 1]} : vector<16x96xf32> to vector<8x8xf32>
    %497 = arith.truncf %494 : vector<8x8xf32> to vector<8x8xbf16>
    %498 = arith.truncf %495 : vector<8x8xf32> to vector<8x8xbf16>
    %cst_179 = arith.constant dense<0.000000e+00> : vector<8x8xf32>
    %499 = tpu.matmul %497, %498, %cst_179 {dimension_numbers = #tpu.dot_dimension_numbers<[1], [1], [0], [0], [0, 0, 1, 0], [], []>} : vector<8x8xbf16>, vector<8x8xbf16>, vector<8x8xf32> -> vector<8x8xf32>
    %cst_180 = arith.constant 0.353553385 : f32
    %500 = vector.broadcast %cst_180 : f32 to vector<8x8xf32>
    %501 = arith.mulf %499, %500 : vector<8x8xf32>
    %cst_181 = arith.constant -1.000000e+30 : f32
    %502 = vector.broadcast %cst_181 : f32 to vector<8x8xf32>
    %503 = arith.select %18, %501, %502 : vector<8x8xi1>, vector<8x8xf32>
    %cst_182 = arith.constant dense<0xFF800000> : vector<8xf32>
    %504 = vector.multi_reduction <maximumf>, %503, %cst_182 [1] : vector<8x8xf32> to vector<8xf32>
    %505 = vector.shape_cast %504 : vector<8xf32> to vector<8x1xf32>
    %506 = vector.broadcast %505 : vector<8x1xf32> to vector<8x8xf32>
    %507 = arith.subf %503, %506 : vector<8x8xf32>
    %508 = math.exp %507 : vector<8x8xf32>
    %cst_183 = arith.constant dense<0.000000e+00> : vector<8xf32>
    %509 = vector.multi_reduction <add>, %508, %cst_183 [1] : vector<8x8xf32> to vector<8xf32>
    %510 = vector.shape_cast %509 : vector<8xf32> to vector<8x1xf32>
    %511 = tpu.reciprocal %510 {approx = true} : vector<8x1xf32> -> vector<8x1xf32>
    %512 = vector.broadcast %511 : vector<8x1xf32> to vector<8x8xf32>
    %513 = arith.mulf %508, %512 : vector<8x8xf32>
    %514 = arith.truncf %513 : vector<8x8xf32> to vector<8x8xbf16>
    %515 = arith.truncf %496 : vector<8x8xf32> to vector<8x8xbf16>
    %cst_184 = arith.constant dense<0.000000e+00> : vector<8x8xf32>
    %516 = tpu.matmul %514, %515, %cst_184 {dimension_numbers = #tpu.dot_dimension_numbers<[1], [0], [0], [1], [0, 0, 1, 1], [], []>} : vector<8x8xbf16>, vector<8x8xbf16>, vector<8x8xf32> -> vector<8x8xf32>
    %517 = vector.extract_strided_slice %354 {offsets = [8, 24], sizes = [8, 8], strides = [1, 1]} : vector<16x96xf32> to vector<8x8xf32>
    %518 = vector.extract_strided_slice %354 {offsets = [8, 56], sizes = [8, 8], strides = [1, 1]} : vector<16x96xf32> to vector<8x8xf32>
    %519 = vector.extract_strided_slice %354 {offsets = [8, 88], sizes = [8, 8], strides = [1, 1]} : vector<16x96xf32> to vector<8x8xf32>
    %520 = arith.truncf %517 : vector<8x8xf32> to vector<8x8xbf16>
    %521 = arith.truncf %518 : vector<8x8xf32> to vector<8x8xbf16>
    %cst_185 = arith.constant dense<0.000000e+00> : vector<8x8xf32>
    %522 = tpu.matmul %520, %521, %cst_185 {dimension_numbers = #tpu.dot_dimension_numbers<[1], [1], [0], [0], [0, 0, 1, 0], [], []>} : vector<8x8xbf16>, vector<8x8xbf16>, vector<8x8xf32> -> vector<8x8xf32>
    %cst_186 = arith.constant 0.353553385 : f32
    %523 = vector.broadcast %cst_186 : f32 to vector<8x8xf32>
    %524 = arith.mulf %522, %523 : vector<8x8xf32>
    %cst_187 = arith.constant -1.000000e+30 : f32
    %525 = vector.broadcast %cst_187 : f32 to vector<8x8xf32>
    %526 = arith.select %18, %524, %525 : vector<8x8xi1>, vector<8x8xf32>
    %cst_188 = arith.constant dense<0xFF800000> : vector<8xf32>
    %527 = vector.multi_reduction <maximumf>, %526, %cst_188 [1] : vector<8x8xf32> to vector<8xf32>
    %528 = vector.shape_cast %527 : vector<8xf32> to vector<8x1xf32>
    %529 = vector.broadcast %528 : vector<8x1xf32> to vector<8x8xf32>
    %530 = arith.subf %526, %529 : vector<8x8xf32>
    %531 = math.exp %530 : vector<8x8xf32>
    %cst_189 = arith.constant dense<0.000000e+00> : vector<8xf32>
    %532 = vector.multi_reduction <add>, %531, %cst_189 [1] : vector<8x8xf32> to vector<8xf32>
    %533 = vector.shape_cast %532 : vector<8xf32> to vector<8x1xf32>
    %534 = tpu.reciprocal %533 {approx = true} : vector<8x1xf32> -> vector<8x1xf32>
    %535 = vector.broadcast %534 : vector<8x1xf32> to vector<8x8xf32>
    %536 = arith.mulf %531, %535 : vector<8x8xf32>
    %537 = arith.truncf %536 : vector<8x8xf32> to vector<8x8xbf16>
    %538 = arith.truncf %519 : vector<8x8xf32> to vector<8x8xbf16>
    %cst_190 = arith.constant dense<0.000000e+00> : vector<8x8xf32>
    %539 = tpu.matmul %537, %538, %cst_190 {dimension_numbers = #tpu.dot_dimension_numbers<[1], [0], [0], [1], [0, 0, 1, 1], [], []>} : vector<8x8xbf16>, vector<8x8xbf16>, vector<8x8xf32> -> vector<8x8xf32>
    %540 = tpu.concatenate %470, %493, %516, %539 in 1 : vector<8x8xf32>, vector<8x8xf32>, vector<8x8xf32>, vector<8x8xf32> -> vector<8x32xf32>
    %541 = tpu.concatenate %447, %540 in 0 : vector<8x32xf32>, vector<8x32xf32> -> vector<16x32xf32>
    %542 = arith.truncf %541 : vector<16x32xf32> to vector<16x32xbf16>
    %cst_191 = arith.constant dense<0.000000e+00> : vector<16x32xf32>
    %543 = tpu.matmul %542, %324, %cst_191 {dimension_numbers = #tpu.dot_dimension_numbers<[1], [0], [0], [1], [0, 0, 1, 1], [], []>} : vector<16x32xbf16>, vector<32x32xbf16>, vector<16x32xf32> -> vector<16x32xf32>
    %544 = arith.addf %304, %543 : vector<16x32xf32>
    %545 = vector.broadcast %316 : vector<1x32xf32> to vector<16x32xf32>
    %546 = arith.addf %544, %545 : vector<16x32xf32>
    %cst_192 = arith.constant dense<0.000000e+00> : vector<16xf32>
    %547 = vector.multi_reduction <add>, %546, %cst_192 [1] : vector<16x32xf32> to vector<16xf32>
    %548 = vector.shape_cast %547 : vector<16xf32> to vector<16x1xf32>
    %cst_193 = arith.constant 3.200000e+01 : f32
    %549 = vector.broadcast %cst_193 : f32 to vector<16x1xf32>
    %550 = arith.divf %548, %549 : vector<16x1xf32>
    %551 = vector.broadcast %550 : vector<16x1xf32> to vector<16x32xf32>
    %552 = arith.subf %546, %551 : vector<16x32xf32>
    %553 = arith.mulf %552, %552 : vector<16x32xf32>
    %cst_194 = arith.constant dense<0.000000e+00> : vector<16xf32>
    %554 = vector.multi_reduction <add>, %553, %cst_194 [1] : vector<16x32xf32> to vector<16xf32>
    %555 = vector.shape_cast %554 : vector<16xf32> to vector<16x1xf32>
    %cst_195 = arith.constant 3.200000e+01 : f32
    %556 = vector.broadcast %cst_195 : f32 to vector<16x1xf32>
    %557 = arith.divf %555, %556 : vector<16x1xf32>
    %558 = vector.broadcast %550 : vector<16x1xf32> to vector<16x32xf32>
    %559 = arith.subf %546, %558 : vector<16x32xf32>
    %cst_196 = arith.constant 9.99999974E-6 : f32
    %560 = vector.broadcast %cst_196 : f32 to vector<16x1xf32>
    %561 = arith.addf %557, %560 : vector<16x1xf32>
    %562 = math.rsqrt %561 : vector<16x1xf32>
    %563 = vector.broadcast %562 : vector<16x1xf32> to vector<16x32xf32>
    %564 = arith.mulf %559, %563 : vector<16x32xf32>
    %565 = vector.broadcast %310 : vector<1x32xf32> to vector<16x32xf32>
    %566 = arith.mulf %564, %565 : vector<16x32xf32>
    %567 = vector.broadcast %312 : vector<1x32xf32> to vector<16x32xf32>
    %568 = arith.addf %566, %567 : vector<16x32xf32>
    %569 = arith.truncf %568 : vector<16x32xf32> to vector<16x32xbf16>
    %cst_197 = arith.constant dense<0.000000e+00> : vector<16x128xf32>
    %570 = tpu.matmul %569, %326, %cst_197 {dimension_numbers = #tpu.dot_dimension_numbers<[1], [0], [0], [1], [0, 0, 1, 1], [], []>} : vector<16x32xbf16>, vector<32x128xbf16>, vector<16x128xf32> -> vector<16x128xf32>
    %571 = vector.broadcast %318 : vector<1x128xf32> to vector<16x128xf32>
    %572 = arith.addf %570, %571 : vector<16x128xf32>
    %cst_198 = arith.constant 5.000000e-01 : f32
    %573 = vector.broadcast %cst_198 : f32 to vector<16x128xf32>
    %574 = arith.mulf %573, %572 : vector<16x128xf32>
    %cst_199 = arith.constant 4.471500e-02 : f32
    %575 = vector.broadcast %cst_199 : f32 to vector<16x128xf32>
    %576 = arith.mulf %575, %572 : vector<16x128xf32>
    %577 = arith.mulf %576, %572 : vector<16x128xf32>
    %578 = arith.mulf %577, %572 : vector<16x128xf32>
    %579 = arith.addf %572, %578 : vector<16x128xf32>
    %cst_200 = arith.constant 0.797884583 : f32
    %580 = vector.broadcast %cst_200 : f32 to vector<16x128xf32>
    %581 = arith.mulf %580, %579 : vector<16x128xf32>
    %582 = math.tanh %581 : vector<16x128xf32>
    %cst_201 = arith.constant 1.000000e+00 : f32
    %583 = vector.broadcast %cst_201 : f32 to vector<16x128xf32>
    %584 = arith.addf %583, %582 : vector<16x128xf32>
    %585 = arith.mulf %574, %584 : vector<16x128xf32>
    %586 = arith.truncf %585 : vector<16x128xf32> to vector<16x128xbf16>
    %cst_202 = arith.constant dense<0.000000e+00> : vector<16x32xf32>
    %587 = tpu.matmul %586, %328, %cst_202 {dimension_numbers = #tpu.dot_dimension_numbers<[1], [0], [0], [1], [0, 0, 1, 1], [], []>} : vector<16x128xbf16>, vector<128x32xbf16>, vector<16x32xf32> -> vector<16x32xf32>
    %588 = arith.addf %546, %587 : vector<16x32xf32>
    %589 = vector.broadcast %320 : vector<1x32xf32> to vector<16x32xf32>
    %590 = arith.addf %588, %589 : vector<16x32xf32>
    %c2_203 = arith.constant 2 : index
    %c0_204 = arith.constant 0 : index
    %c0_205 = arith.constant 0 : index
    %591 = vector.load %arg3[%c2_203, %c0_204, %c0_205] : memref<3x8x128xf32, #tpu.memory_space<vmem>>, vector<1x1x32xf32>
    %592 = vector.shape_cast %591 : vector<1x1x32xf32> to vector<1x32xf32>
    %c2_206 = arith.constant 2 : index
    %c1_207 = arith.constant 1 : index
    %c0_208 = arith.constant 0 : index
    %593 = vector.load %arg3[%c2_206, %c1_207, %c0_208] : memref<3x8x128xf32, #tpu.memory_space<vmem>>, vector<1x1x32xf32>
    %594 = vector.shape_cast %593 : vector<1x1x32xf32> to vector<1x32xf32>
    %cst_209 = arith.constant dense<0.000000e+00> : vector<16xf32>
    %595 = vector.multi_reduction <add>, %590, %cst_209 [1] : vector<16x32xf32> to vector<16xf32>
    %596 = vector.shape_cast %595 : vector<16xf32> to vector<16x1xf32>
    %cst_210 = arith.constant 3.200000e+01 : f32
    %597 = vector.broadcast %cst_210 : f32 to vector<16x1xf32>
    %598 = arith.divf %596, %597 : vector<16x1xf32>
    %599 = vector.broadcast %598 : vector<16x1xf32> to vector<16x32xf32>
    %600 = arith.subf %590, %599 : vector<16x32xf32>
    %601 = arith.mulf %600, %600 : vector<16x32xf32>
    %cst_211 = arith.constant dense<0.000000e+00> : vector<16xf32>
    %602 = vector.multi_reduction <add>, %601, %cst_211 [1] : vector<16x32xf32> to vector<16xf32>
    %603 = vector.shape_cast %602 : vector<16xf32> to vector<16x1xf32>
    %cst_212 = arith.constant 3.200000e+01 : f32
    %604 = vector.broadcast %cst_212 : f32 to vector<16x1xf32>
    %605 = arith.divf %603, %604 : vector<16x1xf32>
    %606 = vector.broadcast %598 : vector<16x1xf32> to vector<16x32xf32>
    %607 = arith.subf %590, %606 : vector<16x32xf32>
    %cst_213 = arith.constant 9.99999974E-6 : f32
    %608 = vector.broadcast %cst_213 : f32 to vector<16x1xf32>
    %609 = arith.addf %605, %608 : vector<16x1xf32>
    %610 = math.rsqrt %609 : vector<16x1xf32>
    %611 = vector.broadcast %610 : vector<16x1xf32> to vector<16x32xf32>
    %612 = arith.mulf %607, %611 : vector<16x32xf32>
    %613 = vector.broadcast %592 : vector<1x32xf32> to vector<16x32xf32>
    %614 = arith.mulf %612, %613 : vector<16x32xf32>
    %615 = vector.broadcast %594 : vector<1x32xf32> to vector<16x32xf32>
    %616 = arith.addf %614, %615 : vector<16x32xf32>
    %617 = arith.truncf %616 : vector<16x32xf32> to vector<16x32xbf16>
    %cst_214 = arith.constant dense<0.000000e+00> : vector<16x64xf32>
    %618 = tpu.matmul %617, %3, %cst_214 {dimension_numbers = #tpu.dot_dimension_numbers<[1], [1], [0], [0], [0, 0, 1, 0], [], []>} : vector<16x32xbf16>, vector<64x32xbf16>, vector<16x64xf32> -> vector<16x64xf32>
    %cst_215 = arith.constant dense<0xFF800000> : vector<16xf32>
    %619 = vector.multi_reduction <maximumf>, %618, %cst_215 [1] : vector<16x64xf32> to vector<16xf32>
    %620 = vector.shape_cast %619 : vector<16xf32> to vector<16x1xf32>
    %621 = vector.broadcast %620 : vector<16x1xf32> to vector<16x64xf32>
    %622 = arith.subf %618, %621 : vector<16x64xf32>
    %623 = math.exp %622 : vector<16x64xf32>
    %cst_216 = arith.constant dense<0.000000e+00> : vector<16xf32>
    %624 = vector.multi_reduction <add>, %623, %cst_216 [1] : vector<16x64xf32> to vector<16xf32>
    %625 = vector.shape_cast %624 : vector<16xf32> to vector<16x1xf32>
    %626 = math.log %625 : vector<16x1xf32>
    %627 = arith.addf %626, %620 : vector<16x1xf32>
    %c-100_i32 = arith.constant -100 : i32
    %628 = vector.broadcast %c-100_i32 : i32 to vector<16x1xi32>
    %629 = arith.cmpi ne, %1, %628 : vector<16x1xi32>
    %c0_i32 = arith.constant 0 : i32
    %630 = vector.broadcast %c0_i32 : i32 to vector<16x1xi32>
    %631 = arith.select %629, %1, %630 : vector<16x1xi1>, vector<16x1xi32>
    %632 = vector.broadcast %631 : vector<16x1xi32> to vector<16x64xi32>
    %633 = arith.cmpi eq, %6, %632 : vector<16x64xi32>
    %cst_217 = arith.constant 0.000000e+00 : f32
    %634 = vector.broadcast %cst_217 : f32 to vector<16x64xf32>
    %635 = arith.select %633, %618, %634 : vector<16x64xi1>, vector<16x64xf32>
    %cst_218 = arith.constant dense<0.000000e+00> : vector<16xf32>
    %636 = vector.multi_reduction <add>, %635, %cst_218 [1] : vector<16x64xf32> to vector<16xf32>
    %637 = vector.shape_cast %636 : vector<16xf32> to vector<16x1xf32>
    %638 = arith.subf %627, %637 : vector<16x1xf32>
    %cst_219 = arith.constant 0.000000e+00 : f32
    %639 = vector.broadcast %cst_219 : f32 to vector<16x1xf32>
    %640 = arith.select %629, %638, %639 : vector<16x1xi1>, vector<16x1xf32>
    %641 = vector.shape_cast %640 : vector<16x1xf32> to vector<1x16x1xf32>
    %cst_220 = arith.constant dense<0.000000e+00> : vector<1xf32>
    %642 = vector.multi_reduction <add>, %641, %cst_220 [1, 2] : vector<1x16x1xf32> to vector<1xf32>
    %643 = vector.shape_cast %642 : vector<1xf32> to vector<1x1x1xf32>
    %644 = vector.extract %643[0, 0, 0] : f32 from vector<1x1x1xf32>
    %645 = vector.broadcast %644 : f32 to vector<1x1xf32>
    %646 = arith.extui %629 : vector<16x1xi1> to vector<16x1xi32>
    %647 = arith.sitofp %646 : vector<16x1xi32> to vector<16x1xf32>
    %648 = vector.shape_cast %647 : vector<16x1xf32> to vector<1x16x1xf32>
    %cst_221 = arith.constant dense<0.000000e+00> : vector<1xf32>
    %649 = vector.multi_reduction <add>, %648, %cst_221 [1, 2] : vector<1x16x1xf32> to vector<1xf32>
    %650 = vector.shape_cast %649 : vector<1xf32> to vector<1x1x1xf32>
    %651 = vector.extract %650[0, 0, 0] : f32 from vector<1x1x1xf32>
    %652 = vector.broadcast %651 : f32 to vector<1x1xf32>
    %653 = tpu.reciprocal %652 {approx = true} : vector<1x1xf32> -> vector<1x1xf32>
    %654 = arith.mulf %645, %653 : vector<1x1xf32>
    %655 = tpu.iota {dimensions = array<i32: 0>} : vector<8x1xi32>
    %656 = arith.sitofp %655 : vector<8x1xi32> to vector<8x1xf32>
    %657 = vector.extract_strided_slice %0 {offsets = [0, 0], sizes = [8, 1], strides = [1, 1]} : vector<16x1xi32> to vector<8x1xi32>
    %c7_i32 = arith.constant 7 : i32
    %658 = vector.broadcast %c7_i32 : i32 to vector<8x1xi32>
    %659 = arith.cmpi eq, %657, %658 : vector<8x1xi32>
    %cst_222 = arith.constant 1.000000e+09 : f32
    %660 = vector.broadcast %cst_222 : f32 to vector<8x1xf32>
    %661 = arith.select %659, %656, %660 : vector<8x1xi1>, vector<8x1xf32>
    %cst_223 = arith.constant dense<0x7F800000> : vector<1xf32>
    %662 = vector.multi_reduction <minimumf>, %661, %cst_223 [0] : vector<8x1xf32> to vector<1xf32>
    %663 = vector.shape_cast %662 : vector<1xf32> to vector<1x1xf32>
    %664 = tpu.iota {dimensions = array<i32: 1>} : vector<1x16xi32>
    %665 = arith.sitofp %664 : vector<1x16xi32> to vector<1x16xf32>
    %666 = vector.broadcast %663 : vector<1x1xf32> to vector<1x16xf32>
    %667 = arith.cmpf oeq, %665, %666 : vector<1x16xf32>
    %668 = arith.extui %667 : vector<1x16xi1> to vector<1x16xi32>
    %669 = arith.sitofp %668 : vector<1x16xi32> to vector<1x16xf32>
    %670 = arith.truncf %669 : vector<1x16xf32> to vector<1x16xbf16>
    %671 = arith.truncf %616 : vector<16x32xf32> to vector<16x32xbf16>
    %cst_224 = arith.constant dense<0.000000e+00> : vector<1x32xf32>
    %672 = tpu.matmul %670, %671, %cst_224 {dimension_numbers = #tpu.dot_dimension_numbers<[1], [0], [0], [1], [0, 0, 1, 1], [], []>} : vector<1x16xbf16>, vector<16x32xbf16>, vector<1x32xf32> -> vector<1x32xf32>
    %673 = arith.truncf %672 : vector<1x32xf32> to vector<1x32xbf16>
    %cst_225 = arith.constant dense<0.000000e+00> : vector<1x64xf32>
    %674 = tpu.matmul %673, %5, %cst_225 {dimension_numbers = #tpu.dot_dimension_numbers<[1], [1], [0], [0], [0, 0, 1, 0], [], []>} : vector<1x32xbf16>, vector<64x32xbf16>, vector<1x64xf32> -> vector<1x64xf32>
    %675 = tpu.iota {dimensions = array<i32: 1>} : vector<8x64xi32>
    %cst_226 = arith.constant dense<0xFF800000> : vector<1xf32>
    %676 = vector.multi_reduction <maximumf>, %674, %cst_226 [1] : vector<1x64xf32> to vector<1xf32>
    %677 = vector.shape_cast %676 : vector<1xf32> to vector<1x1xf32>
    %678 = vector.broadcast %677 : vector<1x1xf32> to vector<1x64xf32>
    %679 = arith.subf %674, %678 : vector<1x64xf32>
    %680 = math.exp %679 : vector<1x64xf32>
    %cst_227 = arith.constant dense<0.000000e+00> : vector<1xf32>
    %681 = vector.multi_reduction <add>, %680, %cst_227 [1] : vector<1x64xf32> to vector<1xf32>
    %682 = vector.shape_cast %681 : vector<1xf32> to vector<1x1xf32>
    %683 = math.log %682 : vector<1x1xf32>
    %684 = arith.addf %683, %677 : vector<1x1xf32>
    %c-100_i32_228 = arith.constant -100 : i32
    %685 = vector.broadcast %c-100_i32_228 : i32 to vector<8x1xi32>
    %686 = arith.cmpi ne, %2, %685 : vector<8x1xi32>
    %c0_i32_229 = arith.constant 0 : i32
    %687 = vector.broadcast %c0_i32_229 : i32 to vector<8x1xi32>
    %688 = arith.select %686, %2, %687 : vector<8x1xi1>, vector<8x1xi32>
    %689 = vector.broadcast %688 : vector<8x1xi32> to vector<8x64xi32>
    %690 = arith.cmpi eq, %675, %689 : vector<8x64xi32>
    %cst_230 = arith.constant 0.000000e+00 : f32
    %691 = vector.shape_cast %674 : vector<1x64xf32> to vector<1x64xf32>
    %692 = vector.broadcast %691 : vector<1x64xf32> to vector<8x64xf32>
    %693 = vector.broadcast %cst_230 : f32 to vector<8x64xf32>
    %694 = arith.select %690, %692, %693 : vector<8x64xi1>, vector<8x64xf32>
    %cst_231 = arith.constant dense<0.000000e+00> : vector<8xf32>
    %695 = vector.multi_reduction <add>, %694, %cst_231 [1] : vector<8x64xf32> to vector<8xf32>
    %696 = vector.shape_cast %695 : vector<8xf32> to vector<8x1xf32>
    %697 = vector.broadcast %684 : vector<1x1xf32> to vector<8x1xf32>
    %698 = arith.subf %697, %696 : vector<8x1xf32>
    %cst_232 = arith.constant 0.000000e+00 : f32
    %699 = vector.broadcast %cst_232 : f32 to vector<8x1xf32>
    %700 = arith.select %686, %698, %699 : vector<8x1xi1>, vector<8x1xf32>
    %701 = vector.shape_cast %700 : vector<8x1xf32> to vector<1x8x1xf32>
    %cst_233 = arith.constant dense<0.000000e+00> : vector<1xf32>
    %702 = vector.multi_reduction <add>, %701, %cst_233 [1, 2] : vector<1x8x1xf32> to vector<1xf32>
    %703 = vector.shape_cast %702 : vector<1xf32> to vector<1x1x1xf32>
    %704 = vector.extract %703[0, 0, 0] : f32 from vector<1x1x1xf32>
    %705 = vector.broadcast %704 : f32 to vector<1x1xf32>
    %706 = arith.extui %686 : vector<8x1xi1> to vector<8x1xi32>
    %707 = arith.sitofp %706 : vector<8x1xi32> to vector<8x1xf32>
    %708 = vector.shape_cast %707 : vector<8x1xf32> to vector<1x8x1xf32>
    %cst_234 = arith.constant dense<0.000000e+00> : vector<1xf32>
    %709 = vector.multi_reduction <add>, %708, %cst_234 [1, 2] : vector<1x8x1xf32> to vector<1xf32>
    %710 = vector.shape_cast %709 : vector<1xf32> to vector<1x1x1xf32>
    %711 = vector.extract %710[0, 0, 0] : f32 from vector<1x1x1xf32>
    %712 = vector.broadcast %711 : f32 to vector<1x1xf32>
    %713 = tpu.reciprocal %712 {approx = true} : vector<1x1xf32> -> vector<1x1xf32>
    %714 = arith.mulf %705, %713 : vector<1x1xf32>
    %cst_235 = arith.constant 1.000000e+00 : f32
    %715 = vector.broadcast %cst_235 : f32 to vector<1x1xf32>
    %716 = arith.mulf %715, %714 : vector<1x1xf32>
    %717 = arith.addf %716, %654 : vector<1x1xf32>
    %c0_236 = arith.constant 0 : index
    %c0_237 = arith.constant 0 : index
    %718 = vector.load %arg4[%c0_236, %c0_237] : memref<1x1xf32, #tpu.memory_space<vmem>>, vector<1x1xf32>
    tpu.vector_store %arg4[%c0_236, %c0_237], %717 {strides = array<i32>} : memref<1x1xf32, #tpu.memory_space<vmem>>, vector<1x1xf32>,
    return
  }
}

</mosaic_0001>

<bundles_post_ra>
// kernel: model_forward.1
= control target key start
LH: loop header
LB: loop body
LE: loop exit
PB: predicated region body
PF: predicated region fallthrough
CT: control target
= control target key end

     0   :  { %9 = vsyncpa [#allocation3], 0  ;;  %s4828_s0 = inlined_call_operand.vmem [shape: s32[40,1], index: 0, kind: input, shape index: {}]   ;;  %s4829_s1 = inlined_call_operand.vmem [shape: bf16[144,32], index: 1, kind: input, shape index: {}]   ;;  %s4830_s2 = inlined_call_operand.hbm [shape: bf16[2,224,128], index: 2, kind: input, shape index: {}]   ;;  %s4831_s3 = inlined_call_operand.vmem [shape: f32[3,8,128], index: 3, kind: input, shape index: {}]   ;;  %s4832_s4 = inlined_call_operand.hbm [shape: f32[1,1], index: 4, kind: output, shape index: {}]  }
   0x1   :  { %10 = vsyncpa [#allocation4], 0  ;;  %s4042_s15 = smov [#allocation2]  }
   0x2   :  { %s20_s16 = sshll.u32 %s4042_s15, 4  ;;  %s21_s16 = int_to_ptr.vmem [resolvable:$true] %s20_s16 }
   0x3   :  { %s4006_s17 = scalar_lea.vmem %s21_s16, 3584  ;;  %p4011_p1 = scmp.lt.s32.totalorder %s21_s16, %s21_s16 }
   0x4   :  { %p4007_p0 = scmp.ne.s32.totalorder %s21_s16, %s4006_s17  ;;  %p4012_p2 = scmp.lt.s32.totalorder %s4006_s17, %s4006_s17 }
   0x6   :  { %p4013_p3 = por %p4012_p2, %p4011_p1 }
   0x8   :  { %p4014_p4 = pnand %p4013_p3, %p4007_p0 }
   0xa   :  { %4017 = shalt.err (!%p4014_p4)
}
   0xb   :  { %s4043_s18 = smov 64   ;;  %s4044_s19 = smov 4  }
   0xc   :  { %26 = dma.hbm_to_vmem [thread:$0]  %s4830_s2, 3584, %s21_s16, [#allocation3], %s4043_s18, %s4043_s18, %s4044_s19  }
   0xd   :  { %4038 = dma.done.wait [#allocation3], 3584  }
   0xe   :  { %4039 = vsyncadd [#allocation3], 4294963712  ;;  %v4045_v0 = vmov 0   ;;  %v4046_v1 = vmov 0.0   ;;  %v33_v2 = vld [vmem:[%s4828_s0] sm:$0xff]  ;;  %v3848_v3 = vld [vmem:[%s4829_s1 + $0x18] sm:$0xff]   ;;  %v55_v8 = vlaneseq }
   0xf   :  { %3816 = vset.pattern.permute.xlu0 %v4045_v0  ;;  %3466 = vmatprep.subr.bf16.mxu0 %v4046_v1  ;;  %v34_v4 = vld [vmem:[%s4828_s0 + $0x8] sm:$0xff]  ;;  %v3849_v5 = vld [vmem:[%s4829_s1 + $0x10] sm:$0xff]   ;;  %vm4047_vm0 = vmmov 0   ;;  %v3851_v7 = vld [vmem:[%s4829_s1] sm:$0xff]   ;;  %vm104_vm3 = vcmask 523264   ;;  %vm73_vm4 = vcmask 1043456  }
  0x10   :  { %3486 = vmatprep.subr.bf16.mxu1 %v4046_v1  ;;  %3847 = vset.pattern.permute.xlu1 %v4045_v0  ;;  %v3850_v6 = vld [vmem:[%s4829_s1 + $0x8] sm:$0xff]   ;;  %v4121_v9 = vand.u32 127, %v55_v8  ;;  %v46_v15 = vld [vmem:[%s4829_s1 + $0x20] sm:$0xf]  ;;  %vm188_vm5 = vcmask 261120   ;;  %s4048_s15 = smov 112  }
  0x11   :  { %58 = vperm.xlu0 %3816, %v33_v2   ;;  %3467 = vmatpush3.bf16.msra.mxu0 %v3848_v3  ;;  %v3238_v16 = vcombine.low %v46_v15, %v46_v15  ;;  %v3853_v38 = vld [vmem:[#allocation2 + $0x8] sm:$0xff]   ;;  %v3854_v39 = vld [vmem:[#allocation2] sm:$0xff]   ;;  %s4049_s16 = smov 96   ;;  %s4050_s17 = smov 88   ;;  %vm293_vm6 = vcmask 64512   ;;  %vm751_vm8 = vcmask 130048  }
  0x12   :  { %3468 = vmatprep.subr.bf16.mxu0 %v4046_v1  ;;  %3474 = vmatprep.mubr.msk.bf16.mxu0 %vm4047_vm0, %v4046_v1  ;;  %v3244_v48 = vld [vmem:[%s4831_s3] ss:$0 sm:$0xff]  ;;  %v3245_v52 = vld [vmem:[%s4831_s3 + $0x1] ss:$0 sm:$0xff]  ;;  %v3246_v57 = vld [vmem:[%s4831_s3 + $0x4] ss:$0 sm:$0xff] }
  0x13   :  { %3488 = vmatprep.mubr.msk.bf16.mxu1 %vm4047_vm0, %v4046_v1  ;;  %v76_v17 = vsel %vm73_vm4, %v46_v15, %v3238_v16  ;;  %s4051_s19 = smov 80   ;;  %s4052_s20 = smov 120   ;;  %vm753_vm9 = vcmask 195584   ;;  %vm2987_vm11 = vcmask 7168   ;;  %vm3159_vm15 = vcmask 516096  }
  0x14   :  { %v78_v18 = vunpack.c.l.bf16 %v76_v17  ;;  %v79_v21 = vunpack.c.h.bf16 %v76_v17  ;;  %s4053_s21 = smov 72   ;;  %s4054_s22 = smov 104  }
  0x15   :  { %61 = vperm.xlu0 %3816, %v34_v4   ;;  %3469 = vmatpush3.bf16.msra.mxu0 %v3849_v5  ;;  %s4055_s23 = smov 56   ;;  %s4056_s24 = smov 48  }
  0x16   :  { %3470 = vmatprep.subr.bf16.mxu0 %v4046_v1  ;;  %s4057_s25 = smov 40   ;;  %s4058_s2 = smov 8  }
  0x17   :  { %s4059_s26 = smov 16   ;;  %s4060_s27 = smov 24  }
  0x19   :  { %3471 = vmatpush3.bf16.msra.mxu0 %v3850_v6 }
  0x1a   :  { %3472 = vmatprep.subr.bf16.mxu0 %v4046_v1 }
  0x1d   :  { %3473 = vmatpush3.bf16.msra.mxu0 %v3851_v7 }
  0x1e   :  { %3478 = vmatprep.subr.bf16.mxu0 %v4046_v1 }
  0x8c   :  { %v59_v10 = vpop.permute.xlu0 %58 }
  0x8d   :  { %vm63_vm1 = vcmp.eq.s32.totalorder %v4121_v9, %v59_v10 }
  0x8e   :  { %v3236_v12 = vsel %vm63_vm1, 1.0, %v4046_v1 }
  0x90   :  { %v62_v11 = vpop.permute.xlu0 %61 }
  0x91   :  { %vm64_vm2 = vcmp.eq.s32.totalorder %v4121_v9, %v62_v11 }
  0x92   :  { %v3237_v13 = vsel %vm64_vm2, 1.0, %v4046_v1 }
  0x93   :  { %v69_v14 = vpack.c.bf16 %v3237_v13, %v3236_v12 }
  0x95   :  { %3475 = vmatmul.mubr.msk.bf16.vlgmr.msra.gmra.mxu0 %vm104_vm3, %v69_v14 }
  0x96   :  { %3482 = vmatprep.mubr.msk.bf16.mxu0 %vm4047_vm0, %v4046_v1  ;;  %3479 = vmatpush3.bf16.msra.mxu0 %v3853_v38 }
  0x97   :  { %3480 = vmatprep.subr.bf16.mxu0 %v4046_v1 }
  0x9a   :  { %3481 = vmatpush3.bf16.msra.mxu0 %v3854_v39 }
  0x9b   :  { %3492 = vmatprep.subr.bf16.mxu0 %v4046_v1 }
 0x155   :  { %v142_v19 = vpop.f32.mrf.mxu0 }
 0x156   :  { %v4134_v20 = vadd.f32 %v142_v19, %v78_v18 }
 0x157   :  { %v3476_v22 = vpop.f32.mrf.mxu0 }
 0x158   :  { %v189_v23 = vsel %vm188_vm5, %v4134_v20, 0.0 }
 0x159   :  { %190 = vadd.xlane.f32.xlu1 %v189_v23  ;;  %v145_v24 = vpop.f32.mrf.mxu0 }
 0x15a   :  { %v4138_v25 = vadd.f32 %v145_v24, %v79_v21 }
 0x15b   :  { %v3477_v26 = vpop.f32.mrf.mxu0 }
 0x15c   :  { %v192_v27 = vsel %vm188_vm5, %v4138_v25, 0.0 }
 0x15d   :  { %193 = vadd.xlane.f32.xlu1 %v192_v27 }
 0x1e2   :  { %v191_v28 = vpop.xlane.xlu1 %190 }
 0x1e3   :  { %v196_v29 = vmul.f32 0.03125, %v191_v28 }
 0x1e5   :  { %v198_v30 = vsub.f32 %v4134_v20, %v196_v29  ;;  %v4235_v29 = vshrl.u32 %v55_v8, 7 }
 0x1e6   :  { %v194_v31 = vpop.xlane.xlu1 %193 }
 0x1e7   :  { %v197_v32 = vmul.f32 0.03125, %v194_v31  ;;  %v200_v33 = vmul.f32 %v198_v30, %v198_v30  ;;  %vm4239_vm7 = vcmp.le.s32.totalorder %v4121_v9, %v4235_v29 }
 0x1e9   :  { %v199_v34 = vsub.f32 %v4138_v25, %v197_v32  ;;  %v202_v35 = vsel %vm188_vm5, %v200_v33, 0.0 }
 0x1ea   :  { %203 = vadd.xlane.f32.xlu0 %v202_v35 }
 0x1eb   :  { %v201_v36 = vmul.f32 %v199_v34, %v199_v34 }
 0x1ed   :  { %v205_v37 = vsel %vm188_vm5, %v201_v36, 0.0 }
 0x1ee   :  { %206 = vadd.xlane.f32.xlu1 %v205_v37 }
 0x273   :  { %v204_v40 = vpop.xlane.xlu0 %203 }
 0x274   :  { %v208_v41 = vmul.f32 0.03125, %v204_v40 }
 0x276   :  { %v210_v42 = vadd.f32 1e-05, %v208_v41 }
 0x277   :  { %v207_v43 = vpop.xlane.xlu1 %206 }
 0x278   :  { %3885 = vrsqrt.f32 %v210_v42  ;;  %v209_v44 = vmul.f32 0.03125, %v207_v43 }
 0x27a   :  { %v211_v45 = vadd.f32 1e-05, %v209_v44 }
 0x27c   :  { %3887 = vrsqrt.f32 %v211_v45 }
 0x285   :  { %v3886_v46 = vpop.eup %3885 }
 0x286   :  { %v214_v47 = vmul.f32 %v3886_v46, %v198_v30 }
 0x288   :  { %v220_v51 = vmul.f32 %v3244_v48, %v214_v47 }
 0x289   :  { %v3888_v49 = vpop.eup %3887 }
 0x28a   :  { %v215_v50 = vmul.f32 %v3888_v49, %v199_v34  ;;  %v226_v54 = vadd.f32 %v3245_v52, %v220_v51 }
 0x28c   :  { %v221_v53 = vmul.f32 %v3244_v48, %v215_v50 }
 0x28e   :  { %v227_v55 = vadd.f32 %v3245_v52, %v221_v53 }
 0x290   :  { %v228_v56 = vpack.c.bf16 %v227_v55, %v226_v54 }
 0x292   :  { %3483 = vmatmul.mubr.msk.bf16.vlgmr.msra.gmra.mxu0 %vm188_vm5, %v228_v56 }
 0x293   :  { %3494 = vmatprep.mubr.msk.bf16.mxu0 %vm4047_vm0, %v4046_v1 }
 0x352   :  { %v282_v58 = vpop.f32.mrf.mxu0 }
 0x353   :  { %v283_v59 = vadd.f32 %v3246_v57, %v282_v58 }
 0x354   :  { %v3484_v60 = vpop.f32.mrf.mxu0 }
 0x355   :  { %v4160_v61 = vpack.c.bf16 %v283_v59, %v283_v59 }
 0x356   :  { %v285_v62 = vpop.f32.mrf.mxu0 }
 0x357   :  { %v286_v63 = vadd.f32 %v3246_v57, %v285_v62  ;;  %514 = vrot.lane.b32.xlu0 %v4160_v61, %s4048_s15  ;;  %291 = vrot.lane.b32.xlu1 %v4160_v61, %s4049_s16 }
 0x358   :  { %v3485_v0 = vpop.f32.mrf.mxu0 }
 0x359   :  { %v4166_v2 = vpack.c.bf16 %v286_v63, %v286_v63 }
 0x35b   :  { %404 = vrot.lane.b32.xlu1 %v4160_v61, %s4050_s17  ;;  %981 = vrot.lane.b32.xlu0 %v4166_v2, %s4051_s19 }
 0x35f   :  { %402 = vrot.lane.b32.xlu1 %v4160_v61, %s4052_s20  ;;  %1093 = vrot.lane.b32.xlu0 %v4166_v2, %s4053_s21 }
 0x363   :  { %516 = vrot.lane.b32.xlu1 %v4160_v61, %s4051_s19 }
 0x367   :  { %628 = vrot.lane.b32.xlu1 %v4160_v61, %s4053_s21 }
 0x36b   :  { %626 = vrot.lane.b32.xlu1 %v4160_v61, %s4054_s22 }
 0x36f   :  { %757 = vrot.lane.b32.xlu1 %v4166_v2, %s4049_s16 }
 0x373   :  { %869 = vrot.lane.b32.xlu1 %v4166_v2, %s4050_s17 }
 0x377   :  { %867 = vrot.lane.b32.xlu1 %v4166_v2, %s4052_s20 }
 0x37b   :  { %979 = vrot.lane.b32.xlu1 %v4166_v2, %s4048_s15 }
 0x37f   :  { %1091 = vrot.lane.b32.xlu1 %v4166_v2, %s4054_s22 }
 0x3c9   :  { %v292_v3 = vpop.permute.xlu1 %291  ;;  %v515_v13 = vpop.permute.xlu0 %514 }
 0x3ca   :  { %v298_v4 = vsel %vm293_vm6, %v292_v3, 0 }
 0x3cb   :  { %3487 = vmatpush3.bf16.xpose.msra.mxu1 %v298_v4 }
 0x3cc   :  { %3498 = vmatprep.subr.bf16.mxu1 %v4046_v1 }
 0x3cd   :  { %v405_v5 = vpop.permute.xlu1 %404  ;;  %v982_v21 = vpop.permute.xlu0 %981 }
 0x3ce   :  { %v410_v7 = vsel %vm293_vm6, %v405_v5, 0  ;;  %v987_v23 = vsel %vm293_vm6, %v982_v21, 0 }
 0x3d1   :  { %v403_v6 = vpop.permute.xlu1 %402  ;;  %v1094_v24 = vpop.permute.xlu0 %1093 }
 0x3d2   :  { %3489 = vmatmul.mubr.msk.bf16.vlgmr.msra.gmra.mxu1 %vm293_vm6, %v4160_v61  ;;  %v1099_v27 = vsel %vm293_vm6, %v1094_v24, 0 }
 0x3d3   :  { %3499 = vmatpush3.bf16.xpose.msra.mxu1 %v410_v7  ;;  %3500 = vmatprep.mubr.msk.bf16.mxu1 %vm4047_vm0, %v4046_v1 }
 0x3d4   :  { %3510 = vmatprep.subr.bf16.mxu1 %v4046_v1 }
 0x3d5   :  { %v517_v10 = vpop.permute.xlu1 %516 }
 0x3d6   :  { %v522_v11 = vsel %vm293_vm6, %v517_v10, 0 }
 0x3d9   :  { %v629_v12 = vpop.permute.xlu1 %628 }
 0x3da   :  { %3501 = vmatmul.mubr.msk.bf16.vlgmr.msra.gmra.mxu1 %vm293_vm6, %v403_v6  ;;  %v634_v15 = vsel %vm293_vm6, %v629_v12, 0 }
 0x3db   :  { %3511 = vmatpush3.bf16.xpose.msra.mxu1 %v522_v11  ;;  %3512 = vmatprep.mubr.msk.bf16.mxu1 %vm4047_vm0, %v4046_v1 }
 0x3dc   :  { %3522 = vmatprep.subr.bf16.mxu1 %v4046_v1 }
 0x3dd   :  { %v627_v14 = vpop.permute.xlu1 %626 }
 0x3e1   :  { %v758_v16 = vpop.permute.xlu1 %757 }
 0x3e2   :  { %3513 = vmatmul.mubr.msk.bf16.vlgmr.msra.gmra.mxu1 %vm293_vm6, %v515_v13  ;;  %v763_v17 = vsel %vm293_vm6, %v758_v16, 0 }
 0x3e3   :  { %3523 = vmatpush3.bf16.xpose.msra.mxu1 %v634_v15  ;;  %3524 = vmatprep.mubr.msk.bf16.mxu1 %vm4047_vm0, %v4046_v1 }
 0x3e4   :  { %3534 = vmatprep.subr.bf16.mxu1 %v4046_v1 }
 0x3e5   :  { %v870_v18 = vpop.permute.xlu1 %869 }
 0x3e6   :  { %v875_v19 = vsel %vm293_vm6, %v870_v18, 0 }
 0x3e9   :  { %v868_v22 = vpop.permute.xlu1 %867 }
 0x3ea   :  { %3525 = vmatmul.mubr.msk.bf16.vlgmr.msra.gmra.mxu1 %vm293_vm6, %v627_v14 }
 0x3eb   :  { %3535 = vmatpush3.bf16.xpose.msra.mxu1 %v763_v17  ;;  %3536 = vmatprep.mubr.msk.bf16.mxu1 %vm4047_vm0, %v4046_v1 }
 0x3ec   :  { %3546 = vmatprep.subr.bf16.mxu1 %v4046_v1 }
 0x3ed   :  { %v980_v26 = vpop.permute.xlu1 %979 }
 0x3f1   :  { %v1092_v28 = vpop.permute.xlu1 %1091 }
 0x3f2   :  { %3537 = vmatmul.mubr.msk.bf16.vlgmr.msra.gmra.mxu1 %vm293_vm6, %v4166_v2 }
 0x3f3   :  { %3547 = vmatpush3.bf16.xpose.msra.mxu1 %v875_v19  ;;  %3548 = vmatprep.mubr.msk.bf16.mxu1 %vm4047_vm0, %v4046_v1 }
 0x3f4   :  { %3558 = vmatprep.subr.bf16.mxu1 %v4046_v1 }
 0x3fa   :  { %3549 = vmatmul.mubr.msk.bf16.vlgmr.msra.gmra.mxu1 %vm293_vm6, %v868_v22 }
 0x3fb   :  { %3559 = vmatpush3.bf16.xpose.msra.mxu1 %v987_v23  ;;  %3560 = vmatprep.mubr.msk.bf16.mxu1 %vm4047_vm0, %v4046_v1 }
 0x3fc   :  { %3570 = vmatprep.subr.bf16.mxu1 %v4046_v1 }
 0x402   :  { %3561 = vmatmul.mubr.msk.bf16.vlgmr.msra.gmra.mxu1 %vm293_vm6, %v980_v26 }
 0x403   :  { %3571 = vmatpush3.bf16.xpose.msra.mxu1 %v1099_v27  ;;  %3572 = vmatprep.mubr.msk.bf16.mxu1 %vm4047_vm0, %v4046_v1 }
 0x404   :  { %3582 = vmatprep.subr.bf16.mxu1 %v4046_v1 }
 0x40a   :  { %3573 = vmatmul.mubr.msk.bf16.vlgmr.msra.gmra.mxu1 %vm293_vm6, %v1092_v28 }
 0x40b   :  { %3586 = vmatprep.mubr.msk.bf16.mxu1 %vm4047_vm0, %v4046_v1 }
 0x492   :  { %v334_v31 = vpop.f32.mrf.mxu1 }
 0x493   :  { %v340_v32 = vmul.f32 0.35355338, %v334_v31 }
 0x494   :  { %v3490_v33 = vpop.f32.mrf.mxu1 }
 0x495   :  { %v4245_v34 = vsel %vm4239_vm7, %v340_v32, -1e+30 }
 0x496   :  { %v337_v35 = vpop.f32.mrf.mxu1  ;;  %v342_v36 = vsel %vm293_vm6, %v4245_v34, -inf }
 0x497   :  { %343 = vmax.xlane.f32.xlu0 %v342_v36 }
 0x498   :  { %v3491_v8 = vpop.f32.mrf.mxu1 }
 0x49a   :  { %v446_v37 = vpop.f32.mrf.mxu1 }
 0x49b   :  { %v452_v38 = vmul.f32 0.35355338, %v446_v37 }
 0x49c   :  { %v3502_v39 = vpop.f32.mrf.mxu1 }
 0x49d   :  { %v453_v40 = vsel %vm4239_vm7, %v452_v38, -1e+30 }
 0x49e   :  { %v449_v41 = vpop.f32.mrf.mxu1  ;;  %v454_v42 = vsel %vm293_vm6, %v453_v40, -inf }
 0x49f   :  { %455 = vmax.xlane.f32.xlu1 %v454_v42 }
 0x4a0   :  { %v3503_v43 = vpop.f32.mrf.mxu1 }
 0x4a2   :  { %v558_v44 = vpop.f32.mrf.mxu1 }
 0x4a3   :  { %v564_v45 = vmul.f32 0.35355338, %v558_v44 }
 0x4a4   :  { %v3514_v46 = vpop.f32.mrf.mxu1 }
 0x4a5   :  { %v565_v47 = vsel %vm4239_vm7, %v564_v45, -1e+30 }
 0x4a6   :  { %v561_v48 = vpop.f32.mrf.mxu1  ;;  %v566_v49 = vsel %vm293_vm6, %v565_v47, -inf }
 0x4a7   :  { %567 = vmax.xlane.f32.xlu0 %v566_v49 }
 0x4a8   :  { %v3515_v50 = vpop.f32.mrf.mxu1 }
 0x4aa   :  { %v670_v51 = vpop.f32.mrf.mxu1 }
 0x4ab   :  { %v676_v52 = vmul.f32 0.35355338, %v670_v51 }
 0x4ac   :  { %v3526_v53 = vpop.f32.mrf.mxu1 }
 0x4ad   :  { %v4257_v54 = vsel %vm4239_vm7, %v676_v52, -1e+30 }
 0x4ae   :  { %v673_v55 = vpop.f32.mrf.mxu1  ;;  %v678_v56 = vsel %vm293_vm6, %v4257_v54, -inf }
 0x4af   :  { %679 = vmax.xlane.f32.xlu0 %v678_v56 }
 0x4b0   :  { %v3527_v57 = vpop.f32.mrf.mxu1 }
 0x4b2   :  { %v799_v58 = vpop.f32.mrf.mxu1 }
 0x4b3   :  { %v805_v59 = vmul.f32 0.35355338, %v799_v58 }
 0x4b4   :  { %v3538_v60 = vpop.f32.mrf.mxu1 }
 0x4b5   :  { %v4263_v62 = vsel %vm4239_vm7, %v805_v59, -1e+30 }
 0x4b6   :  { %v802_v63 = vpop.f32.mrf.mxu1  ;;  %v807_v0 = vsel %vm293_vm6, %v4263_v62, -inf }
 0x4b7   :  { %808 = vmax.xlane.f32.xlu1 %v807_v0 }
 0x4b8   :  { %v3539_v3 = vpop.f32.mrf.mxu1 }
 0x4ba   :  { %v911_v4 = vpop.f32.mrf.mxu1 }
 0x4bb   :  { %v917_v5 = vmul.f32 0.35355338, %v911_v4 }
 0x4bc   :  { %v3550_v6 = vpop.f32.mrf.mxu1 }
 0x4bd   :  { %v4269_v7 = vsel %vm4239_vm7, %v917_v5, -1e+30 }
 0x4be   :  { %v914_v10 = vpop.f32.mrf.mxu1  ;;  %v919_v11 = vsel %vm293_vm6, %v4269_v7, -inf }
 0x4bf   :  { %920 = vmax.xlane.f32.xlu0 %v919_v11 }
 0x4c0   :  { %v3551_v12 = vpop.f32.mrf.mxu1 }
 0x4c2   :  { %v1023_v13 = vpop.f32.mrf.mxu1 }
 0x4c3   :  { %v1029_v14 = vmul.f32 0.35355338, %v1023_v13 }
 0x4c4   :  { %v3562_v15 = vpop.f32.mrf.mxu1 }
 0x4c5   :  { %v1030_v16 = vsel %vm4239_vm7, %v1029_v14, -1e+30 }
 0x4c6   :  { %v1026_v17 = vpop.f32.mrf.mxu1  ;;  %v1031_v18 = vsel %vm293_vm6, %v1030_v16, -inf }
 0x4c7   :  { %1032 = vmax.xlane.f32.xlu1 %v1031_v18 }
 0x4c8   :  { %v3563_v19 = vpop.f32.mrf.mxu1 }
 0x4ca   :  { %v1135_v21 = vpop.f32.mrf.mxu1 }
 0x4cb   :  { %v1141_v26 = vmul.f32 0.35355338, %v1135_v21 }
 0x4cc   :  { %v3574_v22 = vpop.f32.mrf.mxu1 }
 0x4cd   :  { %v4282_v27 = vsel %vm4239_vm7, %v1141_v26, -1e+30 }
 0x4ce   :  { %v1138_v23 = vpop.f32.mrf.mxu1  ;;  %v1143_v28 = vsel %vm293_vm6, %v4282_v27, -inf }
 0x4d0   :  { %v3575_v24 = vpop.f32.mrf.mxu1 }
 0x4d5   :  { %466 = vrot.lane.b32.xlu0 %v4160_v61, %s4055_s23 }
 0x4d8   :  { %354 = vrot.lane.b32.xlu1 %v4160_v61, %s4043_s18 }
 0x4f4   :  { %1144 = vmax.xlane.f32.xlu0 %v1143_v28 }
 0x520   :  { %v344_v31 = vpop.xlane.xlu0 %343 }
 0x521   :  { %v345_v32 = vsub.f32 %v4245_v34, %v344_v31 }
 0x523   :  { %v346_v33 = vmul.f32 1.442695, %v345_v32 }
 0x525   :  { %3889 = vpow2.f32 %v346_v33 }
 0x528   :  { %v456_v35 = vpop.xlane.xlu1 %455 }
 0x529   :  { %v457_v36 = vsub.f32 %v453_v40, %v456_v35 }
 0x52b   :  { %v458_v8 = vmul.f32 1.442695, %v457_v36 }
 0x52d   :  { %3891 = vpow2.f32 %v458_v8 }
 0x530   :  { %v568_v37 = vpop.xlane.xlu0 %567 }
 0x531   :  { %v569_v38 = vsub.f32 %v565_v47, %v568_v37 }
 0x532   :  { %v4287_v39 = vpop.eup %3889 }
 0x533   :  { %v570_v41 = vmul.f32 1.442695, %v569_v38  ;;  %v348_v42 = vsel %vm293_vm6, %v4287_v39, 0.0 }
 0x534   :  { %349 = vadd.xlane.f32.xlu1 %v348_v42 }
 0x535   :  { %3893 = vpow2.f32 %v570_v41 }
 0x538   :  { %v680_v48 = vpop.xlane.xlu0 %679 }
 0x539   :  { %v681_v50 = vsub.f32 %v4257_v54, %v680_v48 }
 0x53a   :  { %v4291_v43 = vpop.eup %3891 }
 0x53b   :  { %v460_v34 = vsel %vm293_vm6, %v4291_v43, 0.0  ;;  %v682_v51 = vmul.f32 1.442695, %v681_v50 }
 0x53c   :  { %461 = vadd.xlane.f32.xlu0 %v460_v34 }
 0x53d   :  { %3895 = vpow2.f32 %v682_v51 }
 0x540   :  { %v809_v45 = vpop.xlane.xlu1 %808 }
 0x541   :  { %v810_v52 = vsub.f32 %v4263_v62, %v809_v45 }
 0x542   :  { %v4295_v44 = vpop.eup %3893 }
 0x543   :  { %v572_v40 = vsel %vm293_vm6, %v4295_v44, 0.0  ;;  %v811_v56 = vmul.f32 1.442695, %v810_v52 }
 0x544   :  { %573 = vadd.xlane.f32.xlu1 %v572_v40 }
 0x545   :  { %3897 = vpow2.f32 %v811_v56 }
 0x548   :  { %v921_v53 = vpop.xlane.xlu0 %920 }
 0x549   :  { %v922_v55 = vsub.f32 %v4269_v7, %v921_v53 }
 0x54b   :  { %v923_v58 = vmul.f32 1.442695, %v922_v55 }
 0x54c   :  { %v467_v5 = vpop.permute.xlu0 %466 }
 0x54d   :  { %3899 = vpow2.f32 %v923_v58  ;;  %v472_v19 = vsel %vm73_vm4, %v467_v5, 0 }
 0x550   :  { %v1033_v46 = vpop.xlane.xlu1 %1032 }
 0x551   :  { %v1034_v57 = vsub.f32 %v1030_v16, %v1033_v46 }
 0x552   :  { %578 = vrot.lane.b32.xlu0 %v4160_v61, %s4056_s24 }
 0x553   :  { %v1035_v59 = vmul.f32 1.442695, %v1034_v57 }
 0x554   :  { %v355_v47 = vpop.permute.xlu1 %354 }
 0x555   :  { %v360_v49 = vsel %vm73_vm4, %v355_v47, 0  ;;  %690 = vrot.lane.b32.xlu1 %v4160_v61, %s4057_s25  ;;  %3901 = vpow2.f32 %v1035_v59  ;;  %v3896_v61 = vpop.eup %3895 }
 0x556   :  { %3493 = vmatpush3.bf16.msra.mxu0 %v360_v49  ;;  %v684_v60 = vsel %vm293_vm6, %v3896_v61, 0.0  ;;  %v4309_v63 = vpop.eup %3897 }
 0x557   :  { %3504 = vmatprep.subr.bf16.mxu0 %v4046_v1  ;;  %v813_v62 = vsel %vm293_vm6, %v4309_v63, 0.0 }
 0x55a   :  { %v4311_v54 = vpop.eup %3899 }
 0x55b   :  { %v925_v3 = vsel %vm293_vm6, %v4311_v54, 0.0 }
 0x562   :  { %v4315_v0 = vpop.eup %3901 }
 0x563   :  { %v1037_v4 = vsel %vm293_vm6, %v4315_v0, 0.0 }
 0x571   :  { %685 = vadd.xlane.f32.xlu0 %v684_v60 }
 0x575   :  { %814 = vadd.xlane.f32.xlu0 %v813_v62 }
 0x579   :  { %926 = vadd.xlane.f32.xlu1 %v925_v3  ;;  %1038 = vadd.xlane.f32.xlu0 %v1037_v4 }
 0x57d   :  { %v1145_v6 = vpop.xlane.xlu0 %1144 }
 0x57e   :  { %v1146_v7 = vsub.f32 %v4282_v27, %v1145_v6 }
 0x580   :  { %v1147_v10 = vmul.f32 1.442695, %v1146_v7 }
 0x582   :  { %3903 = vpow2.f32 %v1147_v10 }
 0x58a   :  { %931 = vrot.lane.b32.xlu1 %v4166_v2, %s4055_s23 }
 0x58e   :  { %1043 = vrot.lane.b32.xlu1 %v4166_v2, %s4056_s24 }
 0x58f   :  { %v4326_v11 = vpop.eup %3903 }
 0x590   :  { %v1149_v12 = vsel %vm293_vm6, %v4326_v11, 0.0 }
 0x591   :  { %1150 = vadd.xlane.f32.xlu0 %v1149_v12 }
 0x592   :  { %1155 = vrot.lane.b32.xlu1 %v4166_v2, %s4057_s25 }
 0x5a7   :  { %819 = vrot.lane.b32.xlu0 %v4166_v2, %s4043_s18 }
 0x5bd   :  { %v350_v13 = vpop.xlane.xlu1 %349 }
 0x5be   :  { %3905 = vrcp.f32 %v350_v13 }
 0x5c5   :  { %v462_v14 = vpop.xlane.xlu0 %461 }
 0x5c6   :  { %3907 = vrcp.f32 %v462_v14 }
 0x5c9   :  { %v579_v22 = vpop.permute.xlu0 %578 }
 0x5ca   :  { %v584_v24 = vsel %vm73_vm4, %v579_v22, 0 }
 0x5cb   :  { %v3906_v15 = vpop.eup %3905 }
 0x5cc   :  { %v352_v16 = vmul.f32 %v3906_v15, %v4287_v39 }
 0x5cd   :  { %v574_v17 = vpop.xlane.xlu1 %573 }
 0x5ce   :  { %3909 = vrcp.f32 %v574_v17  ;;  %v353_v18 = vpack.c.bf16 %v352_v16, %v352_v16 }
 0x5d0   :  { %3495 = vmatmul.mubr.msk.bf16.vlgmr.msra.gmra.mxu0 %vm293_vm6, %v353_v18 }
 0x5d1   :  { %3505 = vmatpush3.bf16.msra.mxu0 %v472_v19  ;;  %3506 = vmatprep.mubr.msk.bf16.mxu0 %vm4047_vm0, %v4046_v1  ;;  %v691_v28 = vpop.permute.xlu1 %690 }
 0x5d2   :  { %3516 = vmatprep.subr.bf16.mxu0 %v4046_v1  ;;  %v696_v32 = vsel %vm73_vm4, %v691_v28, 0 }
 0x5d3   :  { %v3908_v2 = vpop.eup %3907 }
 0x5d4   :  { %v464_v21 = vmul.f32 %v3908_v2, %v4291_v43 }
 0x5d6   :  { %v465_v23 = vpack.c.bf16 %v464_v21, %v464_v21  ;;  %v3855_v21 = vld [vmem:[#allocation2 + $0x18] sm:$0xff]  }
 0x5d7   :  { %3583 = vmatpush3.bf16.msra.mxu1 %v3855_v21 }
 0x5d8   :  { %3507 = vmatmul.mubr.msk.bf16.vlgmr.msra.gmra.mxu0 %vm293_vm6, %v465_v23  ;;  %3584 = vmatprep.subr.bf16.mxu1 %v4046_v1 }
 0x5d9   :  { %3517 = vmatpush3.bf16.msra.mxu0 %v584_v24  ;;  %3518 = vmatprep.mubr.msk.bf16.mxu0 %vm4047_vm0, %v4046_v1 }
 0x5da   :  { %3528 = vmatprep.subr.bf16.mxu0 %v4046_v1 }
 0x5db   :  { %v3910_v26 = vpop.eup %3909 }
 0x5dc   :  { %v576_v27 = vmul.f32 %v3910_v26, %v4295_v44 }
 0x5de   :  { %v577_v31 = vpack.c.bf16 %v576_v27, %v576_v27  ;;  %v3856_v27 = vld [vmem:[#allocation2 + $0x10] sm:$0xff]  }
 0x5df   :  { %3585 = vmatpush3.bf16.msra.mxu1 %v3856_v27 }
 0x5e0   :  { %3519 = vmatmul.mubr.msk.bf16.vlgmr.msra.gmra.mxu0 %vm293_vm6, %v577_v31  ;;  %3598 = vmatprep.subr.bf16.mxu1 %v4046_v1 }
 0x5e1   :  { %3529 = vmatpush3.bf16.msra.mxu0 %v696_v32  ;;  %3530 = vmatprep.mubr.msk.bf16.mxu0 %vm4047_vm0, %v4046_v1 }
 0x5e2   :  { %3540 = vmatprep.subr.bf16.mxu0 %v4046_v1 }
 0x5fa   :  { %v686_v33 = vpop.xlane.xlu0 %685 }
 0x5fb   :  { %3911 = vrcp.f32 %v686_v33 }
 0x5fe   :  { %v815_v8 = vpop.xlane.xlu0 %814 }
 0x5ff   :  { %3913 = vrcp.f32 %v815_v8 }
 0x602   :  { %v927_v38 = vpop.xlane.xlu1 %926  ;;  %v1039_v39 = vpop.xlane.xlu0 %1038 }
 0x603   :  { %3915 = vrcp.f32 %v927_v38 }
 0x604   :  { %3917 = vrcp.f32 %v1039_v39 }
 0x606   :  { %v932_v40 = vpop.permute.xlu1 %931 }
 0x607   :  { %v937_v47 = vsel %vm73_vm4, %v932_v40, 0 }
 0x608   :  { %v3912_v35 = vpop.eup %3911 }
 0x609   :  { %v688_v36 = vmul.f32 %v3912_v35, %v3896_v61 }
 0x60a   :  { %v1044_v49 = vpop.permute.xlu1 %1043 }
 0x60b   :  { %v689_v37 = vpack.c.bf16 %v688_v36, %v688_v36  ;;  %v1049_v52 = vsel %vm73_vm4, %v1044_v49, 0 }
 0x60c   :  { %v3914_v41 = vpop.eup %3913 }
 0x60d   :  { %3531 = vmatmul.mubr.msk.bf16.vlgmr.msra.gmra.mxu0 %vm293_vm6, %v689_v37  ;;  %v817_v43 = vmul.f32 %v3914_v41, %v4309_v63 }
 0x60e   :  { %3542 = vmatprep.mubr.msk.bf16.mxu0 %vm4047_vm0, %v4046_v1  ;;  %v1156_v55 = vpop.permute.xlu1 %1155 }
 0x60f   :  { %v818_v45 = vpack.c.bf16 %v817_v43, %v817_v43  ;;  %v1161_v58 = vsel %vm73_vm4, %v1156_v55, 0 }
 0x610   :  { %v3916_v46 = vpop.eup %3915 }
 0x611   :  { %v929_v48 = vmul.f32 %v3916_v46, %v4311_v54  ;;  %v3918_v51 = vpop.eup %3917 }
 0x612   :  { %v1041_v53 = vmul.f32 %v3918_v51, %v4315_v0 }
 0x613   :  { %v930_v50 = vpack.c.bf16 %v929_v48, %v929_v48 }
 0x614   :  { %v1042_v56 = vpack.c.bf16 %v1041_v53, %v1041_v53 }
 0x61a   :  { %v1151_v42 = vpop.xlane.xlu0 %1150 }
 0x61b   :  { %3919 = vrcp.f32 %v1151_v42 }
 0x61e   :  { %v820_v34 = vpop.permute.xlu0 %819 }
 0x61f   :  { %v825_v44 = vsel %vm73_vm4, %v820_v34, 0 }
 0x620   :  { %3541 = vmatpush3.bf16.msra.mxu0 %v825_v44 }
 0x621   :  { %3552 = vmatprep.subr.bf16.mxu0 %v4046_v1 }
 0x623   :  { %3543 = vmatmul.mubr.msk.bf16.vlgmr.msra.gmra.mxu0 %vm293_vm6, %v818_v45 }
 0x624   :  { %3553 = vmatpush3.bf16.msra.mxu0 %v937_v47  ;;  %3554 = vmatprep.mubr.msk.bf16.mxu0 %vm4047_vm0, %v4046_v1 }
 0x625   :  { %3564 = vmatprep.subr.bf16.mxu0 %v4046_v1 }
 0x628   :  { %v3920_v57 = vpop.eup %3919 }
 0x629   :  { %v1153_v59 = vmul.f32 %v3920_v57, %v4326_v11 }
 0x62b   :  { %3555 = vmatmul.mubr.msk.bf16.vlgmr.msra.gmra.mxu0 %vm293_vm6, %v930_v50  ;;  %v1154_v61 = vpack.c.bf16 %v1153_v59, %v1153_v59 }
 0x62c   :  { %3565 = vmatpush3.bf16.msra.mxu0 %v1049_v52  ;;  %3566 = vmatprep.mubr.msk.bf16.mxu0 %vm4047_vm0, %v4046_v1 }
 0x62d   :  { %3576 = vmatprep.subr.bf16.mxu0 %v4046_v1 }
 0x633   :  { %3567 = vmatmul.mubr.msk.bf16.vlgmr.msra.gmra.mxu0 %vm293_vm6, %v1042_v56  ;;  %v3269_v56 = vld [vmem:[%s4831_s3 + $0x5] ss:$0 sm:$0xff] }
 0x634   :  { %3577 = vmatpush3.bf16.msra.mxu0 %v1161_v58  ;;  %3578 = vmatprep.mubr.msk.bf16.mxu0 %vm4047_vm0, %v4046_v1 }
 0x635   :  { %3590 = vmatprep.subr.bf16.mxu0 %v4046_v1 }
 0x63b   :  { %3579 = vmatmul.mubr.msk.bf16.vlgmr.msra.gmra.mxu0 %vm293_vm6, %v1154_v61 }
 0x63c   :  { %3594 = vmatprep.mubr.msk.bf16.mxu0 %vm4047_vm0, %v4046_v1 }
 0x690   :  { %v396_v60 = vpop.f32.mrf.mxu0 }
 0x692   :  { %v3496_v63 = vpop.f32.mrf.mxu0 }
 0x694   :  { %v399_v54 = vpop.f32.mrf.mxu0 }
 0x696   :  { %v3497_v62 = vpop.f32.mrf.mxu0 }
 0x698   :  { %v508_v0 = vpop.f32.mrf.mxu0 }
 0x69a   :  { %v3508_v3 = vpop.f32.mrf.mxu0 }
 0x69c   :  { %v511_v4 = vpop.f32.mrf.mxu0 }
 0x69e   :  { %v3509_v5 = vpop.f32.mrf.mxu0 }
 0x6a0   :  { %v620_v6 = vpop.f32.mrf.mxu0 }
 0x6a2   :  { %v3520_v7 = vpop.f32.mrf.mxu0 }
 0x6a4   :  { %v623_v10 = vpop.f32.mrf.mxu0 }
 0x6a6   :  { %v3521_v11 = vpop.f32.mrf.mxu0 }
 0x6cd   :  { %v732_v12 = vpop.f32.mrf.mxu0 }
 0x6cf   :  { %v3532_v13 = vpop.f32.mrf.mxu0 }
 0x6d1   :  { %v735_v14 = vpop.f32.mrf.mxu0 }
 0x6d2   :  { %v3857_v14 = vld [vmem:[#allocation2 + $0x28] sm:$0xff]  }
 0x6d3   :  { %v3533_v15 = vpop.f32.mrf.mxu0  ;;  %3591 = vmatpush3.bf16.msra.mxu0 %v3857_v14 }
 0x6d4   :  { %v3858_v15 = vld [vmem:[#allocation2 + $0x20] sm:$0xff]   ;;  %3592 = vmatprep.subr.bf16.mxu0 %v4046_v1 }
 0x6d7   :  { %3593 = vmatpush3.bf16.msra.mxu0 %v3858_v15 }
 0x6d8   :  { %3618 = vmatprep.subr.bf16.mxu0 %v4046_v1 }
 0x6e3   :  { %v861_v16 = vpop.f32.mrf.mxu0 }
 0x6e5   :  { %v3544_v17 = vpop.f32.mrf.mxu0 }
 0x6e7   :  { %v864_v18 = vpop.f32.mrf.mxu0 }
 0x6e9   :  { %v3545_v19 = vpop.f32.mrf.mxu0 }
 0x6eb   :  { %v973_v2 = vpop.f32.mrf.mxu0 }
 0x6ec   :  { %v3817_v22 = vpack.i.bf16 %v973_v2, %v508_v0 }
 0x6ed   :  { %v3556_v23 = vpop.f32.mrf.mxu0 }
 0x6ee   :  { %3818 = vrot.lane.b32.xlu1 %v3817_v22, %s4058_s2 }
 0x6ef   :  { %v976_v24 = vpop.f32.mrf.mxu0 }
 0x6f0   :  { %v3270_v24 = vld [vmem:[%s4831_s3 + $0x2] ss:$0 sm:$0xff] }
 0x6f1   :  { %v3557_v26 = vpop.f32.mrf.mxu0 }
 0x6f3   :  { %v1085_v28 = vpop.f32.mrf.mxu0 }
 0x6f4   :  { %v3822_v31 = vpack.i.bf16 %v1085_v28, %v620_v6 }
 0x6f5   :  { %v3568_v32 = vpop.f32.mrf.mxu0 }
 0x6f6   :  { %3823 = vrot.lane.b32.xlu1 %v3822_v31, %s4059_s26  ;;  %v3271_v31 = vld [vmem:[%s4831_s3 + $0x3] ss:$0 sm:$0xff] }
 0x6f7   :  { %v1088_v33 = vpop.f32.mrf.mxu0 }
 0x6f9   :  { %v3569_v35 = vpop.f32.mrf.mxu0 }
 0x6fb   :  { %v1197_v36 = vpop.f32.mrf.mxu0 }
 0x6fc   :  { %v3827_v8 = vpack.i.bf16 %v1197_v36, %v732_v12 }
 0x6fd   :  { %v3580_v37 = vpop.f32.mrf.mxu0 }
 0x6fe   :  { %3828 = vrot.lane.b32.xlu0 %v3827_v8, %s4060_s27  ;;  %v3859_v8 = vld [vmem:[#allocation2 + $0x68] sm:$0xff]   ;;  %v3860_v37 = vld [vmem:[#allocation2 + $0x60] sm:$0xff]  }
 0x6ff   :  { %v1200_v38 = vpop.f32.mrf.mxu0 }
 0x700   :  { %v3861_v38 = vld [vmem:[#allocation2 + $0x58] sm:$0xff]  }
 0x701   :  { %v3581_v39 = vpop.f32.mrf.mxu0 }
 0x702   :  { %v3862_v39 = vld [vmem:[#allocation2 + $0x50] sm:$0xff]  }
 0x760   :  { %v3819_v41 = vpop.permute.xlu1 %3818 }
 0x761   :  { %v3821_v43 = vunpack.i.h.bf16 %v3819_v41  ;;  %v3820_v34 = vunpack.i.l.bf16 %v3819_v41  ;;  %v3863_v41 = vld [vmem:[#allocation2 + $0x48] sm:$0xff]  }
 0x763   :  { %v1215_v46 = vsel %vm293_vm6, %v861_v16, %v3821_v43  ;;  %v750_v47 = vsel %vm293_vm6, %v396_v60, %v3820_v34  ;;  %v3865_v43 = vld [vmem:[#allocation2 + $0x38] sm:$0xff]   ;;  %v3866_v34 = vld [vmem:[#allocation2 + $0x30] sm:$0xff]  }
 0x768   :  { %v3824_v42 = vpop.permute.xlu1 %3823 }
 0x769   :  { %v3826_v44 = vunpack.i.h.bf16 %v3824_v42  ;;  %v3825_v40 = vunpack.i.l.bf16 %v3824_v42  ;;  %v3864_v42 = vld [vmem:[#allocation2 + $0x40] sm:$0xff]  }
 0x76b   :  { %v1216_v50 = vsel %vm751_vm8, %v1215_v46, %v3826_v44  ;;  %v752_v51 = vsel %vm751_vm8, %v750_v47, %v3825_v40  ;;  %v3272_v44 = vld [vmem:[%s4831_s3 + $0x6] ss:$0 sm:$0xff] }
 0x770   :  { %v3829_v45 = vpop.permute.xlu0 %3828 }
 0x771   :  { %v3831_v48 = vunpack.i.h.bf16 %v3829_v45  ;;  %v3830_v49 = vunpack.i.l.bf16 %v3829_v45 }
 0x773   :  { %v1217_v52 = vsel %vm753_vm9, %v1216_v50, %v3831_v48  ;;  %v754_v53 = vsel %vm753_vm9, %v752_v51, %v3830_v49 }
 0x774   :  { %v1218_v55 = vpack.c.bf16 %v1217_v52, %v754_v53 }
 0x776   :  { %3587 = vmatmul.mubr.msk.bf16.vlgmr.msra.gmra.mxu1 %vm188_vm5, %v1218_v55 }
 0x777   :  { %3614 = vmatprep.mubr.msk.bf16.mxu1 %vm4047_vm0, %v4046_v1  ;;  %3599 = vmatpush3.bf16.msra.mxu1 %v3859_v8 }
 0x778   :  { %3600 = vmatprep.subr.bf16.mxu1 %v4046_v1 }
 0x77b   :  { %3601 = vmatpush3.bf16.msra.mxu1 %v3860_v37 }
 0x77c   :  { %3602 = vmatprep.subr.bf16.mxu1 %v4046_v1 }
 0x77f   :  { %3603 = vmatpush3.bf16.msra.mxu1 %v3861_v38 }
 0x780   :  { %3604 = vmatprep.subr.bf16.mxu1 %v4046_v1 }
 0x783   :  { %3605 = vmatpush3.bf16.msra.mxu1 %v3862_v39 }
 0x784   :  { %3606 = vmatprep.subr.bf16.mxu1 %v4046_v1 }
 0x787   :  { %3607 = vmatpush3.bf16.msra.mxu1 %v3863_v41 }
 0x788   :  { %3608 = vmatprep.subr.bf16.mxu1 %v4046_v1 }
 0x78b   :  { %3609 = vmatpush3.bf16.msra.mxu1 %v3864_v42  ;;  %v3293_v42 = vld [vmem:[%s4831_s3 + $0x8] ss:$0 sm:$0xff] }
 0x78c   :  { %3610 = vmatprep.subr.bf16.mxu1 %v4046_v1 }
 0x78f   :  { %3611 = vmatpush3.bf16.msra.mxu1 %v3865_v43 }
 0x790   :  { %3612 = vmatprep.subr.bf16.mxu1 %v4046_v1 }
 0x793   :  { %3613 = vmatpush3.bf16.msra.mxu1 %v3866_v34 }
 0x794   :  { %3644 = vmatprep.subr.bf16.mxu1 %v4046_v1 }
 0x836   :  { %v1268_v57 = vpop.f32.mrf.mxu1 }
 0x837   :  { %v1275_v58 = vadd.f32 %v1268_v57, %v4134_v20 }
 0x838   :  { %v3588_v59 = vpop.f32.mrf.mxu1 }
 0x839   :  { %v4397_v61 = vadd.f32 %v3269_v56, %v1275_v58 }
 0x83a   :  { %v1271_v60 = vpop.f32.mrf.mxu1 }
 0x83b   :  { %v1276_v63 = vadd.f32 %v1271_v60, %v4138_v25  ;;  %v1283_v54 = vsel %vm188_vm5, %v4397_v61, 0.0 }
 0x83c   :  { %1284 = vadd.xlane.f32.xlu1 %v1283_v54  ;;  %v3589_v62 = vpop.f32.mrf.mxu1 }
 0x83d   :  { %v4402_v0 = vadd.f32 %v3269_v56, %v1276_v63 }
 0x83f   :  { %v1286_v3 = vsel %vm188_vm5, %v4402_v0, 0.0 }
 0x840   :  { %1287 = vadd.xlane.f32.xlu0 %v1286_v3 }
 0x8c5   :  { %v1285_v4 = vpop.xlane.xlu1 %1284 }
 0x8c6   :  { %v1289_v5 = vmul.f32 0.03125, %v1285_v4 }
 0x8c8   :  { %v1291_v20 = vsub.f32 %v4397_v61, %v1289_v5 }
 0x8c9   :  { %v1288_v6 = vpop.xlane.xlu0 %1287 }
 0x8ca   :  { %v1290_v7 = vmul.f32 0.03125, %v1288_v6  ;;  %v1293_v10 = vmul.f32 %v1291_v20, %v1291_v20 }
 0x8cc   :  { %v1292_v25 = vsub.f32 %v4402_v0, %v1290_v7  ;;  %v1295_v11 = vsel %vm188_vm5, %v1293_v10, 0.0  ;;  %v3284_v10 = vld [vmem:[%s4831_s3 + $0x7] ss:$0 sm:$0xff] }
 0x8cd   :  { %1296 = vadd.xlane.f32.xlu0 %v1295_v11 }
 0x8ce   :  { %v1294_v12 = vmul.f32 %v1292_v25, %v1292_v25 }
 0x8d0   :  { %v1298_v13 = vsel %vm188_vm5, %v1294_v12, 0.0 }
 0x8d1   :  { %1299 = vadd.xlane.f32.xlu1 %v1298_v13 }
 0x956   :  { %v1297_v16 = vpop.xlane.xlu0 %1296 }
 0x957   :  { %v1301_v17 = vmul.f32 0.03125, %v1297_v16 }
 0x959   :  { %v1303_v18 = vadd.f32 1e-05, %v1301_v17 }
 0x95a   :  { %v1300_v19 = vpop.xlane.xlu1 %1299 }
 0x95b   :  { %3921 = vrsqrt.f32 %v1303_v18  ;;  %v1302_v2 = vmul.f32 0.03125, %v1300_v19 }
 0x95d   :  { %v1304_v21 = vadd.f32 1e-05, %v1302_v2 }
 0x95f   :  { %3923 = vrsqrt.f32 %v1304_v21 }
 0x968   :  { %v3922_v22 = vpop.eup %3921 }
 0x969   :  { %v1307_v23 = vmul.f32 %v3922_v22, %v1291_v20 }
 0x96b   :  { %v1313_v28 = vmul.f32 %v3270_v24, %v1307_v23 }
 0x96c   :  { %v3924_v26 = vpop.eup %3923 }
 0x96d   :  { %v1308_v27 = vmul.f32 %v3924_v26, %v1292_v25  ;;  %v1319_v33 = vadd.f32 %v3271_v31, %v1313_v28 }
 0x96f   :  { %v1314_v32 = vmul.f32 %v3270_v24, %v1308_v27 }
 0x971   :  { %v1320_v35 = vadd.f32 %v3271_v31, %v1314_v32  ;;  %v3867_v31 = vld [vmem:[#allocation2 + $0x78] sm:$0xff]   ;;  %v3868_v32 = vld [vmem:[#allocation2 + $0x70] sm:$0xff]  }
 0x973   :  { %v1321_v36 = vpack.c.bf16 %v1320_v35, %v1319_v33 }
 0x975   :  { %3595 = vmatmul.mubr.msk.bf16.vlgmr.msra.gmra.mxu0 %vm188_vm5, %v1321_v36 }
 0x976   :  { %3622 = vmatprep.mubr.msk.bf16.mxu0 %vm4047_vm0, %v4046_v1  ;;  %3619 = vmatpush3.bf16.msra.mxu0 %v3867_v31 }
 0x977   :  { %3620 = vmatprep.subr.bf16.mxu0 %v4046_v1 }
 0x97a   :  { %3621 = vmatpush3.bf16.msra.mxu0 %v3868_v32 }
 0x97b   :  { %3626 = vmatprep.subr.bf16.mxu0 %v4046_v1 }
 0xa35   :  { %v1375_v40 = vpop.f32.mrf.mxu0 }
 0xa36   :  { %v1376_v45 = vadd.f32 %v3272_v44, %v1375_v40  ;;  %v3294_v40 = vld [vmem:[%s4831_s3 + $0x9] ss:$0 sm:$0xff] }
 0xa37   :  { %v3596_v46 = vpop.f32.mrf.mxu0 }
 0xa38   :  { %v1384_v47 = vmul.f32 0.044715, %v1376_v45  ;;  %v1382_v3 = vmul.f32 0.5, %v1376_v45 }
 0xa39   :  { %v1378_v48 = vpop.f32.mrf.mxu0 }
 0xa3a   :  { %v1386_v49 = vmul.f32 %v1384_v47, %v1376_v45  ;;  %v1379_v50 = vadd.f32 %v3272_v44, %v1378_v48 }
 0xa3b   :  { %v3597_v51 = vpop.f32.mrf.mxu0 }
 0xa3c   :  { %v1388_v52 = vmul.f32 %v1386_v49, %v1376_v45  ;;  %v1385_v53 = vmul.f32 0.044715, %v1379_v50  ;;  %v1383_v4 = vmul.f32 0.5, %v1379_v50  ;;  %v3295_v49 = vld [vmem:[%s4831_s3 + $0xc] ss:$0 sm:$0xff] }
 0xa3e   :  { %v1390_v55 = vadd.f32 %v1388_v52, %v1376_v45  ;;  %v1387_v56 = vmul.f32 %v1385_v53, %v1379_v50 }
 0xa40   :  { %v1392_v57 = vmul.f32 0.7978846, %v1390_v55  ;;  %v1389_v58 = vmul.f32 %v1387_v56, %v1379_v50 }
 0xa42   :  { %3925 = vtanh.f32 %v1392_v57  ;;  %v1391_v59 = vadd.f32 %v1389_v58, %v1379_v50 }
 0xa44   :  { %v1393_v60 = vmul.f32 0.7978846, %v1391_v59 }
 0xa46   :  { %3927 = vtanh.f32 %v1393_v60 }
 0xa4f   :  { %v3926_v63 = vpop.eup %3925 }
 0xa50   :  { %v1396_v54 = vadd.f32 1.0, %v3926_v63 }
 0xa52   :  { %v1398_v20 = vmul.f32 %v1396_v54, %v1382_v3 }
 0xa53   :  { %v3928_v62 = vpop.eup %3927 }
 0xa54   :  { %v1397_v5 = vadd.f32 1.0, %v3928_v62 }
 0xa56   :  { %v1399_v6 = vmul.f32 %v1397_v5, %v1383_v4 }
 0xa58   :  { %v1400_v7 = vpack.c.bf16 %v1399_v6, %v1398_v20 }
 0xa5a   :  { %3615 = vmatmul.mubr.bf16.vlgmr.msra.gmra.mxu1 %v1400_v7 }
 0xa5b   :  { %3646 = vmatprep.mubr.msk.bf16.mxu1 %vm4047_vm0, %v4046_v1 }
 0xb1a   :  { %v1483_v25 = vpop.f32.mrf.mxu1 }
 0xb1b   :  { %v1490_v11 = vadd.f32 %v1483_v25, %v4397_v61 }
 0xb1c   :  { %v3616_v12 = vpop.f32.mrf.mxu1 }
 0xb1d   :  { %v4438_v13 = vadd.f32 %v3284_v10, %v1490_v11 }
 0xb1e   :  { %v1486_v14 = vpop.f32.mrf.mxu1 }
 0xb1f   :  { %v1491_v15 = vadd.f32 %v1486_v14, %v4402_v0  ;;  %v1536_v16 = vsel %vm188_vm5, %v4438_v13, 0.0 }
 0xb20   :  { %1537 = vadd.xlane.f32.xlu0 %v1536_v16  ;;  %v3617_v17 = vpop.f32.mrf.mxu1 }
 0xb21   :  { %v4443_v18 = vadd.f32 %v3284_v10, %v1491_v15 }
 0xb23   :  { %v1539_v19 = vsel %vm188_vm5, %v4443_v18, 0.0 }
 0xb24   :  { %1540 = vadd.xlane.f32.xlu1 %v1539_v19 }
 0xba9   :  { %v1538_v2 = vpop.xlane.xlu0 %1537 }
 0xbaa   :  { %v1542_v21 = vmul.f32 0.03125, %v1538_v2 }
 0xbac   :  { %v1544_v61 = vsub.f32 %v4438_v13, %v1542_v21 }
 0xbad   :  { %v1541_v22 = vpop.xlane.xlu1 %1540 }
 0xbae   :  { %v1543_v23 = vmul.f32 0.03125, %v1541_v22  ;;  %v1546_v24 = vmul.f32 %v1544_v61, %v1544_v61 }
 0xbb0   :  { %v1545_v0 = vsub.f32 %v4443_v18, %v1543_v23  ;;  %v1548_v26 = vsel %vm188_vm5, %v1546_v24, 0.0 }
 0xbb1   :  { %1549 = vadd.xlane.f32.xlu0 %v1548_v26 }
 0xbb2   :  { %v1547_v27 = vmul.f32 %v1545_v0, %v1545_v0 }
 0xbb4   :  { %v1551_v28 = vsel %vm188_vm5, %v1547_v27, 0.0 }
 0xbb5   :  { %1552 = vadd.xlane.f32.xlu1 %v1551_v28 }
 0xc3a   :  { %v1550_v33 = vpop.xlane.xlu0 %1549 }
 0xc3b   :  { %v1554_v35 = vmul.f32 0.03125, %v1550_v33 }
 0xc3d   :  { %v1556_v36 = vadd.f32 1e-05, %v1554_v35 }
 0xc3e   :  { %v1553_v8 = vpop.xlane.xlu1 %1552 }
 0xc3f   :  { %3929 = vrsqrt.f32 %v1556_v36  ;;  %v1555_v37 = vmul.f32 0.03125, %v1553_v8 }
 0xc41   :  { %v1557_v38 = vadd.f32 1e-05, %v1555_v37 }
 0xc43   :  { %3931 = vrsqrt.f32 %v1557_v38 }
 0xc4c   :  { %v3930_v39 = vpop.eup %3929 }
 0xc4d   :  { %v1560_v41 = vmul.f32 %v3930_v39, %v1544_v61 }
 0xc4f   :  { %v1566_v44 = vmul.f32 %v3293_v42, %v1560_v41 }
 0xc50   :  { %v3932_v43 = vpop.eup %3931 }
 0xc51   :  { %v1561_v34 = vmul.f32 %v3932_v43, %v1545_v0  ;;  %v1572_v46 = vadd.f32 %v3294_v40, %v1566_v44 }
 0xc53   :  { %v1567_v45 = vmul.f32 %v3293_v42, %v1561_v34 }
 0xc55   :  { %v1573_v47 = vadd.f32 %v3294_v40, %v1567_v45 }
 0xc57   :  { %v1574_v48 = vpack.c.bf16 %v1573_v47, %v1572_v46 }
 0xc59   :  { %3623 = vmatmul.mubr.msk.bf16.vlgmr.msra.gmra.mxu0 %vm188_vm5, %v1574_v48 }
 0xc5a   :  { %3628 = vmatprep.mubr.msk.bf16.mxu0 %vm4047_vm0, %v4046_v1 }
 0xd19   :  { %v1628_v50 = vpop.f32.mrf.mxu0 }
 0xd1a   :  { %v1629_v51 = vadd.f32 %v3295_v49, %v1628_v50 }
 0xd1b   :  { %v3624_v52 = vpop.f32.mrf.mxu0 }
 0xd1c   :  { %v4465_v53 = vpack.c.bf16 %v1629_v51, %v1629_v51 }
 0xd1d   :  { %v1631_v55 = vpop.f32.mrf.mxu0 }
 0xd1e   :  { %1637 = vrot.lane.b32.xlu0 %v4465_v53, %s4049_s16  ;;  %v1632_v57 = vadd.f32 %v3295_v49, %v1631_v55 }
 0xd1f   :  { %v3625_v56 = vpop.f32.mrf.mxu0 }
 0xd20   :  { %v4477_v58 = vpack.c.bf16 %v1632_v57, %v1632_v57 }
 0xd22   :  { %1749 = vrot.lane.b32.xlu0 %v4465_v53, %s4050_s17 }
 0xd26   :  { %1747 = vrot.lane.b32.xlu0 %v4465_v53, %s4052_s20 }
 0xd2a   :  { %1859 = vrot.lane.b32.xlu0 %v4465_v53, %s4048_s15 }
 0xd2e   :  { %1971 = vrot.lane.b32.xlu0 %v4465_v53, %s4054_s22 }
 0xd32   :  { %2212 = vrot.lane.b32.xlu0 %v4477_v58, %s4050_s17 }
 0xd36   :  { %2324 = vrot.lane.b32.xlu0 %v4477_v58, %s4051_s19 }
 0xd3a   :  { %2436 = vrot.lane.b32.xlu0 %v4477_v58, %s4053_s21 }
 0xd90   :  { %v1638_v59 = vpop.permute.xlu0 %1637 }
 0xd91   :  { %v1643_v60 = vsel %vm293_vm6, %v1638_v59, 0 }
 0xd92   :  { %3627 = vmatpush3.bf16.xpose.msra.mxu0 %v1643_v60 }
 0xd93   :  { %3632 = vmatprep.subr.bf16.mxu0 %v4046_v1 }
 0xd94   :  { %v1750_v19 = vpop.permute.xlu0 %1749 }
 0xd95   :  { %v1755_v21 = vsel %vm293_vm6, %v1750_v19, 0 }
 0xd98   :  { %v1748_v22 = vpop.permute.xlu0 %1747 }
 0xd99   :  { %3629 = vmatmul.mubr.msk.bf16.vlgmr.msra.gmra.mxu0 %vm293_vm6, %v4465_v53 }
 0xd9a   :  { %3634 = vmatprep.mubr.msk.bf16.mxu0 %vm4047_vm0, %v4046_v1 }
 0xd9c   :  { %v1860_v0 = vpop.permute.xlu0 %1859 }
 0xda0   :  { %v1972_v28 = vpop.permute.xlu0 %1971 }
 0xda4   :  { %v2213_v32 = vpop.permute.xlu0 %2212 }
 0xda5   :  { %v2218_v33 = vsel %vm293_vm6, %v2213_v32, 0 }
 0xda8   :  { %v2325_v35 = vpop.permute.xlu0 %2324 }
 0xda9   :  { %v2330_v8 = vsel %vm293_vm6, %v2325_v35, 0 }
 0xdac   :  { %v2437_v37 = vpop.permute.xlu0 %2436 }
 0xdad   :  { %v2442_v39 = vsel %vm293_vm6, %v2437_v37, 0 }
 0xe59   :  { %v1679_v63 = vpop.f32.mrf.mxu0 }
 0xe5a   :  { %v1685_v54 = vmul.f32 0.35355338, %v1679_v63 }
 0xe5b   :  { %v3630_v62 = vpop.f32.mrf.mxu0 }
 0xe5c   :  { %v1686_v3 = vsel %vm4239_vm7, %v1685_v54, -1e+30 }
 0xe5d   :  { %v1682_v4 = vpop.f32.mrf.mxu0  ;;  %v1687_v5 = vsel %vm293_vm6, %v1686_v3, -inf }
 0xe5e   :  { %1688 = vmax.xlane.f32.xlu1 %v1687_v5 }
 0xe5f   :  { %v3631_v20 = vpop.f32.mrf.mxu0 }
 0xee7   :  { %v1689_v6 = vpop.xlane.xlu1 %1688 }
 0xee8   :  { %v1690_v7 = vsub.f32 %v1686_v3, %v1689_v6 }
 0xeea   :  { %v1691_v10 = vmul.f32 1.442695, %v1690_v7 }
 0xeec   :  { %3933 = vpow2.f32 %v1691_v10 }
 0xef9   :  { %v3934_v25 = vpop.eup %3933 }
 0xefa   :  { %v1693_v11 = vsel %vm293_vm6, %v3934_v25, 0.0 }
 0xefb   :  { %1694 = vadd.xlane.f32.xlu1 %v1693_v11 }
 0xf0c   :  { %1699 = vrot.lane.b32.xlu1 %v4465_v53, %s4043_s18 }
 0xf10   :  { %1861 = vrot.lane.b32.xlu1 %v4465_v53, %s4051_s19 }
 0xf14   :  { %1973 = vrot.lane.b32.xlu1 %v4465_v53, %s4053_s21 }
 0xf18   :  { %2100 = vrot.lane.b32.xlu1 %v4477_v58, %s4049_s16 }
 0xf1c   :  { %2210 = vrot.lane.b32.xlu1 %v4477_v58, %s4052_s20 }
 0xf20   :  { %2322 = vrot.lane.b32.xlu1 %v4477_v58, %s4048_s15 }
 0xf24   :  { %2434 = vrot.lane.b32.xlu1 %v4477_v58, %s4054_s22 }
 0xf84   :  { %v1695_v12 = vpop.xlane.xlu1 %1694 }
 0xf85   :  { %3935 = vrcp.f32 %v1695_v12 }
 0xf88   :  { %v1700_v14 = vpop.permute.xlu1 %1699 }
 0xf89   :  { %v1705_v15 = vsel %vm73_vm4, %v1700_v14, 0 }
 0xf8a   :  { %3633 = vmatpush3.bf16.msra.mxu0 %v1705_v15 }
 0xf8b   :  { %3638 = vmatprep.subr.bf16.mxu0 %v4046_v1 }
 0xf8c   :  { %v1862_v61 = vpop.permute.xlu1 %1861 }
 0xf8d   :  { %v1867_v23 = vsel %vm293_vm6, %v1862_v61, 0 }
 0xf90   :  { %v1974_v24 = vpop.permute.xlu1 %1973 }
 0xf91   :  { %v1979_v26 = vsel %vm293_vm6, %v1974_v24, 0 }
 0xf92   :  { %v3936_v16 = vpop.eup %3935 }
 0xf93   :  { %v1697_v17 = vmul.f32 %v3936_v16, %v3934_v25 }
 0xf94   :  { %v2101_v27 = vpop.permute.xlu1 %2100 }
 0xf95   :  { %v1698_v2 = vpack.c.bf16 %v1697_v17, %v1697_v17  ;;  %v2106_v31 = vsel %vm293_vm6, %v2101_v27, 0 }
 0xf97   :  { %3635 = vmatmul.mubr.msk.bf16.vlgmr.msra.gmra.mxu0 %vm293_vm6, %v1698_v2 }
 0xf98   :  { %3639 = vmatpush3.bf16.xpose.msra.mxu0 %v1755_v21  ;;  %3640 = vmatprep.mubr.msk.bf16.mxu0 %vm4047_vm0, %v4046_v1  ;;  %v2211_v36 = vpop.permute.xlu1 %2210 }
 0xf99   :  { %3650 = vmatprep.subr.bf16.mxu0 %v4046_v1 }
 0xf9c   :  { %v2323_v38 = vpop.permute.xlu1 %2322 }
 0xf9f   :  { %3641 = vmatmul.mubr.msk.bf16.vlgmr.msra.gmra.mxu0 %vm293_vm6, %v1748_v22 }
 0xfa0   :  { %3651 = vmatpush3.bf16.xpose.msra.mxu0 %v1867_v23  ;;  %3652 = vmatprep.mubr.msk.bf16.mxu0 %vm4047_vm0, %v4046_v1  ;;  %v2435_v41 = vpop.permute.xlu1 %2434 }
 0xfa1   :  { %3662 = vmatprep.subr.bf16.mxu0 %v4046_v1 }
 0xfa7   :  { %3653 = vmatmul.mubr.msk.bf16.vlgmr.msra.gmra.mxu0 %vm293_vm6, %v1860_v0 }
 0xfa8   :  { %3663 = vmatpush3.bf16.xpose.msra.mxu0 %v1979_v26  ;;  %3664 = vmatprep.mubr.msk.bf16.mxu0 %vm4047_vm0, %v4046_v1 }
 0xfa9   :  { %3674 = vmatprep.subr.bf16.mxu0 %v4046_v1 }
 0xfaf   :  { %3665 = vmatmul.mubr.msk.bf16.vlgmr.msra.gmra.mxu0 %vm293_vm6, %v1972_v28 }
 0xfb0   :  { %3675 = vmatpush3.bf16.xpose.msra.mxu0 %v2106_v31  ;;  %3676 = vmatprep.mubr.msk.bf16.mxu0 %vm4047_vm0, %v4046_v1 }
 0xfb1   :  { %3686 = vmatprep.subr.bf16.mxu0 %v4046_v1 }
 0xfb7   :  { %3677 = vmatmul.mubr.msk.bf16.vlgmr.msra.gmra.mxu0 %vm293_vm6, %v4477_v58 }
 0xfb8   :  { %3687 = vmatpush3.bf16.xpose.msra.mxu0 %v2218_v33  ;;  %3688 = vmatprep.mubr.msk.bf16.mxu0 %vm4047_vm0, %v4046_v1 }
 0xfb9   :  { %3698 = vmatprep.subr.bf16.mxu0 %v4046_v1 }
 0xfbf   :  { %3689 = vmatmul.mubr.msk.bf16.vlgmr.msra.gmra.mxu0 %vm293_vm6, %v2211_v36 }
 0xfc0   :  { %3699 = vmatpush3.bf16.xpose.msra.mxu0 %v2330_v8  ;;  %3700 = vmatprep.mubr.msk.bf16.mxu0 %vm4047_vm0, %v4046_v1 }
 0xfc1   :  { %3710 = vmatprep.subr.bf16.mxu0 %v4046_v1 }
 0xfc7   :  { %3701 = vmatmul.mubr.msk.bf16.vlgmr.msra.gmra.mxu0 %vm293_vm6, %v2323_v38 }
 0xfc8   :  { %3711 = vmatpush3.bf16.xpose.msra.mxu0 %v2442_v39  ;;  %3712 = vmatprep.mubr.msk.bf16.mxu0 %vm4047_vm0, %v4046_v1 }
 0xfc9   :  { %3722 = vmatprep.subr.bf16.mxu0 %v4046_v1 }
 0xfcf   :  { %3713 = vmatmul.mubr.msk.bf16.vlgmr.msra.gmra.mxu0 %vm293_vm6, %v2435_v41 }
 0xfd0   :  { %3726 = vmatprep.mubr.msk.bf16.mxu0 %vm4047_vm0, %v4046_v1 }
0x1057   :  { %v4550_v42 = vpop.f32.mrf.mxu0 }
0x1059   :  { %v3636_v43 = vpop.f32.mrf.mxu0 }
0x105b   :  { %v1744_v34 = vpop.f32.mrf.mxu0 }
0x105d   :  { %v3637_v44 = vpop.f32.mrf.mxu0 }
0x105f   :  { %v1791_v40 = vpop.f32.mrf.mxu0 }
0x1060   :  { %v1797_v45 = vmul.f32 0.35355338, %v1791_v40 }
0x1061   :  { %v3642_v46 = vpop.f32.mrf.mxu0 }
0x1062   :  { %v1798_v47 = vsel %vm4239_vm7, %v1797_v45, -1e+30 }
0x1063   :  { %v1794_v48 = vpop.f32.mrf.mxu0  ;;  %v1799_v49 = vsel %vm293_vm6, %v1798_v47, -inf }
0x1064   :  { %1800 = vmax.xlane.f32.xlu0 %v1799_v49 }
0x1065   :  { %v3643_v50 = vpop.f32.mrf.mxu0 }
0x1067   :  { %v1903_v51 = vpop.f32.mrf.mxu0 }
0x1068   :  { %v1909_v52 = vmul.f32 0.35355338, %v1903_v51 }
0x1069   :  { %v3654_v55 = vpop.f32.mrf.mxu0 }
0x106a   :  { %v1910_v56 = vsel %vm4239_vm7, %v1909_v52, -1e+30 }
0x106b   :  { %v1906_v57 = vpop.f32.mrf.mxu0  ;;  %v1911_v59 = vsel %vm293_vm6, %v1910_v56, -inf }
0x106c   :  { %1912 = vmax.xlane.f32.xlu1 %v1911_v59 }
0x106d   :  { %v3655_v60 = vpop.f32.mrf.mxu0 }
0x106f   :  { %v2015_v63 = vpop.f32.mrf.mxu0 }
0x1070   :  { %v2021_v54 = vmul.f32 0.35355338, %v2015_v63 }
0x1071   :  { %v3666_v62 = vpop.f32.mrf.mxu0 }
0x1072   :  { %v2022_v3 = vsel %vm4239_vm7, %v2021_v54, -1e+30 }
0x1073   :  { %v2018_v4 = vpop.f32.mrf.mxu0  ;;  %v2023_v5 = vsel %vm293_vm6, %v2022_v3, -inf }
0x1074   :  { %2024 = vmax.xlane.f32.xlu0 %v2023_v5 }
0x1075   :  { %v3667_v20 = vpop.f32.mrf.mxu0 }
0x1077   :  { %v2142_v6 = vpop.f32.mrf.mxu0 }
0x1078   :  { %v2148_v7 = vmul.f32 0.35355338, %v2142_v6 }
0x1079   :  { %v3678_v10 = vpop.f32.mrf.mxu0 }
0x107a   :  { %v2149_v25 = vsel %vm4239_vm7, %v2148_v7, -1e+30 }
0x107b   :  { %v2145_v11 = vpop.f32.mrf.mxu0  ;;  %v2150_v12 = vsel %vm293_vm6, %v2149_v25, -inf }
0x107c   :  { %2151 = vmax.xlane.f32.xlu0 %v2150_v12 }
0x107d   :  { %v3679_v14 = vpop.f32.mrf.mxu0 }
0x107f   :  { %v2254_v15 = vpop.f32.mrf.mxu0 }
0x1080   :  { %v2260_v16 = vmul.f32 0.35355338, %v2254_v15 }
0x1081   :  { %v3690_v17 = vpop.f32.mrf.mxu0 }
0x1082   :  { %v2261_v19 = vsel %vm4239_vm7, %v2260_v16, -1e+30 }
0x1083   :  { %v2257_v2 = vpop.f32.mrf.mxu0  ;;  %v2262_v21 = vsel %vm293_vm6, %v2261_v19, -inf }
0x1084   :  { %2263 = vmax.xlane.f32.xlu1 %v2262_v21 }
0x1085   :  { %v3691_v61 = vpop.f32.mrf.mxu0 }
0x1087   :  { %v2366_v22 = vpop.f32.mrf.mxu0 }
0x1088   :  { %v2372_v23 = vmul.f32 0.35355338, %v2366_v22 }
0x1089   :  { %v3702_v24 = vpop.f32.mrf.mxu0 }
0x108a   :  { %v2373_v0 = vsel %vm4239_vm7, %v2372_v23, -1e+30 }
0x108b   :  { %v2369_v26 = vpop.f32.mrf.mxu0  ;;  %v2374_v27 = vsel %vm293_vm6, %v2373_v0, -inf }
0x108c   :  { %2375 = vmax.xlane.f32.xlu0 %v2374_v27 }
0x108d   :  { %v3703_v28 = vpop.f32.mrf.mxu0 }
0x108f   :  { %v2478_v31 = vpop.f32.mrf.mxu0 }
0x1090   :  { %v2484_v36 = vmul.f32 0.35355338, %v2478_v31 }
0x1091   :  { %v3714_v32 = vpop.f32.mrf.mxu0 }
0x1092   :  { %v2485_v8 = vsel %vm4239_vm7, %v2484_v36, -1e+30 }
0x1093   :  { %v2481_v33 = vpop.f32.mrf.mxu0  ;;  %v2486_v37 = vsel %vm293_vm6, %v2485_v8, -inf }
0x1095   :  { %1923 = vrot.lane.b32.xlu1 %v4465_v53, %s4056_s24  ;;  %v3715_v35 = vpop.f32.mrf.mxu0 }
0x10a2   :  { %1811 = vrot.lane.b32.xlu0 %v4465_v53, %s4055_s23 }
0x10b9   :  { %2487 = vmax.xlane.f32.xlu1 %v2486_v37 }
0x10ed   :  { %v1801_v38 = vpop.xlane.xlu0 %1800 }
0x10ee   :  { %v1802_v39 = vsub.f32 %v1798_v47, %v1801_v38 }
0x10f0   :  { %v1803_v41 = vmul.f32 1.442695, %v1802_v39 }
0x10f2   :  { %3937 = vpow2.f32 %v1803_v41 }
0x10f5   :  { %v1913_v43 = vpop.xlane.xlu1 %1912 }
0x10f6   :  { %v1914_v34 = vsub.f32 %v1910_v56, %v1913_v43 }
0x10f8   :  { %v1915_v44 = vmul.f32 1.442695, %v1914_v34 }
0x10fa   :  { %3939 = vpow2.f32 %v1915_v44 }
0x10fd   :  { %v2025_v40 = vpop.xlane.xlu0 %2024 }
0x10fe   :  { %v2026_v45 = vsub.f32 %v2022_v3, %v2025_v40 }
0x10ff   :  { %v3938_v46 = vpop.eup %3937 }
0x1100   :  { %v2027_v48 = vmul.f32 1.442695, %v2026_v45  ;;  %v1805_v49 = vsel %vm293_vm6, %v3938_v46, 0.0 }
0x1101   :  { %1806 = vadd.xlane.f32.xlu0 %v1805_v49 }
0x1102   :  { %3941 = vpow2.f32 %v2027_v48 }
0x1105   :  { %v2152_v52 = vpop.xlane.xlu0 %2151 }
0x1106   :  { %v2153_v59 = vsub.f32 %v2149_v25, %v2152_v52 }
0x1107   :  { %v3940_v30 = vpop.eup %3939 }
0x1108   :  { %v1917_v50 = vsel %vm293_vm6, %v3940_v30, 0.0  ;;  %v2154_v63 = vmul.f32 1.442695, %v2153_v59 }
0x1109   :  { %1918 = vadd.xlane.f32.xlu1 %v1917_v50 }
0x110a   :  { %3943 = vpow2.f32 %v2154_v63 }
0x110d   :  { %v2264_v60 = vpop.xlane.xlu1 %2263 }
0x110e   :  { %v2265_v54 = vsub.f32 %v2261_v19, %v2264_v60 }
0x110f   :  { %v4579_v51 = vpop.eup %3941 }
0x1110   :  { %v2029_v47 = vsel %vm293_vm6, %v4579_v51, 0.0  ;;  %v2266_v62 = vmul.f32 1.442695, %v2265_v54 }
0x1111   :  { %2030 = vadd.xlane.f32.xlu0 %v2029_v47  ;;  %v1924_v6 = vpop.permute.xlu1 %1923 }
0x1112   :  { %3945 = vpow2.f32 %v2266_v62  ;;  %v1929_v23 = vsel %vm73_vm4, %v1924_v6, 0 }
0x1115   :  { %v2376_v55 = vpop.xlane.xlu0 %2375 }
0x1116   :  { %v2377_v3 = vsub.f32 %v2373_v0, %v2376_v55 }
0x1117   :  { %v3944_v5 = vpop.eup %3943 }
0x1118   :  { %v2378_v4 = vmul.f32 1.442695, %v2377_v3  ;;  %v2156_v20 = vsel %vm293_vm6, %v3944_v5, 0.0 }
0x1119   :  { %v1812_v56 = vpop.permute.xlu0 %1811 }
0x111a   :  { %v1817_v57 = vsel %vm73_vm4, %v1812_v56, 0  ;;  %2035 = vrot.lane.b32.xlu1 %v4465_v53, %s4057_s25  ;;  %3947 = vpow2.f32 %v2378_v4 }
0x111b   :  { %3645 = vmatpush3.bf16.msra.mxu1 %v1817_v57 }
0x111c   :  { %3656 = vmatprep.subr.bf16.mxu1 %v4046_v1 }
0x111f   :  { %v4590_v53 = vpop.eup %3945 }
0x1120   :  { %v2268_v7 = vsel %vm293_vm6, %v4590_v53, 0.0 }
0x1127   :  { %2162 = vrot.lane.b32.xlu0 %v4477_v58, %s4043_s18  ;;  %v4594_v10 = vpop.eup %3947 }
0x1128   :  { %v2380_v14 = vsel %vm293_vm6, %v4594_v10, 0.0 }
0x113e   :  { %2157 = vadd.xlane.f32.xlu1 %v2156_v20 }
0x1142   :  { %2269 = vadd.xlane.f32.xlu1 %v2268_v7  ;;  %v2488_v25 = vpop.xlane.xlu1 %2487 }
0x1143   :  { %v2489_v11 = vsub.f32 %v2485_v8, %v2488_v25 }
0x1145   :  { %v2490_v12 = vmul.f32 1.442695, %v2489_v11 }
0x1146   :  { %2381 = vadd.xlane.f32.xlu0 %v2380_v14 }
0x1147   :  { %3949 = vpow2.f32 %v2490_v12 }
0x1154   :  { %v4598_v15 = vpop.eup %3949 }
0x1155   :  { %v2492_v16 = vsel %vm293_vm6, %v4598_v15, 0.0 }
0x1156   :  { %2493 = vadd.xlane.f32.xlu1 %v2492_v16 }
0x115c   :  { %2386 = vrot.lane.b32.xlu0 %v4477_v58, %s4056_s24 }
0x1160   :  { %2498 = vrot.lane.b32.xlu0 %v4477_v58, %s4057_s25 }
0x1167   :  { %2274 = vrot.lane.b32.xlu1 %v4477_v58, %s4055_s23 }
0x118a   :  { %v1807_v17 = vpop.xlane.xlu0 %1806 }
0x118b   :  { %3951 = vrcp.f32 %v1807_v17 }
0x1192   :  { %v1919_v19 = vpop.xlane.xlu1 %1918 }
0x1193   :  { %3953 = vrcp.f32 %v1919_v19 }
0x1196   :  { %v2036_v0 = vpop.permute.xlu1 %2035 }
0x1197   :  { %v2041_v27 = vsel %vm73_vm4, %v2036_v0, 0 }
0x1198   :  { %v3952_v2 = vpop.eup %3951 }
0x1199   :  { %v1809_v21 = vmul.f32 %v3952_v2, %v3938_v46 }
0x119a   :  { %v2031_v61 = vpop.xlane.xlu0 %2030 }
0x119b   :  { %3955 = vrcp.f32 %v2031_v61  ;;  %v1810_v22 = vpack.c.bf16 %v1809_v21, %v1809_v21  ;;  %v3870_v21 = vld [vmem:[#allocation2 + $0x80] sm:$0xff]  }
0x119d   :  { %3647 = vmatmul.mubr.msk.bf16.vlgmr.msra.gmra.mxu1 %vm293_vm6, %v1810_v22 }
0x119e   :  { %3657 = vmatpush3.bf16.msra.mxu1 %v1929_v23  ;;  %3658 = vmatprep.mubr.msk.bf16.mxu1 %vm4047_vm0, %v4046_v1  ;;  %v2163_v32 = vpop.permute.xlu0 %2162 }
0x119f   :  { %3668 = vmatprep.subr.bf16.mxu1 %v4046_v1  ;;  %v2168_v35 = vsel %vm73_vm4, %v2163_v32, 0 }
0x11a0   :  { %v3954_v58 = vpop.eup %3953 }
0x11a1   :  { %v1921_v24 = vmul.f32 %v3954_v58, %v3940_v30 }
0x11a3   :  { %v1922_v26 = vpack.c.bf16 %v1921_v24, %v1921_v24 }
0x11a5   :  { %3659 = vmatmul.mubr.msk.bf16.vlgmr.msra.gmra.mxu1 %vm293_vm6, %v1922_v26 }
0x11a6   :  { %3669 = vmatpush3.bf16.msra.mxu1 %v2041_v27  ;;  %3670 = vmatprep.mubr.msk.bf16.mxu1 %vm4047_vm0, %v4046_v1 }
0x11a7   :  { %3680 = vmatprep.subr.bf16.mxu1 %v4046_v1 }
0x11a8   :  { %v3956_v28 = vpop.eup %3955 }
0x11a9   :  { %v2033_v31 = vmul.f32 %v3956_v28, %v4579_v51 }
0x11ab   :  { %v2034_v33 = vpack.c.bf16 %v2033_v31, %v2033_v31 }
0x11ad   :  { %3671 = vmatmul.mubr.msk.bf16.vlgmr.msra.gmra.mxu1 %vm293_vm6, %v2034_v33 }
0x11ae   :  { %3681 = vmatpush3.bf16.msra.mxu1 %v2168_v35  ;;  %3682 = vmatprep.mubr.msk.bf16.mxu1 %vm4047_vm0, %v4046_v1 }
0x11af   :  { %3692 = vmatprep.subr.bf16.mxu1 %v4046_v1 }
0x11c7   :  { %v2158_v36 = vpop.xlane.xlu1 %2157 }
0x11c8   :  { %3957 = vrcp.f32 %v2158_v36 }
0x11cb   :  { %v2270_v8 = vpop.xlane.xlu1 %2269 }
0x11cc   :  { %3959 = vrcp.f32 %v2270_v8 }
0x11cf   :  { %v2382_v39 = vpop.xlane.xlu0 %2381 }
0x11d0   :  { %3961 = vrcp.f32 %v2382_v39 }
0x11d3   :  { %v2387_v46 = vpop.permute.xlu0 %2386 }
0x11d4   :  { %v2392_v30 = vsel %vm73_vm4, %v2387_v46, 0 }
0x11d5   :  { %v3958_v37 = vpop.eup %3957 }
0x11d6   :  { %v2160_v38 = vmul.f32 %v3958_v37, %v3944_v5 }
0x11d7   :  { %v2499_v51 = vpop.permute.xlu0 %2498 }
0x11d8   :  { %v2161_v41 = vpack.c.bf16 %v2160_v38, %v2160_v38  ;;  %v2504_v55 = vsel %vm73_vm4, %v2499_v51, 0 }
0x11d9   :  { %v3960_v43 = vpop.eup %3959 }
0x11da   :  { %3683 = vmatmul.mubr.msk.bf16.vlgmr.msra.gmra.mxu1 %vm293_vm6, %v2161_v41  ;;  %v2272_v44 = vmul.f32 %v3960_v43, %v4590_v53 }
0x11db   :  { %3694 = vmatprep.mubr.msk.bf16.mxu1 %vm4047_vm0, %v4046_v1 }
0x11dc   :  { %v2273_v48 = vpack.c.bf16 %v2272_v44, %v2272_v44 }
0x11dd   :  { %v3962_v49 = vpop.eup %3961 }
0x11de   :  { %v2384_v50 = vmul.f32 %v3962_v49, %v4594_v10 }
0x11df   :  { %v2494_v34 = vpop.xlane.xlu1 %2493 }
0x11e0   :  { %3963 = vrcp.f32 %v2494_v34  ;;  %v2385_v47 = vpack.c.bf16 %v2384_v50, %v2384_v50 }
0x11e3   :  { %v2275_v40 = vpop.permute.xlu1 %2274 }
0x11e4   :  { %v2280_v45 = vsel %vm73_vm4, %v2275_v40, 0 }
0x11e5   :  { %3693 = vmatpush3.bf16.msra.mxu1 %v2280_v45 }
0x11e6   :  { %3704 = vmatprep.subr.bf16.mxu1 %v4046_v1 }
0x11e8   :  { %3695 = vmatmul.mubr.msk.bf16.vlgmr.msra.gmra.mxu1 %vm293_vm6, %v2273_v48 }
0x11e9   :  { %3705 = vmatpush3.bf16.msra.mxu1 %v2392_v30  ;;  %3706 = vmatprep.mubr.msk.bf16.mxu1 %vm4047_vm0, %v4046_v1 }
0x11ea   :  { %3716 = vmatprep.subr.bf16.mxu1 %v4046_v1 }
0x11ed   :  { %v3964_v52 = vpop.eup %3963 }
0x11ee   :  { %v2496_v56 = vmul.f32 %v3964_v52, %v4598_v15  ;;  %v3869_v15 = vld [vmem:[#allocation2 + $0x88] sm:$0xff]  }
0x11ef   :  { %3723 = vmatpush3.bf16.msra.mxu0 %v3869_v15 }
0x11f0   :  { %3707 = vmatmul.mubr.msk.bf16.vlgmr.msra.gmra.mxu1 %vm293_vm6, %v2385_v47  ;;  %v2497_v57 = vpack.c.bf16 %v2496_v56, %v2496_v56  ;;  %3724 = vmatprep.subr.bf16.mxu0 %v4046_v1 }
0x11f1   :  { %3717 = vmatpush3.bf16.msra.mxu1 %v2504_v55  ;;  %3718 = vmatprep.mubr.msk.bf16.mxu1 %vm4047_vm0, %v4046_v1 }
0x11f2   :  { %3730 = vmatprep.subr.bf16.mxu1 %v4046_v1 }
0x11f3   :  { %3725 = vmatpush3.bf16.msra.mxu0 %v3870_v21 }
0x11f4   :  { %3738 = vmatprep.subr.bf16.mxu0 %v4046_v1 }
0x11f8   :  { %3719 = vmatmul.mubr.msk.bf16.vlgmr.msra.gmra.mxu1 %vm293_vm6, %v2497_v57 }
0x11f9   :  { %3734 = vmatprep.mubr.msk.bf16.mxu1 %vm4047_vm0, %v4046_v1 }
0x125d   :  { %v1853_v59 = vpop.f32.mrf.mxu1 }
0x125f   :  { %v3648_v60 = vpop.f32.mrf.mxu1 }
0x1261   :  { %v1856_v63 = vpop.f32.mrf.mxu1 }
0x1263   :  { %v3649_v54 = vpop.f32.mrf.mxu1 }
0x1265   :  { %v1965_v62 = vpop.f32.mrf.mxu1 }
0x1267   :  { %v3660_v3 = vpop.f32.mrf.mxu1 }
0x1269   :  { %v1968_v4 = vpop.f32.mrf.mxu1 }
0x126b   :  { %v3661_v5 = vpop.f32.mrf.mxu1 }
0x126d   :  { %v2077_v20 = vpop.f32.mrf.mxu1 }
0x126f   :  { %v3672_v53 = vpop.f32.mrf.mxu1 }
0x1270   :  { %v3871_v53 = vld [vmem:[#allocation2 + $0x98] sm:$0xff]  }
0x1271   :  { %v2080_v6 = vpop.f32.mrf.mxu1  ;;  %3731 = vmatpush3.bf16.msra.mxu1 %v3871_v53 }
0x1272   :  { %v3872_v6 = vld [vmem:[#allocation2 + $0x90] sm:$0xff]   ;;  %3732 = vmatprep.subr.bf16.mxu1 %v4046_v1 }
0x1273   :  { %v3673_v7 = vpop.f32.mrf.mxu1 }
0x1275   :  { %3733 = vmatpush3.bf16.msra.mxu1 %v3872_v6 }
0x1276   :  { %3758 = vmatprep.subr.bf16.mxu1 %v4046_v1 }
0x129a   :  { %v2204_v10 = vpop.f32.mrf.mxu1 }
0x129c   :  { %v3684_v25 = vpop.f32.mrf.mxu1 }
0x129e   :  { %v2207_v11 = vpop.f32.mrf.mxu1 }
0x12a0   :  { %v3685_v12 = vpop.f32.mrf.mxu1 }
0x12a8   :  { %v2316_v14 = vpop.f32.mrf.mxu1 }
0x12a9   :  { %v3832_v16 = vpack.i.bf16 %v2316_v14, %v1853_v59 }
0x12aa   :  { %v3696_v17 = vpop.f32.mrf.mxu1 }
0x12ab   :  { %3833 = vrot.lane.b32.xlu1 %v3832_v16, %s4058_s2  ;;  %v3319_v17 = vld [vmem:[%s4831_s3 + $0xa] ss:$0 sm:$0xff] }
0x12ac   :  { %v2319_v19 = vpop.f32.mrf.mxu1 }
0x12ae   :  { %v3697_v2 = vpop.f32.mrf.mxu1 }
0x12b0   :  { %v2428_v61 = vpop.f32.mrf.mxu1 }
0x12b1   :  { %v3837_v22 = vpack.i.bf16 %v2428_v61, %v1965_v62  ;;  %v3320_v61 = vld [vmem:[%s4831_s3 + $0xb] ss:$0 sm:$0xff] }
0x12b2   :  { %v3708_v23 = vpop.f32.mrf.mxu1 }
0x12b3   :  { %3838 = vrot.lane.b32.xlu0 %v3837_v22, %s4059_s26  ;;  %s4061_s26 = smov [#allocation5]  }
0x12b4   :  { %v2431_v58 = vpop.f32.mrf.mxu1 }
0x12b6   :  { %v3709_v24 = vpop.f32.mrf.mxu1 }
0x12b8   :  { %v2540_v0 = vpop.f32.mrf.mxu1 }
0x12b9   :  { %v3842_v26 = vpack.i.bf16 %v2540_v0, %v2077_v20  ;;  %v3873_v0 = vld [vmem:[#allocation2 + $0xd8] sm:$0xff]  }
0x12ba   :  { %v3720_v27 = vpop.f32.mrf.mxu1 }
0x12bb   :  { %3843 = vrot.lane.b32.xlu1 %v3842_v26, %s4060_s27  ;;  %v3874_v26 = vld [vmem:[#allocation2 + $0xd0] sm:$0xff]   ;;  %v3875_v27 = vld [vmem:[#allocation2 + $0xc8] sm:$0xff]   ;;  %s3227_s27 = sshll.u32 %s4061_s26, 4  ;;  %s3228_s27 = int_to_ptr.vmem [resolvable:$true] %s3227_s27 }
0x12bc   :  { %v2543_v28 = vpop.f32.mrf.mxu1  ;;  %s4018_s5 = scalar_lea.vmem %s3228_s27, 16  ;;  %s4022_s6 = scalar_lea.vmem %s3228_s27, 32 }
0x12bd   :  { %v3876_v28 = vld [vmem:[#allocation2 + $0xc0] sm:$0xff]   ;;  %p4019_p5 = scmp.ne.s32.totalorder %s3228_s27, %s4018_s5  ;;  %p4023_p6 = scmp.lt.s32.totalorder %s3228_s27, %s3228_s27 }
0x12be   :  { %v3721_v31 = vpop.f32.mrf.mxu1  ;;  %p4024_p7 = scmp.lt.s32.totalorder %s4022_s6, %s4018_s5 }
0x12bf   :  { %v3877_v31 = vld [vmem:[#allocation2 + $0xb8] sm:$0xff]  }
0x12c0   :  { %p4025_p8 = por %p4024_p7, %p4023_p6 }
0x12c2   :  { %p4026_p9 = pnand %p4025_p8, %p4019_p5 }
0x131d   :  { %v3834_v32 = vpop.permute.xlu1 %3833 }
0x131e   :  { %v3836_v35 = vunpack.i.h.bf16 %v3834_v32  ;;  %v3835_v36 = vunpack.i.l.bf16 %v3834_v32  ;;  %v3878_v32 = vld [vmem:[#allocation2 + $0xb0] sm:$0xff]  }
0x1320   :  { %v2558_v39 = vsel %vm293_vm6, %v2204_v10, %v3836_v35  ;;  %v2095_v41 = vsel %vm293_vm6, %v4550_v42, %v3835_v36  ;;  %v3318_v42 = vld [vmem:[%s4831_s3 + $0xd] ss:$0 sm:$0xff]  ;;  %v3880_v35 = vld [vmem:[#allocation2 + $0xa0] sm:$0xff]   ;;  %v3321_v36 = vld [vmem:[%s4831_s3 + $0xe] ss:$0 sm:$0xff] }
0x1325   :  { %v3839_v33 = vpop.permute.xlu0 %3838 }
0x1326   :  { %v3841_v8 = vunpack.i.h.bf16 %v3839_v33  ;;  %v3840_v37 = vunpack.i.l.bf16 %v3839_v33  ;;  %v3879_v33 = vld [vmem:[#allocation2 + $0xa8] sm:$0xff]  }
0x1328   :  { %v2559_v44 = vsel %vm751_vm8, %v2558_v39, %v3841_v8  ;;  %v2096_v40 = vsel %vm751_vm8, %v2095_v41, %v3840_v37 }
0x132d   :  { %v3844_v38 = vpop.permute.xlu1 %3843 }
0x132e   :  { %v3846_v43 = vunpack.i.h.bf16 %v3844_v38  ;;  %v3845_v34 = vunpack.i.l.bf16 %v3844_v38 }
0x1330   :  { %v2560_v45 = vsel %vm753_vm9, %v2559_v44, %v3846_v43  ;;  %v2097_v46 = vsel %vm753_vm9, %v2096_v40, %v3845_v34 }
0x1331   :  { %v2561_v48 = vpack.c.bf16 %v2560_v45, %v2097_v46 }
0x1333   :  { %3727 = vmatmul.mubr.msk.bf16.vlgmr.msra.gmra.mxu0 %vm188_vm5, %v2561_v48 }
0x1334   :  { %3754 = vmatprep.mubr.msk.bf16.mxu0 %vm4047_vm0, %v4046_v1  ;;  %3739 = vmatpush3.bf16.msra.mxu0 %v3873_v0 }
0x1335   :  { %3740 = vmatprep.subr.bf16.mxu0 %v4046_v1 }
0x1338   :  { %3741 = vmatpush3.bf16.msra.mxu0 %v3874_v26 }
0x1339   :  { %3742 = vmatprep.subr.bf16.mxu0 %v4046_v1 }
0x133c   :  { %3743 = vmatpush3.bf16.msra.mxu0 %v3875_v27 }
0x133d   :  { %3744 = vmatprep.subr.bf16.mxu0 %v4046_v1 }
0x1340   :  { %3745 = vmatpush3.bf16.msra.mxu0 %v3876_v28 }
0x1341   :  { %3746 = vmatprep.subr.bf16.mxu0 %v4046_v1 }
0x1344   :  { %3747 = vmatpush3.bf16.msra.mxu0 %v3877_v31 }
0x1345   :  { %3748 = vmatprep.subr.bf16.mxu0 %v4046_v1 }
0x1348   :  { %3749 = vmatpush3.bf16.msra.mxu0 %v3878_v32  ;;  %v4723_v32 = vld [vmem:[%s4828_s0 + $0x18] sm:$0xff] }
0x1349   :  { %3750 = vmatprep.subr.bf16.mxu0 %v4046_v1  ;;  %vm2964_vm12 = vcmp.ne.s32.totalorder %v4723_v32, 4294967196 }
0x134c   :  { %3751 = vmatpush3.bf16.msra.mxu0 %v3879_v33 }
0x134d   :  { %3752 = vmatprep.subr.bf16.mxu0 %v4046_v1 }
0x1350   :  { %3753 = vmatpush3.bf16.msra.mxu0 %v3880_v35  ;;  %v4729_v35 = vld [vmem:[%s4828_s0 + $0x20] sm:$0xff] }
0x1351   :  { %3770 = vmatprep.subr.bf16.mxu0 %v4046_v1  ;;  %vm3172_vm13 = vcmp.ne.s32.totalorder %v4729_v35, 4294967196 }
0x13f3   :  { %v2611_v49 = vpop.f32.mrf.mxu0 }
0x13f4   :  { %v2618_v30 = vadd.f32 %v2611_v49, %v4438_v13 }
0x13f5   :  { %v3728_v50 = vpop.f32.mrf.mxu0 }
0x13f6   :  { %v4664_v51 = vadd.f32 %v3318_v42, %v2618_v30 }
0x13f7   :  { %v2614_v47 = vpop.f32.mrf.mxu0 }
0x13f8   :  { %v2619_v52 = vadd.f32 %v2614_v47, %v4443_v18  ;;  %v2626_v55 = vsel %vm188_vm5, %v4664_v51, 0.0 }
0x13f9   :  { %2627 = vadd.xlane.f32.xlu0 %v2626_v55  ;;  %v3729_v56 = vpop.f32.mrf.mxu0 }
0x13fa   :  { %v4669_v57 = vadd.f32 %v3318_v42, %v2619_v52 }
0x13fc   :  { %v2629_v59 = vsel %vm188_vm5, %v4669_v57, 0.0 }
0x13fd   :  { %2630 = vadd.xlane.f32.xlu1 %v2629_v59 }
0x1482   :  { %v2628_v60 = vpop.xlane.xlu0 %2627 }
0x1483   :  { %v2632_v63 = vmul.f32 0.03125, %v2628_v60 }
0x1485   :  { %v2634_v13 = vsub.f32 %v4664_v51, %v2632_v63 }
0x1486   :  { %v2631_v54 = vpop.xlane.xlu1 %2630 }
0x1487   :  { %v2633_v62 = vmul.f32 0.03125, %v2631_v54  ;;  %v2636_v3 = vmul.f32 %v2634_v13, %v2634_v13 }
0x1489   :  { %v2635_v18 = vsub.f32 %v4669_v57, %v2633_v62  ;;  %v2638_v4 = vsel %vm188_vm5, %v2636_v3, 0.0  ;;  %v3333_v62 = vld [vmem:[%s4831_s3 + $0xf] ss:$0 sm:$0xff] }
0x148a   :  { %2639 = vadd.xlane.f32.xlu0 %v2638_v4 }
0x148b   :  { %v2637_v5 = vmul.f32 %v2635_v18, %v2635_v18 }
0x148d   :  { %v2641_v20 = vsel %vm188_vm5, %v2637_v5, 0.0 }
0x148e   :  { %2642 = vadd.xlane.f32.xlu0 %v2641_v20 }
0x1513   :  { %v2640_v7 = vpop.xlane.xlu0 %2639 }
0x1514   :  { %v2644_v10 = vmul.f32 0.03125, %v2640_v7 }
0x1516   :  { %v2646_v25 = vadd.f32 1e-05, %v2644_v10 }
0x1517   :  { %v2643_v11 = vpop.xlane.xlu0 %2642 }
0x1518   :  { %3965 = vrsqrt.f32 %v2646_v25  ;;  %v2645_v12 = vmul.f32 0.03125, %v2643_v11  ;;  %v3993_v11 = vld [vmem:[%s4829_s1 + $0x18] sm:$0xff]  }
0x151a   :  { %v2647_v14 = vadd.f32 1e-05, %v2645_v12  ;;  %v2896_v12 = vsel %vm188_vm5, %v3993_v11, 0 }
0x151c   :  { %3967 = vrsqrt.f32 %v2647_v14 }
0x1525   :  { %v3966_v15 = vpop.eup %3965 }
0x1526   :  { %v2650_v16 = vmul.f32 %v3966_v15, %v2634_v13 }
0x1528   :  { %v2656_v21 = vmul.f32 %v3319_v17, %v2650_v16 }
0x1529   :  { %v3968_v19 = vpop.eup %3967 }
0x152a   :  { %v2651_v2 = vmul.f32 %v3968_v19, %v2635_v18  ;;  %v2662_v23 = vadd.f32 %v3320_v61, %v2656_v21 }
0x152c   :  { %v2657_v22 = vmul.f32 %v3319_v17, %v2651_v2 }
0x152e   :  { %v2663_v58 = vadd.f32 %v3320_v61, %v2657_v22 }
0x1530   :  { %v2664_v24 = vpack.c.bf16 %v2663_v58, %v2662_v23 }
0x1532   :  { %3735 = vmatmul.mubr.msk.bf16.vlgmr.msra.gmra.mxu1 %vm188_vm5, %v2664_v24 }
0x1533   :  { %3766 = vmatprep.mubr.msk.bf16.mxu1 %vm4047_vm0, %v4046_v1  ;;  %3759 = vmatpush3.bf16.xpose.msra.mxu1 %v2896_v12 }
0x1534   :  { %3760 = vmatprep.subr.bf16.mxu1 %v4046_v1 }
0x15f2   :  { %v2718_v8 = vpop.f32.mrf.mxu1 }
0x15f3   :  { %v2719_v37 = vadd.f32 %v3321_v36, %v2718_v8 }
0x15f4   :  { %v3736_v38 = vpop.f32.mrf.mxu1 }
0x15f5   :  { %v2727_v39 = vmul.f32 0.044715, %v2719_v37  ;;  %v2725_v56 = vmul.f32 0.5, %v2719_v37  ;;  %v3173_v38 = vsel %vm3172_vm13, %v4729_v35, 0 }
0x15f6   :  { %v2721_v41 = vpop.f32.mrf.mxu1 }
0x15f7   :  { %v2729_v43 = vmul.f32 %v2727_v39, %v2719_v37  ;;  %v2722_v34 = vadd.f32 %v3321_v36, %v2721_v41  ;;  %v3995_v36 = vld [vmem:[%s4829_s1 + $0x10] sm:$0xff]   ;;  %v3996_v39 = vld [vmem:[%s4829_s1 + $0x8] sm:$0xff]  }
0x15f8   :  { %v3737_v44 = vpop.f32.mrf.mxu1  ;;  %v2893_v8 = vsel %vm188_vm5, %v3995_v36, 0  ;;  %v2890_v41 = vsel %vm188_vm5, %v3996_v39, 0 }
0x15f9   :  { %v2731_v40 = vmul.f32 %v2729_v43, %v2719_v37  ;;  %v2728_v45 = vmul.f32 0.044715, %v2722_v34  ;;  %v2726_v59 = vmul.f32 0.5, %v2722_v34  ;;  %3761 = vmatpush3.bf16.xpose.msra.mxu1 %v2893_v8  ;;  %v3997_v43 = vld [vmem:[%s4829_s1] sm:$0xff]  }
0x15fa   :  { %3762 = vmatprep.subr.bf16.mxu1 %v4046_v1 }
0x15fb   :  { %v2733_v46 = vadd.f32 %v2731_v40, %v2719_v37  ;;  %v2730_v48 = vmul.f32 %v2728_v45, %v2722_v34  ;;  %v2966_v37 = vsel %vm2964_vm12, %v4723_v32, 0 }
0x15fd   :  { %v2735_v42 = vmul.f32 0.7978846, %v2733_v46  ;;  %v2732_v49 = vmul.f32 %v2730_v48, %v2722_v34 }
0x15ff   :  { %3969 = vtanh.f32 %v2735_v42  ;;  %v2734_v30 = vadd.f32 %v2732_v49, %v2722_v34  ;;  %v2887_v34 = vsel %vm188_vm5, %v3997_v43, 0 }
0x1601   :  { %v2736_v50 = vmul.f32 0.7978846, %v2734_v30  ;;  %3763 = vmatpush3.bf16.xpose.msra.mxu1 %v2890_v41 }
0x1602   :  { %3764 = vmatprep.subr.bf16.mxu1 %v4046_v1 }
0x1603   :  { %3971 = vtanh.f32 %v2736_v50  ;;  %v3030_v50 = vcvt.s32.f32 %v4121_v9 }
0x1609   :  { %3765 = vmatpush3.bf16.xpose.msra.mxu1 %v2887_v34 }
0x160a   :  { %3776 = vmatprep.subr.bf16.mxu1 %v4046_v1 }
0x160c   :  { %v3970_v47 = vpop.eup %3969 }
0x160d   :  { %v2739_v52 = vadd.f32 1.0, %v3970_v47  ;;  %v3336_v47 = vld [vmem:[%s4831_s3 + $0x10] ss:$0 sm:$0xff] }
0x160f   :  { %v2741_v63 = vmul.f32 %v2739_v52, %v2725_v56 }
0x1610   :  { %v3972_v55 = vpop.eup %3971 }
0x1611   :  { %v2740_v60 = vadd.f32 1.0, %v3972_v55 }
0x1613   :  { %v2742_v13 = vmul.f32 %v2740_v60, %v2726_v59  ;;  %v3337_v60 = vld [vmem:[%s4831_s3 + $0x11] ss:$0 sm:$0xff] }
0x1615   :  { %v2743_v54 = vpack.c.bf16 %v2742_v13, %v2741_v63  ;;  %v3881_v13 = vld [vmem:[%s4829_s1 + $0x40] sm:$0xff]  }
0x1617   :  { %3755 = vmatmul.mubr.bf16.vlgmr.msra.gmra.mxu0 %v2743_v54 }
0x1618   :  { %3772 = vmatprep.mubr.msk.bf16.mxu0 %vm4047_vm0, %v4046_v1 }
0x16d7   :  { %v2826_v3 = vpop.f32.mrf.mxu0 }
0x16d8   :  { %v2833_v18 = vadd.f32 %v2826_v3, %v4664_v51  ;;  %v3020_v51 = vcvt.s32.f32 %v4235_v29 }
0x16d9   :  { %v3756_v4 = vpop.f32.mrf.mxu0 }
0x16da   :  { %v2839_v5 = vadd.f32 %v3333_v62, %v2833_v18  ;;  %v3117_v4 = vsel %vm188_vm5, %v3881_v13, 0 }
0x16db   :  { %v2829_v20 = vpop.f32.mrf.mxu0 }
0x16dc   :  { %v2834_v53 = vadd.f32 %v2829_v20, %v4669_v57  ;;  %v2844_v6 = vsel %vm188_vm5, %v2839_v5, 0.0  ;;  %v3994_v57 = vld [vmem:[%s4828_s0] sm:$0xff]  ;;  %v3882_v20 = vld [vmem:[%s4829_s1 + $0x38] sm:$0xff]  }
0x16dd   :  { %2845 = vadd.xlane.f32.xlu1 %v2844_v6  ;;  %v3757_v7 = vpop.f32.mrf.mxu0  ;;  %vm3021_vm10 = vcmp.eq.s32.totalorder %v3994_v57, 7  ;;  %v3883_v6 = vld [vmem:[%s4829_s1 + $0x30] sm:$0xff]  }
0x16de   :  { %v2840_v10 = vadd.f32 %v3333_v62, %v2834_v53  ;;  %v3022_v14 = vsel %vm3021_vm10, %v3020_v51, 1e+09  ;;  %v3114_v53 = vsel %vm188_vm5, %v3882_v20, 0  ;;  %v3111_v7 = vsel %vm188_vm5, %v3883_v6, 0 }
0x16df   :  { %v3023_v15 = vsel %vm2987_vm11, %v3022_v14, inf }
0x16e0   :  { %v2847_v25 = vsel %vm188_vm5, %v2840_v10, 0.0  ;;  %v3024_v17 = vrot.slane %v3023_v15, 4 }
0x16e1   :  { %2848 = vadd.xlane.f32.xlu0 %v2847_v25 }
0x16e2   :  { %v3025_v61 = vmin.f32 %v3023_v15, %v3024_v17 }
0x16e4   :  { %v3026_v0 = vrot.slane %v3025_v61, 2 }
0x16e6   :  { %v3027_v28 = vmin.f32 %v3025_v61, %v3026_v0 }
0x16e8   :  { %v3028_v31 = vrot.slane %v3027_v28, 1 }
0x16ea   :  { %v3029_v33 = vmin.f32 %v3027_v28, %v3028_v31 }
0x1766   :  { %v2846_v16 = vpop.xlane.xlu1 %2845 }
0x1767   :  { %v2850_v19 = vmul.f32 0.03125, %v2846_v16 }
0x1769   :  { %v2852_v2 = vsub.f32 %v2839_v5, %v2850_v19 }
0x176a   :  { %v2849_v21 = vpop.xlane.xlu0 %2848 }
0x176b   :  { %v2851_v22 = vmul.f32 0.03125, %v2849_v21  ;;  %v2854_v23 = vmul.f32 %v2852_v2, %v2852_v2 }
0x176d   :  { %v2853_v58 = vsub.f32 %v2840_v10, %v2851_v22  ;;  %v2856_v24 = vsel %vm188_vm5, %v2854_v23, 0.0  ;;  %v3884_v10 = vld [vmem:[%s4829_s1 + $0x28] sm:$0xff]  }
0x176e   :  { %2857 = vadd.xlane.f32.xlu1 %v2856_v24  ;;  %v3108_v25 = vsel %vm188_vm5, %v3884_v10, 0 }
0x176f   :  { %v2855_v26 = vmul.f32 %v2853_v58, %v2853_v58 }
0x1771   :  { %v2859_v27 = vsel %vm188_vm5, %v2855_v26, 0.0 }
0x1772   :  { %2860 = vadd.xlane.f32.xlu0 %v2859_v27 }
0x177f   :  { %3033 = vperm.xlu1 %3847, %v3029_v33   ;;  %v35_v33 = vld [vmem:[%s4828_s0 + $0x10] sm:$0xff] }
0x1783   :  { %2971 = vperm.xlu1 %3847, %v2966_v37  }
0x1787   :  { %3175 = vperm.xlu1 %3847, %v3173_v38  }
0x17f7   :  { %v2858_v44 = vpop.xlane.xlu1 %2857 }
0x17f8   :  { %v2862_v40 = vmul.f32 0.03125, %v2858_v44 }
0x17fa   :  { %v2864_v45 = vadd.f32 1e-05, %v2862_v40 }
0x17fb   :  { %v2861_v46 = vpop.xlane.xlu0 %2860  ;;  %v3034_v56 = vpop.permute.xlu1 %3033 }
0x17fc   :  { %3973 = vrsqrt.f32 %v2864_v45  ;;  %v2863_v48 = vmul.f32 0.03125, %v2861_v46  ;;  %vm3036_vm14 = vcmp.eq.f32.partialorder %v3030_v50, %v3034_v56 }
0x17fd   :  { %v3341_v54 = vsel %vm3036_vm14, 1.0, %v4046_v1 }
0x17fe   :  { %v2865_v42 = vadd.f32 1e-05, %v2863_v48  ;;  %v3039_v5 = vpack.c.bf16 %v3341_v54, %v3341_v54 }
0x17ff   :  { %v2972_v41 = vpop.permute.xlu1 %2971 }
0x1800   :  { %3975 = vrsqrt.f32 %v2865_v42  ;;  %vm2974_vm1 = vcmp.eq.s32.totalorder %v4121_v9, %v2972_v41  ;;  %v3180_v42 = vsub.s32 0, %v4235_v29 }
0x1803   :  { %v3176_v50 = vpop.permute.xlu1 %3175 }
0x1804   :  { %vm3177_vm4 = vcmp.eq.s32.totalorder %v4121_v9, %v3176_v50 }
0x1809   :  { %v3974_v49 = vpop.eup %3973 }
0x180a   :  { %v2868_v30 = vmul.f32 %v3974_v49, %v2852_v2 }
0x180c   :  { %v2874_v59 = vmul.f32 %v3336_v47, %v2868_v30 }
0x180d   :  { %v3976_v52 = vpop.eup %3975 }
0x180e   :  { %v2869_v55 = vmul.f32 %v3976_v52, %v2853_v58  ;;  %v2880_v62 = vadd.f32 %v3337_v60, %v2874_v59 }
0x1810   :  { %v2875_v63 = vmul.f32 %v3336_v47, %v2869_v55 }
0x1812   :  { %v2881_v3 = vadd.f32 %v3337_v60, %v2875_v63  ;;  %v3340_v60 = vsel %vm2964_vm12, 1.0, %v4046_v1 }
0x1813   :  { %v3006_v13 = vsel %vm2987_vm11, %v3340_v60, 0.0 }
0x1814   :  { %v2882_v18 = vpack.c.bf16 %v2881_v3, %v2880_v62 }
0x1816   :  { %3767 = vmatmul.mubr.msk.bf16.vlgmr.msra.gmra.mxu1 %vm188_vm5, %v2882_v18  ;;  %3771 = vmatpush3.bf16.msra.mxu0 %v2882_v18 }
0x1817   :  { %3777 = vmatpush3.bf16.xpose.msra.mxu1 %v3117_v4  ;;  %3784 = vmatprep.mubr.msk.bf16.mxu1 %vm4047_vm0, %v4046_v1  ;;  %vm2963_vm0 = vcmp.ne.s32.totalorder %v35_v33, 4294967196 }
0x1818   :  { %3778 = vmatprep.subr.bf16.mxu1 %v4046_v1  ;;  %v2965_v36 = vsel %vm2963_vm0, %v35_v33, 0  ;;  %v3339_v29 = vsel %vm2963_vm0, 1.0, %v4046_v1 }
0x1819   :  { %3773 = vmatmul.mubr.msk.bf16.vlgmr.msra.gmra.mxu0 %vm751_vm8, %v3039_v5  ;;  %v3005_v63 = vsel %vm2987_vm11, %v3339_v29, 0.0 }
0x181a   :  { %v3007_v54 = vadd.f32 %v3006_v13, %v3005_v63 }
0x181f   :  { %3779 = vmatpush3.bf16.xpose.msra.mxu1 %v3114_v53 }
0x1820   :  { %3780 = vmatprep.subr.bf16.mxu1 %v4046_v1 }
0x1827   :  { %3781 = vmatpush3.bf16.xpose.msra.mxu1 %v3111_v7 }
0x1828   :  { %3782 = vmatprep.subr.bf16.mxu1 %v4046_v1 }
0x182f   :  { %3783 = vmatpush3.bf16.xpose.msra.mxu1 %v3108_v25 }
0x18d6   :  { %v2932_v11 = vpop.f32.mrf.mxu1 }
0x18d7   :  { %v2939_v12 = vsel %vm104_vm3, %v2932_v11, -inf }
0x18d8   :  { %2940 = vmax.xlane.f32.xlu0 %v2939_v12  ;;  %v3768_v51 = vpop.f32.mrf.mxu1 }
0x18d9   :  { %v3077_v57 = vpop.f32.mrf.mxu0 }
0x18da   :  { %v3083_v14 = vpack.c.bf16 %v3077_v57, %v3077_v57  ;;  %v2935_v15 = vpop.f32.mrf.mxu1 }
0x18db   :  { %v3774_v16 = vpop.f32.mrf.mxu0  ;;  %v2942_v17 = vsel %vm104_vm3, %v2935_v15, -inf  ;;  %v2976_v34 = vsel %vm2974_vm1, %v2935_v15, 0.0 }
0x18dc   :  { %2943 = vmax.xlane.f32.xlu0 %v2942_v17  ;;  %v3769_v19 = vpop.f32.mrf.mxu1  ;;  %3785 = vmatmul.mubr.msk.bf16.vlgmr.msra.gmra.mxu1 %vm188_vm5, %v3083_v14  ;;  %v2980_v44 = vsel %vm104_vm3, %v2976_v34, 0.0 }
0x18dd   :  { %v3080_v2 = vpop.f32.mrf.mxu0 }
0x18df   :  { %v3775_v21 = vpop.f32.mrf.mxu0 }
0x1961   :  { %v4787_v61 = vpop.xlane.xlu0 %2940 }
0x1962   :  { %v2945_v22 = vsub.f32 %v2932_v11, %v4787_v61 }
0x1964   :  { %v2947_v23 = vmul.f32 1.442695, %v2945_v22 }
0x1965   :  { %v2944_v8 = vpop.xlane.xlu0 %2943 }
0x1966   :  { %3977 = vpow2.f32 %v2947_v23  ;;  %v2946_v37 = vsub.f32 %v2935_v15, %v2944_v8 }
0x1968   :  { %v2949_v38 = vmul.f32 1.442695, %v2946_v37 }
0x196a   :  { %3979 = vpow2.f32 %v2949_v38 }
0x1973   :  { %v3978_v58 = vpop.eup %3977 }
0x1974   :  { %v2951_v24 = vsel %vm104_vm3, %v3978_v58, 0.0 }
0x1975   :  { %2952 = vadd.xlane.f32.xlu1 %v2951_v24 }
0x1977   :  { %v3980_v39 = vpop.eup %3979 }
0x1978   :  { %v2954_v43 = vsel %vm104_vm3, %v3980_v39, 0.0 }
0x199c   :  { %v3153_v0 = vpop.f32.mrf.mxu1 }
0x199d   :  { %v3160_v26 = vsel %vm3159_vm15, %v3153_v0, -inf  ;;  %v3181_v47 = vrot.slane %v3153_v0, %v3180_v42 }
0x199e   :  { %3161 = vmax.xlane.f32.xlu0 %v3160_v26  ;;  %v3786_v27 = vpop.f32.mrf.mxu1 }
0x199f   :  { %v3182_v56 = vsel %vm3177_vm4, %v3181_v47, 0.0 }
0x19a0   :  { %v3156_v28 = vpop.f32.mrf.mxu1  ;;  %v3183_v59 = vsel %vm104_vm3, %v3182_v56, 0.0 }
0x19a2   :  { %v3787_v31 = vpop.f32.mrf.mxu1 }
0x19b4   :  { %2968 = vperm.xlu0 %3816, %v2965_v36  }
0x19d3   :  { %2955 = vadd.xlane.f32.xlu0 %v2954_v43 }
0x19d7   :  { %2981 = vadd.xlane.f32.xlu0 %v2980_v44 }
0x19fe   :  { %v2953_v18 = vpop.xlane.xlu1 %2952 }
0x1a27   :  { %v3162_v40 = vpop.xlane.xlu0 %3161 }
0x1a28   :  { %v3163_v45 = vsub.f32 %v3153_v0, %v3162_v40 }
0x1a2a   :  { %v3164_v46 = vmul.f32 1.442695, %v3163_v45 }
0x1a2c   :  { %3981 = vpow2.f32 %v3164_v46 }
0x1a2f   :  { %v2969_v48 = vpop.permute.xlu0 %2968 }
0x1a30   :  { %vm2973_vm2 = vcmp.eq.s32.totalorder %v4121_v9, %v2969_v48  ;;  %v3348_v9 = vsel %vm3172_vm13, 1.0, %v4046_v1 }
0x1a31   :  { %v2975_v52 = vsel %vm2973_vm2, %v2932_v11, 0.0  ;;  %v3205_v62 = vsel %vm2987_vm11, %v3348_v9, 0.0 }
0x1a32   :  { %v2977_v55 = vsel %vm104_vm3, %v2975_v52, 0.0  ;;  %vm3219_vm3 = vcmask 0  }
0x1a39   :  { %v3982_v49 = vpop.eup %3981 }
0x1a3a   :  { %v3166_v30 = vsel %vm3159_vm15, %v3982_v49, 0.0 }
0x1a3b   :  { %3167 = vadd.xlane.f32.xlu1 %v3166_v30 }
0x1a3f   :  { %2978 = vadd.xlane.f32.xlu1 %v2977_v55 }
0x1a43   :  { %3184 = vadd.xlane.f32.xlu1 %v3183_v59 }
0x1a47   :  { %3008 = vadd.xlane.f32.xlu1 %v3007_v54 }
0x1a4b   :  { %3206 = vadd.xlane.f32.xlu1 %v3205_v62 }
0x1a5c   :  { %v2956_v3 = vpop.xlane.xlu0 %2955 }
0x1a5d   :  { %3983 = vlog2.f32 %v2956_v3 }
0x1a5e   :  { %3985 = vlog2.f32 %v2953_v18 }
0x1a60   :  { %v2982_v7 = vpop.xlane.xlu0 %2981 }
0x1a6a   :  { %v3984_v4 = vpop.eup %3983 }
0x1a6b   :  { %v2960_v5 = vmul.f32 0.6931472, %v3984_v4  ;;  %v3986_v20 = vpop.eup %3985 }
0x1a6c   :  { %v2958_v6 = vmul.f32 0.6931472, %v3986_v20 }
0x1a6d   :  { %v2962_v53 = vadd.f32 %v2960_v5, %v2944_v8 }
0x1a6e   :  { %v2961_v11 = vadd.f32 %v2958_v6, %v4787_v61 }
0x1a6f   :  { %v2984_v25 = vsub.f32 %v2962_v53, %v2982_v7 }
0x1a71   :  { %v2986_v1 = vsel %vm2964_vm12, %v2984_v25, 0.0 }
0x1a72   :  { %v2989_v14 = vsel %vm2987_vm11, %v2986_v1, 0.0 }
0x1ac4   :  { %v3168_v10 = vpop.xlane.xlu1 %3167 }
0x1ac5   :  { %3987 = vlog2.f32 %v3168_v10 }
0x1ac8   :  { %v2979_v12 = vpop.xlane.xlu1 %2978 }
0x1ac9   :  { %v2983_v51 = vsub.f32 %v2961_v11, %v2979_v12 }
0x1acb   :  { %v2985_v57 = vsel %vm2963_vm0, %v2983_v51, 0.0 }
0x1acc   :  { %v2988_v15 = vsel %vm2987_vm11, %v2985_v57, 0.0  ;;  %v3185_v22 = vpop.xlane.xlu1 %3184 }
0x1acd   :  { %v2990_v16 = vadd.f32 %v2989_v14, %v2988_v15 }
0x1acf   :  { %2991 = vadd.xlane.f32.xlu0 %v2990_v16 }
0x1ad0   :  { %v3009_v58 = vpop.xlane.xlu1 %3008 }
0x1ad1   :  { %v3010_v24 = vrot.slane %v3009_v58, 4 }
0x1ad2   :  { %v3988_v17 = vpop.eup %3987 }
0x1ad3   :  { %v3170_v19 = vmul.f32 0.6931472, %v3988_v17  ;;  %v3011_v0 = vadd.f32 %v3010_v24, %v3009_v58 }
0x1ad4   :  { %v3207_v36 = vpop.xlane.xlu1 %3206 }
0x1ad5   :  { %v3171_v2 = vadd.f32 %v3170_v19, %v3162_v40  ;;  %v3012_v26 = vrot.slane %v3011_v0, 2  ;;  %v3208_v38 = vrot.slane %v3207_v36, 4 }
0x1ad7   :  { %v3189_v21 = vrot.slane %v3171_v2, %v3180_v42  ;;  %v3013_v31 = vadd.f32 %v3012_v26, %v3011_v0  ;;  %v3209_v35 = vadd.f32 %v3208_v38, %v3207_v36 }
0x1ad9   :  { %v3190_v23 = vsub.f32 %v3189_v21, %v3185_v22  ;;  %v3014_v37 = vrot.slane %v3013_v31, 1  ;;  %v3210_v44 = vrot.slane %v3209_v35, 2 }
0x1adb   :  { %v3191_v61 = vsel %vm3172_vm13, %v3190_v23, 0.0  ;;  %v3015_v43 = vadd.f32 %v3014_v37, %v3013_v31  ;;  %v3211_v48 = vadd.f32 %v3210_v44, %v3209_v35 }
0x1adc   :  { %v3192_v32 = vsel %vm2987_vm11, %v3191_v61, 0.0 }
0x1add   :  { %3193 = vadd.xlane.f32.xlu0 %v3192_v32  ;;  %v3212_v30 = vrot.slane %v3211_v48, 1 }
0x1adf   :  { %v3213_v52 = vadd.f32 %v3212_v30, %v3211_v48 }
0x1b58   :  { %v2992_v27 = vpop.xlane.xlu0 %2991 }
0x1b59   :  { %v2993_v28 = vrot.slane %v2992_v27, 4 }
0x1b5b   :  { %v2994_v33 = vadd.f32 %v2993_v28, %v2992_v27 }
0x1b5d   :  { %v2995_v8 = vrot.slane %v2994_v33, 2 }
0x1b5f   :  { %v2996_v39 = vadd.f32 %v2995_v8, %v2994_v33 }
0x1b61   :  { %v2997_v41 = vrot.slane %v2996_v39, 1 }
0x1b63   :  { %v2998_v34 = vadd.f32 %v2997_v41, %v2996_v39 }
0x1b65   :  { %3788 = vpush %v2998_v34 }
0x1b66   :  { %3790 = vpush %v3015_v43  ;;  %v3194_v40 = vpop.xlane.xlu0 %3193 }
0x1b67   :  { %v3195_v45 = vrot.slane %v3194_v40, 4 }
0x1b69   :  { %v3196_v46 = vadd.f32 %v3195_v45, %v3194_v40 }
0x1b6b   :  { %v3197_v42 = vrot.slane %v3196_v46, 2 }
0x1b6d   :  { %v3198_v49 = vadd.f32 %v3197_v42, %v3196_v46 }
0x1b6f   :  { %v3199_v50 = vrot.slane %v3198_v49, 1 }
0x1b71   :  { %v3200_v47 = vadd.f32 %v3199_v50, %v3198_v49 }
0x1b73   :  { %3792 = vpush %v3200_v47 }
0x1b74   :  { %3794 = vpush %v3213_v52 }
0x1b96   :  { %s3789_s0 = spop %3788 }
0x1b97   :  { %s3791_s24 = spop %3790  ;;  %v3000_v60 = vstv %s3789_s0 }
0x1b98   :  { %v3017_v55 = vstv %s3791_s24 }
0x1b99   :  { %3989 = vrcp.f32 %v3017_v55 }
0x1ba4   :  { %s3793_s25 = spop %3792 }
0x1ba5   :  { %s3795_s2 = spop %3794  ;;  %v3202_v63 = vstv %s3793_s25 }
0x1ba6   :  { %v3215_v56 = vstv %s3795_s2  ;;  %v3990_v59 = vpop.eup %3989 }
0x1ba7   :  { %3991 = vrcp.f32 %v3215_v56  ;;  %v3019_v13 = vmul.f32 %v3990_v59, %v3000_v60 }
0x1bb4   :  { %v3992_v29 = vpop.eup %3991 }
0x1bb5   :  { %v3217_v54 = vmul.f32 %v3992_v29, %v3202_v63 }
0x1bb7   :  { %v3218_v9 = vadd.f32 %v3217_v54, %v3019_v13 }
0x1bb9   :  { %3220 = vst.msk [vmem:[#allocation5] sm:$0x1] %vm3219_vm3, %v3218_v9 }
0x1bba   :  { %4029 = shalt.err (!%p4026_p9)
}
0x1bbb   :  { %3230 = dma.vmem_to_hbm [thread:$0]  %s3228_s27, 16, %s4832_s4, [#allocation4]  }
0x1bbc   :  { %4040 = dma.done.wait [#allocation4], 16  }
0x1bbd   :  { %4041 = vsyncadd [#allocation4], 4294967280 }
0x1bbe   :  { %3234 = vsyncpa [#allocation3], 1 }
0x1bbf   :  { %3235 = vsyncpa [#allocation4], 1 }

</bundles_post_ra>
